<compile_context>
chip_gen: v6e
topology: v6e:2x2x1
jax: 0.10.0
libtpu: 0.0.40
codegen_flags: <defaults>
</compile_context>

<pallas_src>
import jax
import jax.numpy as jnp
from jax.experimental import pallas as pl
from jax.experimental.pallas import tpu as pltpu

IN_DIM = 512
HID_DIM = 512
OUT_DIM = 9
OUT_PAD = 128   # lane-dense padded width for the final layer


def label_predictor_kernel(h_ref, w1_ref, b1_ref, w2_ref, b2_ref, w3_ref, b3_ref, o_ref):
    cdt = w1_ref.dtype  # MXU operand dtype (f32 or bf16)
    # Linear(512, 512) + ReLU  (f32 MXU accumulate; bias add / ReLU in f32)
    x = jnp.dot(h_ref[...], w1_ref[...], preferred_element_type=jnp.float32) + b1_ref[...]
    x = jnp.maximum(x, 0.0)
    # Linear(512, 512) + ReLU
    x = jnp.dot(x.astype(cdt), w2_ref[...], preferred_element_type=jnp.float32) + b2_ref[...]
    x = jnp.maximum(x, 0.0)
    # Linear(512, 9), padded to 128 output lanes
    o_ref[...] = jnp.dot(x.astype(cdt), w3_ref[...], preferred_element_type=jnp.float32) + b3_ref[...]


def label_predictor(h, w1, b1, w2, b2, w3, b3, *, tile_b=None, compute_dtype=jnp.float32):
    B = h.shape[0]
    if tile_b is None:
        tile_b = B if B <= 512 else 512  # big tiles: MXU occupancy, few grid steps
    assert B % tile_b == 0 and tile_b % 8 == 0
    # tile_b <= 1024 keeps the default scoped-VMEM limit safe on all generations (incl. v7x).
    assert tile_b <= 1024
    grid = (B // tile_b,)

    # MXU operands in compute_dtype; biases stay f32 (f32 accumulate + f32 VPU adds).
    h = h.astype(compute_dtype)
    w1 = w1.astype(compute_dtype)
    w2 = w2.astype(compute_dtype)
    w3 = w3.astype(compute_dtype)
    b1 = b1.astype(jnp.float32)
    b2 = b2.astype(jnp.float32)
    b3 = b3.astype(jnp.float32)

    # Zero-pad the final layer to a lane-dense width (9 -> 128).
    w3p = jnp.pad(w3, ((0, 0), (0, OUT_PAD - OUT_DIM)))
    b3p = jnp.pad(b3, ((0, 0), (0, OUT_PAD - OUT_DIM)))

    # Grid-invariant blocks (constant index_map): fetched once, not re-DMA'd per step.
    full = lambda shape: pl.BlockSpec(shape, lambda i: (0, 0))

    out_padded = pl.pallas_call(
        label_predictor_kernel,
        out_shape=jax.ShapeDtypeStruct((B, OUT_PAD), jnp.float32),
        grid_spec=pltpu.PrefetchScalarGridSpec(
            num_scalar_prefetch=0,
            grid=grid,
            in_specs=[
                pl.BlockSpec((tile_b, IN_DIM), lambda i: (i, 0)),   # h tile
                full((IN_DIM, HID_DIM)),                            # w1
                full((1, HID_DIM)),                                 # b1
                full((HID_DIM, HID_DIM)),                           # w2
                full((1, HID_DIM)),                                 # b2
                full((HID_DIM, OUT_PAD)),                           # w3 (padded)
                full((1, OUT_PAD)),                                 # b3 (padded)
            ],
            out_specs=pl.BlockSpec((tile_b, OUT_PAD), lambda i: (i, 0)),
        ),
        compiler_params=pltpu.CompilerParams(
            # "parallel" shards the batch-tile axis across v7x's 2 TensorCores.
            dimension_semantics=("parallel",),
        ),
    )(h, w1, b1, w2, b2, w3p, b3p)

    return out_padded[:, :OUT_DIM]


def init_params(key):
    # Deterministic init mirroring nn.Linear shapes (stored as [in, out]).
    ks = jax.random.split(key, 6)
    s1 = 1.0 / jnp.sqrt(IN_DIM)
    s2 = 1.0 / jnp.sqrt(HID_DIM)
    w1 = jax.random.uniform(ks[0], (IN_DIM, HID_DIM), jnp.float32, -s1, s1)
    b1 = jax.random.uniform(ks[1], (1, HID_DIM), jnp.float32, -s1, s1)
    w2 = jax.random.uniform(ks[2], (HID_DIM, HID_DIM), jnp.float32, -s2, s2)
    b2 = jax.random.uniform(ks[3], (1, HID_DIM), jnp.float32, -s2, s2)
    w3 = jax.random.uniform(ks[4], (HID_DIM, OUT_DIM), jnp.float32, -s2, s2)
    b3 = jax.random.uniform(ks[5], (1, OUT_DIM), jnp.float32, -s2, s2)
    return w1, b1, w2, b2, w3, b3


def reference(h, w1, b1, w2, b2, w3, b3):
    x = jnp.maximum(h @ w1 + b1, 0.0)
    x = jnp.maximum(x @ w2 + b2, 0.0)
    return x @ w3 + b3


if __name__ == "__main__":
    key = jax.random.PRNGKey(0)
    k_h, k_p = jax.random.split(key)
    B = 512
    h = jax.random.normal(k_h, (B, IN_DIM), jnp.float32)
    params = init_params(k_p)

    # --- f32 path, explicit tile_b=256 -> grid=(2,) (exercises pipelining /
    # keeps >=2 parallel steps for v7x megacore). Strict tolerance.
    out = label_predictor(h, *params, tile_b=256, compute_dtype=jnp.float32)
    out = jax.block_until_ready(out)
    ref = reference(h, *params)
    assert out.shape == (B, OUT_DIM)
    assert jnp.allclose(out, ref, atol=1e-4, rtol=1e-4)

    # --- bf16 MXU-operand path (f32 accumulate), default tile_b=B -> grid=(1,).
    # Compared against an f32 reference on the same bf16-rounded operands.
    out_bf16 = label_predictor(h, *params, compute_dtype=jnp.bfloat16)
    out_bf16 = jax.block_until_ready(out_bf16)
    cast = lambda a: a.astype(jnp.bfloat16).astype(jnp.float32)
    w1, b1, w2, b2, w3, b3 = params
    ref_bf16 = reference(cast(h), cast(w1), b1, cast(w2), b2, cast(w3), b3)
    assert out_bf16.shape == (B, OUT_DIM)
    assert jnp.allclose(out_bf16, ref_bf16, atol=1e-2, rtol=1e-2)

    print("KERNEL_OK")
</pallas_src>

<mosaic_0001>
module attributes {stable_mosaic.version = 11 : i64} {
  func.func @label_predictor_kernel(%arg0: i32, %arg1: memref<256x512xf32, #tpu.memory_space<vmem>>, %arg2: memref<512x512xf32, #tpu.memory_space<vmem>>, %arg3: memref<1x512xf32, #tpu.memory_space<vmem>>, %arg4: memref<512x512xf32, #tpu.memory_space<vmem>>, %arg5: memref<1x512xf32, #tpu.memory_space<vmem>>, %arg6: memref<512x128xf32, #tpu.memory_space<vmem>>, %arg7: memref<1x128xf32, #tpu.memory_space<vmem>>, %arg8: memref<256x128xf32, #tpu.memory_space<vmem>>) attributes {dimension_semantics = [#tpu.dimension_semantics<parallel>], iteration_bounds = array<i64: 2>, scalar_prefetch = 0 : i64, scratch_operands = 0 : i64, tpu.core_type = #tpu.core_type<tc>, window_params = [{transform_indices = @transform_0, window_bounds = array<i64: 256, 512>}, {pipeline_mode = #tpu.pipeline_mode<synchronous>, transform_indices = @transform_1, window_bounds = array<i64: 512, 512>}, {pipeline_mode = #tpu.pipeline_mode<synchronous>, transform_indices = @transform_2, window_bounds = array<i64: 1, 512>}, {pipeline_mode = #tpu.pipeline_mode<synchronous>, transform_indices = @transform_3, window_bounds = array<i64: 512, 512>}, {pipeline_mode = #tpu.pipeline_mode<synchronous>, transform_indices = @transform_4, window_bounds = array<i64: 1, 512>}, {pipeline_mode = #tpu.pipeline_mode<synchronous>, transform_indices = @transform_5, window_bounds = array<i64: 512, 128>}, {pipeline_mode = #tpu.pipeline_mode<synchronous>, transform_indices = @transform_6, window_bounds = array<i64: 1, 128>}, {transform_indices = @transform_7, window_bounds = array<i64: 256, 128>}]} {
    %c0 = arith.constant 0 : index
    %c0_0 = arith.constant 0 : index
    %0 = vector.load %arg1[%c0, %c0_0] : memref<256x512xf32, #tpu.memory_space<vmem>>, vector<256x512xf32>
    %c0_1 = arith.constant 0 : index
    %c0_2 = arith.constant 0 : index
    %1 = vector.load %arg2[%c0_1, %c0_2] : memref<512x512xf32, #tpu.memory_space<vmem>>, vector<512x512xf32>
    %cst = arith.constant dense<0.000000e+00> : vector<256x512xf32>
    %2 = tpu.matmul %0, %1, %cst {dimension_numbers = #tpu.dot_dimension_numbers<[1], [0], [0], [1], [0, 0, 1, 1], [], []>} : vector<256x512xf32>, vector<512x512xf32>, vector<256x512xf32> -> vector<256x512xf32>
    %c0_3 = arith.constant 0 : index
    %c0_4 = arith.constant 0 : index
    %3 = vector.load %arg3[%c0_3, %c0_4] : memref<1x512xf32, #tpu.memory_space<vmem>>, vector<1x512xf32>
    %4 = vector.broadcast %3 : vector<1x512xf32> to vector<256x512xf32>
    %5 = arith.addf %2, %4 : vector<256x512xf32>
    %cst_5 = arith.constant 0.000000e+00 : f32
    %6 = vector.broadcast %cst_5 : f32 to vector<256x512xf32>
    %7 = arith.maximumf %5, %6 : vector<256x512xf32>
    %c0_6 = arith.constant 0 : index
    %c0_7 = arith.constant 0 : index
    %8 = vector.load %arg4[%c0_6, %c0_7] : memref<512x512xf32, #tpu.memory_space<vmem>>, vector<512x512xf32>
    %cst_8 = arith.constant dense<0.000000e+00> : vector<256x512xf32>
    %9 = tpu.matmul %7, %8, %cst_8 {dimension_numbers = #tpu.dot_dimension_numbers<[1], [0], [0], [1], [0, 0, 1, 1], [], []>} : vector<256x512xf32>, vector<512x512xf32>, vector<256x512xf32> -> vector<256x512xf32>
    %c0_9 = arith.constant 0 : index
    %c0_10 = arith.constant 0 : index
    %10 = vector.load %arg5[%c0_9, %c0_10] : memref<1x512xf32, #tpu.memory_space<vmem>>, vector<1x512xf32>
    %11 = vector.broadcast %10 : vector<1x512xf32> to vector<256x512xf32>
    %12 = arith.addf %9, %11 : vector<256x512xf32>
    %cst_11 = arith.constant 0.000000e+00 : f32
    %13 = vector.broadcast %cst_11 : f32 to vector<256x512xf32>
    %14 = arith.maximumf %12, %13 : vector<256x512xf32>
    %c0_12 = arith.constant 0 : index
    %c0_13 = arith.constant 0 : index
    %15 = vector.load %arg6[%c0_12, %c0_13] : memref<512x128xf32, #tpu.memory_space<vmem>>, vector<512x128xf32>
    %cst_14 = arith.constant dense<0.000000e+00> : vector<256x128xf32>
    %16 = tpu.matmul %14, %15, %cst_14 {dimension_numbers = #tpu.dot_dimension_numbers<[1], [0], [0], [1], [0, 0, 1, 1], [], []>} : vector<256x512xf32>, vector<512x128xf32>, vector<256x128xf32> -> vector<256x128xf32>
    %c0_15 = arith.constant 0 : index
    %c0_16 = arith.constant 0 : index
    %17 = vector.load %arg7[%c0_15, %c0_16] : memref<1x128xf32, #tpu.memory_space<vmem>>, vector<1x128xf32>
    %18 = vector.broadcast %17 : vector<1x128xf32> to vector<256x128xf32>
    %19 = arith.addf %16, %18 : vector<256x128xf32>
    %c0_17 = arith.constant 0 : index
    %c0_18 = arith.constant 0 : index
    %20 = vector.load %arg8[%c0_17, %c0_18] : memref<256x128xf32, #tpu.memory_space<vmem>>, vector<256x128xf32>
    tpu.vector_store %arg8[%c0_17, %c0_18], %19 {strides = array<i32>} : memref<256x128xf32, #tpu.memory_space<vmem>>, vector<256x128xf32>,
    return
  }
  func.func @transform_0(%arg0: i32) -> (i32, i32) {
    %c0_i32 = arith.constant 0 : i32
    %c0_i32_0 = arith.constant 0 : i32
    return %arg0, %c0_i32 : i32, i32
  }
  func.func @transform_1(%arg0: i32) -> (i32, i32) {
    %c0_i32 = arith.constant 0 : i32
    %c0_i32_0 = arith.constant 0 : i32
    %c0_i32_1 = arith.constant 0 : i32
    return %c0_i32, %c0_i32_0 : i32, i32
  }
  func.func @transform_2(%arg0: i32) -> (i32, i32) {
    %c0_i32 = arith.constant 0 : i32
    %c0_i32_0 = arith.constant 0 : i32
    %c0_i32_1 = arith.constant 0 : i32
    return %c0_i32, %c0_i32_0 : i32, i32
  }
  func.func @transform_3(%arg0: i32) -> (i32, i32) {
    %c0_i32 = arith.constant 0 : i32
    %c0_i32_0 = arith.constant 0 : i32
    %c0_i32_1 = arith.constant 0 : i32
    return %c0_i32, %c0_i32_0 : i32, i32
  }
  func.func @transform_4(%arg0: i32) -> (i32, i32) {
    %c0_i32 = arith.constant 0 : i32
    %c0_i32_0 = arith.constant 0 : i32
    %c0_i32_1 = arith.constant 0 : i32
    return %c0_i32, %c0_i32_0 : i32, i32
  }
  func.func @transform_5(%arg0: i32) -> (i32, i32) {
    %c0_i32 = arith.constant 0 : i32
    %c0_i32_0 = arith.constant 0 : i32
    %c0_i32_1 = arith.constant 0 : i32
    return %c0_i32, %c0_i32_0 : i32, i32
  }
  func.func @transform_6(%arg0: i32) -> (i32, i32) {
    %c0_i32 = arith.constant 0 : i32
    %c0_i32_0 = arith.constant 0 : i32
    %c0_i32_1 = arith.constant 0 : i32
    return %c0_i32, %c0_i32_0 : i32, i32
  }
  func.func @transform_7(%arg0: i32) -> (i32, i32) {
    %c0_i32 = arith.constant 0 : i32
    %c0_i32_0 = arith.constant 0 : i32
    return %arg0, %c0_i32 : i32, i32
  }
}

</mosaic_0001>

<bundles_post_ra>
// kernel: tpu_custom_call.1
= control target key start
LH: loop header
LB: loop body
LE: loop exit
PB: predicated region body
PF: predicated region fallthrough
CT: control target
= control target key end

     0   :  { %s7465_s0 = inlined_call_operand.hbm [shape: f32[512,512], index: 0, kind: input, shape index: {}]   ;;  %s7466_s1 = inlined_call_operand.hbm [shape: f32[512,512], index: 1, kind: input, shape index: {}]   ;;  %s7467_s2 = inlined_call_operand.hbm [shape: f32[1,512], index: 2, kind: input, shape index: {}]   ;;  %s7468_s3 = inlined_call_operand.hbm [shape: f32[512,512], index: 3, kind: input, shape index: {}]   ;;  %s7469_s4 = inlined_call_operand.vmem [shape: f32[1,512], index: 4, kind: input, shape index: {}]   ;;  %s7470_s5 = inlined_call_operand.hbm [shape: f32[512,128], index: 5, kind: input, shape index: {}]   ;;  %s7471_s6 = inlined_call_operand.vmem [shape: f32[1,128], index: 6, kind: input, shape index: {}]   ;;  %s7472_s7 = inlined_call_operand.hbm [shape: f32[512,128], index: 7, kind: output, shape index: {}]  }
   0x1   :  { %7698 = sst [smem:[#allocation86_spill]] %s7466_s1 }
   0x2   :  { %12 = vsyncpa [#allocation3], 0 }
   0x3   :  { %14 = vsyncpa [#allocation3 + $0x1], 0 }
   0x4   :  { %15 = vsyncpa [#allocation6], 0 }
   0x5   :  { %16 = vsyncpa [#allocation9], 0 }
   0x6   :  { %17 = vsyncpa [#allocation4], 0 }
   0x7   :  { %19 = vsyncpa [#allocation4 + $0x1], 0  ;;  %s4415_s24 = smov 0   ;;  %s4417_s25 = smov 0  }
   0x8   :  { %s4419_s26 = smov 0   ;;  %s4421_s27 = smov 0  }
   0x9 LB: > { %s4436_s28 = sadd.s32 4294967295, %s4360_s27   ;;  %s4030_s29 = sadd.s32 4294967294, %s4360_s27   ;;  %s4360_s27 = sphi %s4421_s27, %s8277_s27   ;;  %s4356_s26 = sphi %s4419_s26, %s8276_s26   ;;  %s4352_s25 = sphi %s4417_s25, %s8275_s25   ;;  %s4348_s24 = sphi %s4415_s24, %s8274_s24  }
   0xa   : > { %p45_p0 = scmp.ne.s32.totalorder %s4352_s25, %s4348_s24  ;;  %p7473_p1 = scmp.eq.s32.totalorder %s4436_s28, 0 }
   0xb   : > { %p201_p3 = scmp.eq.s32.totalorder %s4030_s29, 1  ;;  %p4031_p5 = scmp.ge.s32.totalorder %s4360_s27, 1 }
   0xc   : > { %p4445_p4 = por %p7473_p1, %p45_p0  ;;  %p208_p7 = scmp.lt.s32.totalorder %s4360_s27, 3 }
   0xd   : > { %p4450_p6 = por %p201_p3, %p45_p0  ;;  %s4362_s10 = smov [#allocation5]  }
   0xe   : > { %s7699_s30 = scalar_select %p4445_p4, 1, 0 }
   0xf   : > { %s7700_s8 = scalar_select %p4450_p6, 1, 0 }
  0x10   : > { %p4455_p8 = pnand %p4031_p5, %p208_p7  ;;  %s220_s11 = sshll.u32 %s4362_s10, 4  ;;  %s221_s11 = int_to_ptr.vmem [resolvable:$true] %s220_s11 }
  0x11   : > { %s4363_s13 = smov [#allocation8]   ;;  %s4364_s15 = smov [#allocation7]  }
  0x12   : > { %s7701_s9 = scalar_select %p4455_p8, 1, 0 }
  0x13   : > { %p4077_p9 = pneg %p4455_p8  ;;  %s244_s14 = sshll.u32 %s4363_s13, 4  ;;  %s245_s14 = int_to_ptr.vmem [resolvable:$true] %s244_s14 }
  0x14   : > { %s234_s16 = sshll.u32 %s4364_s15, 4  ;;  %s4167_s17 = scalar_lea.vmem %s221_s11, 32768  ;;  %s235_s16 = int_to_ptr.vmem [resolvable:$true] %s234_s16 }
  0x15   : > { %p4464_p11 = pnand %p4077_p9, %p7473_p1  ;;  %p4168_p13 = scmp.ne.s32.totalorder %s221_s11, %s4167_s17 }
  0x16   : > { %p4175_p5 = scmp.lt.s32.totalorder %s221_s11, %s221_s11  ;;  %p4176_p7 = scmp.lt.s32.totalorder %s4167_s17, %s4167_s17 }
  0x17   : > { %p4158_p12 = pneg %p4464_p11 }
  0x18   : > { %p4177_p9 = por %p4176_p7, %p4175_p5 }
  0x19   : > { %p4170_p0 = pnand %p4168_p13, %p4158_p12 }
  0x1b   : > { %p4171_p3 = pneg %p4170_p0 }
  0x1d   : > { %p4178_p10 = pnand %p4177_p9, %p4171_p3 }
  0x1f   : > { %4181 = shalt.err (!%p4178_p10)
}
  0x20   : > { %s7474_s18 = smov 512   ;;  %s7475_s19 = smov 32  }
  0x21   : > { %s7703_s1 = sld [smem:[#allocation86_spill]]  ;;  %s4193_s22 = scalar_lea.vmem %s245_s14, 32768 }
  0x22   : > { %p4194_p13 = scmp.ne.s32.totalorder %s245_s14, %s4193_s22  ;;  %p4201_p3 = scmp.lt.s32.totalorder %s245_s14, %s245_s14 }
  0x23   : > { %p4202_p10 = scmp.lt.s32.totalorder %s4193_s22, %s4193_s22 }
  0x24   : > { %p4196_p0 = pnand %p4194_p13, %p4158_p12 }
  0x25   : > { %p4203_p7 = por %p4202_p10, %p4201_p3 }
  0x26   : > { %p4197_p5 = pneg %p4196_p0 }
  0x27   : > { %4080 = dma.hbm_to_vmem [thread:$0]  (!%p4464_p11), %s7703_s1, 32768, %s221_s11, [#allocation6], %s7474_s18, %s7474_s18, %s7475_s19  }
  0x28   : > { %p4204_p9 = pnand %p4203_p7, %p4197_p5 }
  0x2a   : > { %4207 = shalt.err (!%p4204_p9)
}
  0x2b   : > { %4086 = dma.hbm_to_vmem [thread:$0]  (!%p4464_p11), %s7468_s3, 32768, %s245_s14, [#allocation9], %s7474_s18, %s7474_s18, %s7475_s19  }
  0x2c   : > { %s4219_s10 = scalar_lea.vmem %s235_s16, 64  ;;  %p4227_p3 = scmp.lt.s32.totalorder %s235_s16, %s235_s16 }
  0x2d   : > { %p4220_p1 = scmp.ne.s32.totalorder %s235_s16, %s4219_s10  ;;  %p4228_p5 = scmp.lt.s32.totalorder %s4219_s10, %s4219_s10 }
  0x2f   : > { %p4222_p13 = pnand %p4220_p1, %p4158_p12  ;;  %p4229_p10 = por %p4228_p5, %p4227_p3 }
  0x31   : > { %p4223_p0 = pneg %p4222_p13 }
  0x33   : > { %p4230_p7 = pnand %p4229_p10, %p4223_p0 }
  0x35   : > { %4233 = shalt.err (!%p4230_p7)
}
  0x36   : > { %4083 = dma.hbm_to_vmem [thread:$0]  (!%p4464_p11), %s7467_s2, 64, %s235_s16, [#allocation6]  }
  0x37   : > { %s4367_s14 = smov [#allocation10]  }
  0x38   : > { %s260_s15 = sshll.u32 %s4367_s14, 4  ;;  %s261_s15 = int_to_ptr.vmem [resolvable:$true] %s260_s15 }
  0x39   : > { %s4245_s17 = scalar_lea.vmem %s261_s15, 8192  ;;  %p4253_p2 = scmp.lt.s32.totalorder %s261_s15, %s261_s15 }
  0x3a   : > { %p4246_p9 = scmp.ne.s32.totalorder %s261_s15, %s4245_s17  ;;  %p4254_p3 = scmp.lt.s32.totalorder %s4245_s17, %s4245_s17 }
  0x3c   : > { %p4248_p1 = pnand %p4246_p9, %p4158_p12  ;;  %p4255_p0 = por %p4254_p3, %p4253_p2 }
  0x3e   : > { %p4249_p13 = pneg %p4248_p1 }
  0x40   : > { %p4256_p5 = pnand %p4255_p0, %p4249_p13 }
  0x42   : > { %4259 = shalt.err (!%p4256_p5)
}
  0x43   : > { %s4368_s20 = smov 128   ;;  %s4369_s16 = smov 8  }
  0x44   : > { %4089 = dma.hbm_to_vmem [thread:$0]  (!%p4464_p11), %s7470_s5, 8192, %s261_s15, [#allocation9], %s4368_s20, %s4368_s20, %s4369_s16  }
  0x45   : > { %s4509_s23 = sadd.s32 1, %s4360_s27   ;;  %s32_s10 = sadd.s32 1, %s4356_s26 }
  0x46   : > { %s29_s29 = ssub.s32 %s4360_s27, %s4509_s23  ;;  %p39_p12 = scmp.ne.s32.totalorder %s4356_s26, %s4352_s25 }
  0x47   : > { %p30_p2 = scmp.eq.s32.totalorder %s29_s29, 0  ;;  %p40_p10 = scmp.eq.s32.totalorder %s4360_s27, 0 }
  0x48   : > { %p7704_p9 = scmp.eq.s32.totalorder %s4436_s28, 1  ;;  %p4102_p13 = scmp.lt.s32.totalorder %s4360_s27, 2 }
  0x49   : > { %s4518_s11 = scalar_select %p30_p2, %s4356_s26, %s32_s10  }
  0x4a   : > { %p41_p7 = por %p40_p10, %p39_p12  ;;  %p4522_p1 = por %p7704_p9, %p39_p12 }
  0x4b   : > { %s277_s12 = sand.u32 1, %s4356_s26   ;;  %s4055_s15 = sshll.u32 %s4360_s27, 14 }
  0x4c   : > { %s7705_s13 = scalar_select %p4522_p1, 1, 0 }
  0x4d   : > { %s4037_s14 = sshll.u32 %s277_s12, 10  ;;  %s4532_s16 = scalar_lea.hbm %s7465_s0, %s4055_s15 }
  0x4e   : > { %s281_s21 = scalar_lea.vmem [#allocation2], %s4037_s14  ;;  %p4536_p11 = pnand %p4102_p13, %p41_p7 }
  0x4f   : > { %s289_s22 = sshll.u32 %s281_s21, 4  ;;  %s4540_s10 = scalar_lea.sflag [#allocation3], %s277_s12  ;;  %s4534_s22 = int_to_ptr.vmem [resolvable:$true] %s289_s22 }
  0x50   : > { %s4260_s18 = scalar_lea.hbm %s4532_s16, 16384  ;;  %p4262_p0 = pneg %p4536_p11 }
  0x51   : > { %p4261_p3 = scmp.ne.s32.totalorder %s4532_s16, %s4260_s18  ;;  %s4265_s14 = scalar_lea.hbm %s7465_s0, 32768 }
  0x52   : > { %p4266_p12 = scmp.lt.s32.totalorder %s4532_s16, %s7465_s0  ;;  %p4267_p10 = scmp.lt.s32.totalorder %s4265_s14, %s4260_s18 }
  0x53   : > { %p4263_p5 = pnand %p4262_p0, %p4261_p3 }
  0x54   : > { %p4268_p7 = por %p4267_p10, %p4266_p12 }
  0x55   : > { %p4264_p2 = pneg %p4263_p5 }
  0x57   : > { %p4269_p9 = pnand %p4268_p7, %p4264_p2 }
  0x59   : > { %4272 = shalt.err (!%p4269_p9)
}
  0x5a   : > { %s4273_s12 = scalar_lea.vmem %s4534_s22, 16384  ;;  %s4370_s19 = smov [#allocation2]  }
  0x5b   : > { %p4274_p13 = scmp.ne.s32.totalorder %s4534_s22, %s4273_s12  ;;  %s4278_s1 = sshll.u32 %s4370_s19, 4  ;;  %s4279_s1 = int_to_ptr.vmem [resolvable:$false] %s4278_s1 }
  0x5c   : > { %s4280_s15 = scalar_lea.vmem %s4279_s1, 32768  ;;  %p4281_p5 = scmp.lt.s32.totalorder %s4534_s22, %s4279_s1 }
  0x5d   : > { %p4276_p6 = pnand %p4274_p13, %p4262_p0  ;;  %p4282_p1 = scmp.lt.s32.totalorder %s4280_s15, %s4273_s12 }
  0x5f   : > { %p4277_p3 = pneg %p4276_p6  ;;  %p4283_p4 = por %p4282_p1, %p4281_p5 }
  0x61   : > { %p4284_p8 = pnand %p4283_p4, %p4277_p3 }
  0x63   : > { %4287 = shalt.err (!%p4284_p8)
}
  0x64   : > { %s7707_s18 = smov 32   ;;  %s7708_s17 = smov 512  }
  0x65   : > { %4093 = dma.hbm_to_vmem [thread:$0]  (!%p4536_p11), %s4532_s16, 16384, %s4534_s22, %s4540_s10, %s7708_s17, %s7708_s17, %s7707_s18  }
  0x66   : > { %p7709_p6 = scmp.ne.s32.totalorder %s7701_s9, 0 }
  0x68   : > { %301 = sbr.rel (%p7709_p6) target bundleno = 1178 (0x49a), region = 48 }
  0x6d   : > { %s4567_s19 = sand.u32 1, %s4352_s25   ;;  %p7710_p4 = scmp.ne.s32.totalorder %s7699_s30, 0 }
  0x6e   : > { %s4042_s1 = sshll.u32 %s4567_s19, 10  ;;  %s304_s14 = scalar_lea.sflag [#allocation3], %s4567_s19 }
  0x6f   : > { %s4571_s20 = scalar_lea.vmem [#allocation2], %s4042_s1 }
  0x70   : > { %4331 = dma.done.wait (%p7710_p4), %s304_s14, 16384  }
  0x71   : > { %4333 = vsyncadd (%p7710_p4), %s304_s14, 4294950912  ;;  %p7711_p8 = scmp.eq.s32.totalorder %s4436_s28, 0 }
  0x73   : > { %4335 = dma.done.wait (%p7711_p8), [#allocation6], 32832   ;;  %p7712_p1 = pmov %p7711_p8 }
  0x75   : > { %4337 = vsyncadd (%p7712_p1), [#allocation6], 4294934464  ;;  %p7713_p11 = pmov %p7712_p1 }
  0x76   : > { %p7714_p0 = pmov %p7712_p1 }
  0x77   : > { %4339 = dma.done.wait (%p7713_p11), [#allocation9], 40960  }
  0x78   : > { %4341 = vsyncadd (%p7714_p0), [#allocation9], 4294926336  ;;  %v545_v0 = vld [vmem:[#allocation5 + $0x1e8] sm:$0xff]  ;;  %v544_v1 = vld [vmem:[#allocation5 + $0x1e0] sm:$0xff]  ;;  %s4047_s29 = sshll.u32 %s4567_s19, 8  ;;  %s4056_s21 = sshll.u32 %s4436_s28, 12 }
  0x79   : > { %v673_v2 = vld [vmem:[#allocation5 + $0x5e8] sm:$0xff]  ;;  %762 = vmatprep.subr.mxu0 %v545_v0  ;;  %v672_v4 = vld [vmem:[#allocation5 + $0x5e0] sm:$0xff]  ;;  %s7321_s10 = scalar_lea.vmem [#allocation11], %s4047_s29  ;;  %s7419_s17 = scalar_lea.hbm %s7472_s7, %s4056_s21 }
  0x7a   : > { %1019 = vmatprep.subr.mxu1 %v673_v2  ;;  %v541_v3 = vld [vmem:[#allocation5 + $0x1c8] sm:$0xff]  ;;  %v540_v5 = vld [vmem:[#allocation5 + $0x1c0] sm:$0xff]  ;;  %763 = vmatpush1.msra.mxu0 %v544_v1  ;;  %s3919_s12 = sshll.u32 %s7321_s10, 4  ;;  %s3906_s28 = scalar_lea.sflag [#allocation4], %s4567_s19  ;;  %s7421_s12 = int_to_ptr.vmem [resolvable:$true] %s3919_s12 }
  0x7b   : > { %1020 = vmatpush1.msra.mxu1 %v672_v4  ;;  %v669_v6 = vld [vmem:[#allocation5 + $0x5c8] sm:$0xff]  ;;  %v668_v8 = vld [vmem:[#allocation5 + $0x5c0] sm:$0xff]  ;;  %764 = vmatprep.subr.mxu0 %v541_v3  ;;  %s4288_s1 = scalar_lea.vmem %s7421_s12, 4096  ;;  %p8271_p12 = scmp.ne.s32.totalorder %s7705_s13, 0 }
  0x7c   : > { %v537_v7 = vld [vmem:[#allocation5 + $0x1a8] sm:$0xff]  ;;  %1021 = vmatprep.subr.mxu1 %v669_v6  ;;  %v536_v9 = vld [vmem:[#allocation5 + $0x1a0] sm:$0xff]  ;;  %765 = vmatpush1.msra.mxu0 %v540_v5  ;;  %p4289_p2 = scmp.ne.s32.totalorder %s7421_s12, %s4288_s1  ;;  %s4372_s14 = smov [#allocation11]  }
  0x7d   : > { %v665_v10 = vld [vmem:[#allocation5 + $0x5a8] sm:$0xff]  ;;  %1022 = vmatpush1.msra.mxu1 %v668_v8  ;;  %v664_v12 = vld [vmem:[#allocation5 + $0x5a0] sm:$0xff]  ;;  %766 = vmatprep.subr.mxu0 %v537_v7 }
  0x7e   : > { %v533_v11 = vld [vmem:[#allocation5 + $0x188] sm:$0xff]  ;;  %1023 = vmatprep.subr.mxu1 %v665_v10  ;;  %v532_v14 = vld [vmem:[#allocation5 + $0x180] sm:$0xff]  ;;  %767 = vmatpush1.msra.mxu0 %v536_v9  ;;  %p4290_p10 = pnand %p4289_p2, %p8271_p12 }
  0x7f   : > { %v661_v13 = vld [vmem:[#allocation5 + $0x588] sm:$0xff]  ;;  %v660_v15 = vld [vmem:[#allocation5 + $0x580] sm:$0xff]  ;;  %1024 = vmatpush1.msra.mxu1 %v664_v12  ;;  %768 = vmatprep.subr.mxu0 %v533_v11 }
  0x80   : > { %v529_v16 = vld [vmem:[#allocation5 + $0x168] sm:$0xff]  ;;  %1025 = vmatprep.subr.mxu1 %v661_v13  ;;  %v528_v18 = vld [vmem:[#allocation5 + $0x160] sm:$0xff]  ;;  %769 = vmatpush1.msra.mxu0 %v532_v14  ;;  %p4291_p7 = pneg %p4290_p10 }
  0x81   : > { %v657_v17 = vld [vmem:[#allocation5 + $0x568] sm:$0xff]  ;;  %v656_v19 = vld [vmem:[#allocation5 + $0x560] sm:$0xff]  ;;  %1026 = vmatpush1.msra.mxu1 %v660_v15  ;;  %770 = vmatprep.subr.mxu0 %v529_v16 }
  0x82   : > { %v525_v20 = vld [vmem:[#allocation5 + $0x148] sm:$0xff]  ;;  %1027 = vmatprep.subr.mxu1 %v657_v17  ;;  %v524_v22 = vld [vmem:[#allocation5 + $0x140] sm:$0xff]  ;;  %771 = vmatpush1.msra.mxu0 %v528_v18 }
  0x83   : > { %v653_v21 = vld [vmem:[#allocation5 + $0x548] sm:$0xff]  ;;  %v652_v23 = vld [vmem:[#allocation5 + $0x540] sm:$0xff]  ;;  %1028 = vmatpush1.msra.mxu1 %v656_v19  ;;  %772 = vmatprep.subr.mxu0 %v525_v20 }
  0x84   : > { %v521_v24 = vld [vmem:[#allocation5 + $0x128] sm:$0xff]  ;;  %1029 = vmatprep.subr.mxu1 %v653_v21  ;;  %v520_v26 = vld [vmem:[#allocation5 + $0x120] sm:$0xff]  ;;  %773 = vmatpush1.msra.mxu0 %v524_v22 }
  0x85   : > { %v649_v25 = vld [vmem:[#allocation5 + $0x528] sm:$0xff]  ;;  %v648_v27 = vld [vmem:[#allocation5 + $0x520] sm:$0xff]  ;;  %1030 = vmatpush1.msra.mxu1 %v652_v23  ;;  %774 = vmatprep.subr.mxu0 %v521_v24 }
  0x86   : > { %v517_v28 = vld [vmem:[#allocation5 + $0x108] sm:$0xff]  ;;  %1031 = vmatprep.subr.mxu1 %v649_v25  ;;  %v516_v30 = vld [vmem:[#allocation5 + $0x100] sm:$0xff]  ;;  %775 = vmatpush1.msra.mxu0 %v520_v26 }
  0x87   : > { %v645_v29 = vld [vmem:[#allocation5 + $0x508] sm:$0xff]  ;;  %v644_v31 = vld [vmem:[#allocation5 + $0x500] sm:$0xff]  ;;  %1032 = vmatpush1.msra.mxu1 %v648_v27  ;;  %776 = vmatprep.subr.mxu0 %v517_v28 }
  0x88   : > { %v513_v32 = vld [vmem:[#allocation5 + $0xe8] sm:$0xff]  ;;  %1033 = vmatprep.subr.mxu1 %v645_v29  ;;  %v512_v34 = vld [vmem:[#allocation5 + $0xe0] sm:$0xff]  ;;  %777 = vmatpush1.msra.mxu0 %v516_v30 }
  0x89   : > { %v641_v33 = vld [vmem:[#allocation5 + $0x4e8] sm:$0xff]  ;;  %v640_v35 = vld [vmem:[#allocation5 + $0x4e0] sm:$0xff]  ;;  %1034 = vmatpush1.msra.mxu1 %v644_v31  ;;  %778 = vmatprep.subr.mxu0 %v513_v32 }
  0x8a   : > { %v509_v36 = vld [vmem:[#allocation5 + $0xc8] sm:$0xff]  ;;  %1035 = vmatprep.subr.mxu1 %v641_v33  ;;  %v508_v38 = vld [vmem:[#allocation5 + $0xc0] sm:$0xff]  ;;  %779 = vmatpush1.msra.mxu0 %v512_v34 }
  0x8b   : > { %v637_v37 = vld [vmem:[#allocation5 + $0x4c8] sm:$0xff]  ;;  %v636_v39 = vld [vmem:[#allocation5 + $0x4c0] sm:$0xff]  ;;  %1036 = vmatpush1.msra.mxu1 %v640_v35  ;;  %780 = vmatprep.subr.mxu0 %v509_v36 }
  0x8c   : > { %v505_v40 = vld [vmem:[#allocation5 + $0xa8] sm:$0xff]  ;;  %1037 = vmatprep.subr.mxu1 %v637_v37  ;;  %v504_v42 = vld [vmem:[#allocation5 + $0xa0] sm:$0xff]  ;;  %781 = vmatpush1.msra.mxu0 %v508_v38 }
  0x8d   : > { %v633_v41 = vld [vmem:[#allocation5 + $0x4a8] sm:$0xff]  ;;  %v632_v43 = vld [vmem:[#allocation5 + $0x4a0] sm:$0xff]  ;;  %1038 = vmatpush1.msra.mxu1 %v636_v39  ;;  %782 = vmatprep.subr.mxu0 %v505_v40 }
  0x8e   : > { %v501_v44 = vld [vmem:[#allocation5 + $0x88] sm:$0xff]  ;;  %1039 = vmatprep.subr.mxu1 %v633_v41  ;;  %v500_v46 = vld [vmem:[#allocation5 + $0x80] sm:$0xff]  ;;  %783 = vmatpush1.msra.mxu0 %v504_v42 }
  0x8f   : > { %v629_v45 = vld [vmem:[#allocation5 + $0x488] sm:$0xff]  ;;  %v628_v47 = vld [vmem:[#allocation5 + $0x480] sm:$0xff]  ;;  %1040 = vmatpush1.msra.mxu1 %v632_v43  ;;  %784 = vmatprep.subr.mxu0 %v501_v44 }
  0x90   : > { %v497_v48 = vld [vmem:[#allocation5 + $0x68] sm:$0xff]  ;;  %1041 = vmatprep.subr.mxu1 %v629_v45  ;;  %v496_v50 = vld [vmem:[#allocation5 + $0x60] sm:$0xff]  ;;  %785 = vmatpush1.msra.mxu0 %v500_v46 }
  0x91   : > { %v625_v49 = vld [vmem:[#allocation5 + $0x468] sm:$0xff]  ;;  %v624_v51 = vld [vmem:[#allocation5 + $0x460] sm:$0xff]  ;;  %1042 = vmatpush1.msra.mxu1 %v628_v47  ;;  %786 = vmatprep.subr.mxu0 %v497_v48 }
  0x92   : > { %v493_v52 = vld [vmem:[#allocation5 + $0x48] sm:$0xff]  ;;  %1043 = vmatprep.subr.mxu1 %v625_v49  ;;  %v492_v54 = vld [vmem:[#allocation5 + $0x40] sm:$0xff]  ;;  %787 = vmatpush1.msra.mxu0 %v496_v50 }
  0x93   : > { %v621_v53 = vld [vmem:[#allocation5 + $0x448] sm:$0xff]  ;;  %v620_v55 = vld [vmem:[#allocation5 + $0x440] sm:$0xff]  ;;  %1044 = vmatpush1.msra.mxu1 %v624_v51  ;;  %788 = vmatprep.subr.mxu0 %v493_v52 }
  0x94   : > { %v489_v56 = vld [vmem:[#allocation5 + $0x28] sm:$0xff]  ;;  %1045 = vmatprep.subr.mxu1 %v621_v53  ;;  %v488_v58 = vld [vmem:[#allocation5 + $0x20] sm:$0xff]  ;;  %789 = vmatpush1.msra.mxu0 %v492_v54 }
  0x95   : > { %v617_v57 = vld [vmem:[#allocation5 + $0x428] sm:$0xff]  ;;  %v616_v59 = vld [vmem:[#allocation5 + $0x420] sm:$0xff]  ;;  %1046 = vmatpush1.msra.mxu1 %v620_v55  ;;  %790 = vmatprep.subr.mxu0 %v489_v56 }
  0x96   : > { %v485_v60 = vld [vmem:[#allocation5 + $0x8] sm:$0xff]  ;;  %1047 = vmatprep.subr.mxu1 %v617_v57  ;;  %v484_v62 = vld [vmem:[#allocation5] sm:$0xff]  ;;  %791 = vmatpush1.msra.mxu0 %v488_v58 }
  0x97   : > { %v613_v61 = vld [vmem:[#allocation5 + $0x408] sm:$0xff]  ;;  %v612_v63 = vld [vmem:[#allocation5 + $0x400] sm:$0xff]  ;;  %1048 = vmatpush1.msra.mxu1 %v616_v59  ;;  %792 = vmatprep.subr.mxu0 %v485_v60 }
  0x98   : > { %v609_v0 = vld [vmem:[#allocation5 + $0x3e8] sm:$0xff]  ;;  %1049 = vmatprep.subr.mxu1 %v613_v61  ;;  %v608_v2 = vld [vmem:[#allocation5 + $0x3e0] sm:$0xff]  ;;  %793 = vmatpush1.msra.mxu0 %v484_v62 }
  0x99   : > { %v737_v1 = vld [vmem:[#allocation5 + $0x7e8] sm:$0xff]  ;;  %v736_v3 = vld [vmem:[#allocation5 + $0x7e0] sm:$0xff]  ;;  %1050 = vmatpush1.msra.mxu1 %v612_v63  ;;  %794 = vmatprep.subr.mxu0 %v609_v0 }
  0x9a   : > { %v605_v4 = vld [vmem:[#allocation5 + $0x3c8] sm:$0xff]  ;;  %1051 = vmatprep.subr.mxu1 %v737_v1  ;;  %v604_v6 = vld [vmem:[#allocation5 + $0x3c0] sm:$0xff]  ;;  %795 = vmatpush2.msra.mxu0 %v608_v2  ;;  %v359_v2 = vld [vmem:[%s4571_s20 + $0x18] sm:$0xff] }
  0x9b   : > { %v733_v5 = vld [vmem:[#allocation5 + $0x7c8] sm:$0xff]  ;;  %v732_v7 = vld [vmem:[#allocation5 + $0x7c0] sm:$0xff]  ;;  %1052 = vmatpush2.msra.mxu1 %v736_v3  ;;  %796 = vmatprep.subr.mxu0 %v605_v4  ;;  %v547_v3 = vld [vmem:[#allocation5 + $0x1f8] sm:$0xff] }
  0x9c   : > { %v601_v8 = vld [vmem:[#allocation5 + $0x3a8] sm:$0xff]  ;;  %1053 = vmatprep.subr.mxu1 %v733_v5  ;;  %v600_v10 = vld [vmem:[#allocation5 + $0x3a0] sm:$0xff]  ;;  %797 = vmatpush2.msra.mxu0 %v604_v6  ;;  %v358_v4 = vld [vmem:[%s4571_s20 + $0x10] sm:$0xff] }
  0x9d   : > { %v729_v9 = vld [vmem:[#allocation5 + $0x7a8] sm:$0xff]  ;;  %v728_v11 = vld [vmem:[#allocation5 + $0x7a0] sm:$0xff]  ;;  %1054 = vmatpush2.msra.mxu1 %v732_v7  ;;  %798 = vmatprep.subr.mxu0 %v601_v8  ;;  %v546_v5 = vld [vmem:[#allocation5 + $0x1f0] sm:$0xff] }
  0x9e   : > { %v597_v12 = vld [vmem:[#allocation5 + $0x388] sm:$0xff]  ;;  %1055 = vmatprep.subr.mxu1 %v729_v9  ;;  %v596_v14 = vld [vmem:[#allocation5 + $0x380] sm:$0xff]  ;;  %799 = vmatpush2.msra.mxu0 %v600_v10  ;;  %v675_v6 = vld [vmem:[#allocation5 + $0x5f8] sm:$0xff] }
  0x9f   : > { %v725_v13 = vld [vmem:[#allocation5 + $0x788] sm:$0xff]  ;;  %v724_v15 = vld [vmem:[#allocation5 + $0x780] sm:$0xff]  ;;  %1056 = vmatpush2.msra.mxu1 %v728_v11  ;;  %800 = vmatprep.subr.mxu0 %v597_v12  ;;  %v674_v8 = vld [vmem:[#allocation5 + $0x5f0] sm:$0xff] }
  0xa0   : > { %v593_v16 = vld [vmem:[#allocation5 + $0x368] sm:$0xff]  ;;  %1057 = vmatprep.subr.mxu1 %v725_v13  ;;  %v592_v18 = vld [vmem:[#allocation5 + $0x360] sm:$0xff]  ;;  %801 = vmatpush2.msra.mxu0 %v596_v14  ;;  %v4594_v10 = vld [vmem:[%s4571_s20 + $0x38] sm:$0xff] }
  0xa1   : > { %v721_v17 = vld [vmem:[#allocation5 + $0x768] sm:$0xff]  ;;  %v720_v19 = vld [vmem:[#allocation5 + $0x760] sm:$0xff]  ;;  %1058 = vmatpush2.msra.mxu1 %v724_v15  ;;  %802 = vmatprep.subr.mxu0 %v593_v16  ;;  %v543_v11 = vld [vmem:[#allocation5 + $0x1d8] sm:$0xff] }
  0xa2   : > { %v589_v20 = vld [vmem:[#allocation5 + $0x348] sm:$0xff]  ;;  %1059 = vmatprep.subr.mxu1 %v721_v17  ;;  %v588_v22 = vld [vmem:[#allocation5 + $0x340] sm:$0xff]  ;;  %803 = vmatpush2.msra.mxu0 %v592_v18  ;;  %v4598_v12 = vld [vmem:[%s4571_s20 + $0x30] sm:$0xff] }
  0xa3   : > { %v717_v21 = vld [vmem:[#allocation5 + $0x748] sm:$0xff]  ;;  %v716_v23 = vld [vmem:[#allocation5 + $0x740] sm:$0xff]  ;;  %1060 = vmatpush2.msra.mxu1 %v720_v19  ;;  %804 = vmatprep.subr.mxu0 %v589_v20  ;;  %v542_v13 = vld [vmem:[#allocation5 + $0x1d0] sm:$0xff] }
  0xa4   : > { %v585_v24 = vld [vmem:[#allocation5 + $0x328] sm:$0xff]  ;;  %1061 = vmatprep.subr.mxu1 %v717_v21  ;;  %v584_v26 = vld [vmem:[#allocation5 + $0x320] sm:$0xff]  ;;  %805 = vmatpush2.msra.mxu0 %v588_v22  ;;  %v671_v14 = vld [vmem:[#allocation5 + $0x5d8] sm:$0xff] }
  0xa5   : > { %v713_v25 = vld [vmem:[#allocation5 + $0x728] sm:$0xff]  ;;  %v712_v27 = vld [vmem:[#allocation5 + $0x720] sm:$0xff]  ;;  %1062 = vmatpush2.msra.mxu1 %v716_v23  ;;  %806 = vmatprep.subr.mxu0 %v585_v24  ;;  %v670_v16 = vld [vmem:[#allocation5 + $0x5d0] sm:$0xff] }
  0xa6   : > { %v581_v28 = vld [vmem:[#allocation5 + $0x308] sm:$0xff]  ;;  %1063 = vmatprep.subr.mxu1 %v713_v25  ;;  %v580_v30 = vld [vmem:[#allocation5 + $0x300] sm:$0xff]  ;;  %807 = vmatpush2.msra.mxu0 %v584_v26  ;;  %v4609_v18 = vld [vmem:[%s4571_s20 + $0x58] sm:$0xff] }
  0xa7   : > { %v709_v29 = vld [vmem:[#allocation5 + $0x708] sm:$0xff]  ;;  %v708_v31 = vld [vmem:[#allocation5 + $0x700] sm:$0xff]  ;;  %1064 = vmatpush2.msra.mxu1 %v712_v27  ;;  %808 = vmatprep.subr.mxu0 %v581_v28  ;;  %v539_v19 = vld [vmem:[#allocation5 + $0x1b8] sm:$0xff] }
  0xa8   : > { %v577_v32 = vld [vmem:[#allocation5 + $0x2e8] sm:$0xff]  ;;  %1065 = vmatprep.subr.mxu1 %v709_v29  ;;  %v576_v34 = vld [vmem:[#allocation5 + $0x2e0] sm:$0xff]  ;;  %809 = vmatpush2.msra.mxu0 %v580_v30  ;;  %v4613_v20 = vld [vmem:[%s4571_s20 + $0x50] sm:$0xff] }
  0xa9   : > { %v705_v33 = vld [vmem:[#allocation5 + $0x6e8] sm:$0xff]  ;;  %v704_v35 = vld [vmem:[#allocation5 + $0x6e0] sm:$0xff]  ;;  %1066 = vmatpush2.msra.mxu1 %v708_v31  ;;  %810 = vmatprep.subr.mxu0 %v577_v32  ;;  %v538_v21 = vld [vmem:[#allocation5 + $0x1b0] sm:$0xff] }
  0xaa   : > { %v573_v36 = vld [vmem:[#allocation5 + $0x2c8] sm:$0xff]  ;;  %1067 = vmatprep.subr.mxu1 %v705_v33  ;;  %v572_v38 = vld [vmem:[#allocation5 + $0x2c0] sm:$0xff]  ;;  %811 = vmatpush2.msra.mxu0 %v576_v34  ;;  %v667_v22 = vld [vmem:[#allocation5 + $0x5b8] sm:$0xff] }
  0xab   : > { %v701_v37 = vld [vmem:[#allocation5 + $0x6c8] sm:$0xff]  ;;  %v700_v39 = vld [vmem:[#allocation5 + $0x6c0] sm:$0xff]  ;;  %1068 = vmatpush2.msra.mxu1 %v704_v35  ;;  %812 = vmatprep.subr.mxu0 %v573_v36  ;;  %v666_v24 = vld [vmem:[#allocation5 + $0x5b0] sm:$0xff] }
  0xac   : > { %v569_v40 = vld [vmem:[#allocation5 + $0x2a8] sm:$0xff]  ;;  %1069 = vmatprep.subr.mxu1 %v701_v37  ;;  %v568_v42 = vld [vmem:[#allocation5 + $0x2a0] sm:$0xff]  ;;  %813 = vmatpush2.msra.mxu0 %v572_v38  ;;  %v4625_v26 = vld [vmem:[%s4571_s20 + $0x78] sm:$0xff] }
  0xad   : > { %v697_v41 = vld [vmem:[#allocation5 + $0x6a8] sm:$0xff]  ;;  %v696_v43 = vld [vmem:[#allocation5 + $0x6a0] sm:$0xff]  ;;  %1070 = vmatpush2.msra.mxu1 %v700_v39  ;;  %814 = vmatprep.subr.mxu0 %v569_v40  ;;  %v535_v27 = vld [vmem:[#allocation5 + $0x198] sm:$0xff] }
  0xae   : > { %v565_v44 = vld [vmem:[#allocation5 + $0x288] sm:$0xff]  ;;  %1071 = vmatprep.subr.mxu1 %v697_v41  ;;  %v564_v46 = vld [vmem:[#allocation5 + $0x280] sm:$0xff]  ;;  %815 = vmatpush2.msra.mxu0 %v568_v42  ;;  %v4629_v28 = vld [vmem:[%s4571_s20 + $0x70] sm:$0xff] }
  0xaf   : > { %v693_v45 = vld [vmem:[#allocation5 + $0x688] sm:$0xff]  ;;  %v692_v47 = vld [vmem:[#allocation5 + $0x680] sm:$0xff]  ;;  %1072 = vmatpush2.msra.mxu1 %v696_v43  ;;  %816 = vmatprep.subr.mxu0 %v565_v44  ;;  %v534_v29 = vld [vmem:[#allocation5 + $0x190] sm:$0xff] }
  0xb0   : > { %v561_v48 = vld [vmem:[#allocation5 + $0x268] sm:$0xff]  ;;  %1073 = vmatprep.subr.mxu1 %v693_v45  ;;  %v560_v50 = vld [vmem:[#allocation5 + $0x260] sm:$0xff]  ;;  %817 = vmatpush2.msra.mxu0 %v564_v46  ;;  %v663_v30 = vld [vmem:[#allocation5 + $0x598] sm:$0xff] }
  0xb1   : > { %v689_v49 = vld [vmem:[#allocation5 + $0x668] sm:$0xff]  ;;  %v688_v51 = vld [vmem:[#allocation5 + $0x660] sm:$0xff]  ;;  %1074 = vmatpush2.msra.mxu1 %v692_v47  ;;  %818 = vmatprep.subr.mxu0 %v561_v48  ;;  %v662_v32 = vld [vmem:[#allocation5 + $0x590] sm:$0xff] }
  0xb2   : > { %v557_v52 = vld [vmem:[#allocation5 + $0x248] sm:$0xff]  ;;  %1075 = vmatprep.subr.mxu1 %v689_v49  ;;  %v556_v54 = vld [vmem:[#allocation5 + $0x240] sm:$0xff]  ;;  %819 = vmatpush2.msra.mxu0 %v560_v50  ;;  %v4641_v34 = vld [vmem:[%s4571_s20 + $0x98] sm:$0xff] }
  0xb3   : > { %v685_v53 = vld [vmem:[#allocation5 + $0x648] sm:$0xff]  ;;  %v684_v55 = vld [vmem:[#allocation5 + $0x640] sm:$0xff]  ;;  %1076 = vmatpush2.msra.mxu1 %v688_v51  ;;  %820 = vmatprep.subr.mxu0 %v557_v52  ;;  %v531_v35 = vld [vmem:[#allocation5 + $0x178] sm:$0xff] }
  0xb4   : > { %v553_v56 = vld [vmem:[#allocation5 + $0x228] sm:$0xff]  ;;  %1077 = vmatprep.subr.mxu1 %v685_v53  ;;  %v552_v58 = vld [vmem:[#allocation5 + $0x220] sm:$0xff]  ;;  %821 = vmatpush2.msra.mxu0 %v556_v54  ;;  %v4645_v36 = vld [vmem:[%s4571_s20 + $0x90] sm:$0xff] }
  0xb5   : > { %v681_v57 = vld [vmem:[#allocation5 + $0x628] sm:$0xff]  ;;  %v680_v59 = vld [vmem:[#allocation5 + $0x620] sm:$0xff]  ;;  %1078 = vmatpush2.msra.mxu1 %v684_v55  ;;  %822 = vmatprep.subr.mxu0 %v553_v56  ;;  %v530_v37 = vld [vmem:[#allocation5 + $0x170] sm:$0xff] }
  0xb6   : > { %v549_v60 = vld [vmem:[#allocation5 + $0x208] sm:$0xff]  ;;  %1079 = vmatprep.subr.mxu1 %v681_v57  ;;  %v548_v62 = vld [vmem:[#allocation5 + $0x200] sm:$0xff]  ;;  %823 = vmatpush2.msra.mxu0 %v552_v58  ;;  %v659_v38 = vld [vmem:[#allocation5 + $0x578] sm:$0xff] }
  0xb7   : > { %v357_v61 = vld [vmem:[%s4571_s20 + $0x8] sm:$0xff]  ;;  %1080 = vmatpush2.msra.mxu1 %v680_v59  ;;  %v356_v0 = vld [vmem:[%s4571_s20] sm:$0xff]  ;;  %824 = vmatprep.subr.mxu0 %v549_v60  ;;  %v658_v40 = vld [vmem:[#allocation5 + $0x570] sm:$0xff] }
  0xb8   : > { %v677_v63 = vld [vmem:[#allocation5 + $0x608] sm:$0xff]  ;;  %v676_v1 = vld [vmem:[#allocation5 + $0x600] sm:$0xff]  ;;  %826 = vmatprep.mubr.f32.mxu0 %v357_v61  ;;  %825 = vmatpush2.msra.mxu0 %v548_v62  ;;  %v4657_v42 = vld [vmem:[%s4571_s20 + $0xb8] sm:$0xff] }
  0xb9   : > { %1081 = vmatprep.subr.mxu1 %v677_v63  ;;  %827 = vmatmul.mubr.f32.vlgmr.msra.gmra.mxu0 %v356_v0  ;;  %v4590_v7 = vld [vmem:[%s4571_s20 + $0x28] sm:$0xff]  ;;  %v360_v9 = vld [vmem:[%s4571_s20 + $0x20] sm:$0xff]  ;;  %v527_v43 = vld [vmem:[#allocation5 + $0x158] sm:$0xff] }
  0xba   : > { %1082 = vmatpush2.msra.mxu1 %v676_v1  ;;  %1083 = vmatprep.mubr.f32.mxu1 %v359_v2  ;;  %v4601_v15 = vld [vmem:[%s4571_s20 + $0x48] sm:$0xff]  ;;  %v4605_v17 = vld [vmem:[%s4571_s20 + $0x40] sm:$0xff]  ;;  %v4661_v44 = vld [vmem:[%s4571_s20 + $0xb0] sm:$0xff] }
  0xbb   : > { %1276 = vmatprep.subr.mxu0 %v547_v3  ;;  %1084 = vmatmul.mubr.f32.vlgmr.msra.gmra.mxu1 %v358_v4  ;;  %v4617_v23 = vld [vmem:[%s4571_s20 + $0x68] sm:$0xff]  ;;  %v4621_v25 = vld [vmem:[%s4571_s20 + $0x60] sm:$0xff]  ;;  %v526_v45 = vld [vmem:[#allocation5 + $0x150] sm:$0xff] }
  0xbc   : > { %1277 = vmatpush1.msra.mxu0 %v546_v5  ;;  %1533 = vmatprep.subr.mxu1 %v675_v6  ;;  %v4633_v31 = vld [vmem:[%s4571_s20 + $0x88] sm:$0xff]  ;;  %v4637_v33 = vld [vmem:[%s4571_s20 + $0x80] sm:$0xff]  ;;  %v655_v46 = vld [vmem:[#allocation5 + $0x558] sm:$0xff] }
  0xbd   : > { %832 = vmatprep.mubr.f32.mxu0 %v4590_v7  ;;  %1534 = vmatpush1.msra.mxu1 %v674_v8  ;;  %v4649_v39 = vld [vmem:[%s4571_s20 + $0xa8] sm:$0xff]  ;;  %v4653_v41 = vld [vmem:[%s4571_s20 + $0xa0] sm:$0xff]  ;;  %v654_v48 = vld [vmem:[#allocation5 + $0x550] sm:$0xff] }
  0xbe   : > { %833 = vmatmul.mubr.f32.gmra.mxu0 %v360_v9  ;;  %1089 = vmatprep.mubr.f32.mxu1 %v4594_v10  ;;  %v4665_v47 = vld [vmem:[%s4571_s20 + $0xc8] sm:$0xff]  ;;  %v4669_v49 = vld [vmem:[%s4571_s20 + $0xc0] sm:$0xff]  ;;  %v4673_v50 = vld [vmem:[%s4571_s20 + $0xd8] sm:$0xff] }
  0xbf   : > { %1278 = vmatprep.subr.mxu0 %v543_v11  ;;  %1090 = vmatmul.mubr.f32.gmra.mxu1 %v4598_v12  ;;  %v523_v51 = vld [vmem:[#allocation5 + $0x138] sm:$0xff]  ;;  %v4677_v52 = vld [vmem:[%s4571_s20 + $0xd0] sm:$0xff]  ;;  %v4681_v55 = vld [vmem:[%s4571_s20 + $0xe8] sm:$0xff] }
  0xc0   : > { %1279 = vmatpush1.msra.mxu0 %v542_v13  ;;  %1535 = vmatprep.subr.mxu1 %v671_v14  ;;  %v522_v53 = vld [vmem:[#allocation5 + $0x130] sm:$0xff]  ;;  %v651_v54 = vld [vmem:[#allocation5 + $0x538] sm:$0xff]  ;;  %v4685_v57 = vld [vmem:[%s4571_s20 + $0xe0] sm:$0xff] }
  0xc1   : > { %838 = vmatprep.mubr.f32.mxu0 %v4601_v15  ;;  %1536 = vmatpush1.msra.mxu1 %v670_v16  ;;  %v650_v56 = vld [vmem:[#allocation5 + $0x530] sm:$0xff]  ;;  %v4689_v58 = vld [vmem:[%s4571_s20 + $0xf8] sm:$0xff]  ;;  %v4697_v63 = vld [vmem:[%s4571_s20 + $0x108] sm:$0xff] }
  0xc2   : > { %839 = vmatmul.mubr.f32.gmra.mxu0 %v4605_v17  ;;  %1095 = vmatprep.mubr.f32.mxu1 %v4609_v18  ;;  %v519_v59 = vld [vmem:[#allocation5 + $0x118] sm:$0xff]  ;;  %v4693_v60 = vld [vmem:[%s4571_s20 + $0xf0] sm:$0xff]  ;;  %v4701_v1 = vld [vmem:[%s4571_s20 + $0x100] sm:$0xff] }
  0xc3   : > { %1280 = vmatprep.subr.mxu0 %v539_v19  ;;  %1096 = vmatmul.mubr.f32.gmra.mxu1 %v4613_v20  ;;  %v518_v61 = vld [vmem:[#allocation5 + $0x110] sm:$0xff]  ;;  %v647_v62 = vld [vmem:[#allocation5 + $0x518] sm:$0xff]  ;;  %v4713_v8 = vld [vmem:[%s4571_s20 + $0x128] sm:$0xff] }
  0xc4   : > { %1281 = vmatpush1.msra.mxu0 %v538_v21  ;;  %1537 = vmatprep.subr.mxu1 %v667_v22  ;;  %v646_v0 = vld [vmem:[#allocation5 + $0x510] sm:$0xff]  ;;  %v4705_v2 = vld [vmem:[%s4571_s20 + $0x118] sm:$0xff]  ;;  %v4717_v11 = vld [vmem:[%s4571_s20 + $0x120] sm:$0xff] }
  0xc5   : > { %844 = vmatprep.mubr.f32.mxu0 %v4617_v23  ;;  %1538 = vmatpush1.msra.mxu1 %v666_v24  ;;  %v515_v3 = vld [vmem:[#allocation5 + $0xf8] sm:$0xff]  ;;  %v4709_v4 = vld [vmem:[%s4571_s20 + $0x110] sm:$0xff]  ;;  %v4729_v22 = vld [vmem:[%s4571_s20 + $0x148] sm:$0xff] }
  0xc6   : > { %845 = vmatmul.mubr.f32.gmra.mxu0 %v4621_v25  ;;  %1101 = vmatprep.mubr.f32.mxu1 %v4625_v26  ;;  %v514_v5 = vld [vmem:[#allocation5 + $0xf0] sm:$0xff]  ;;  %v643_v6 = vld [vmem:[#allocation5 + $0x4f8] sm:$0xff] }
  0xc7   : > { %1282 = vmatprep.subr.mxu0 %v535_v27  ;;  %1102 = vmatmul.mubr.f32.gmra.mxu1 %v4629_v28  ;;  %v642_v9 = vld [vmem:[#allocation5 + $0x4f0] sm:$0xff]  ;;  %v4721_v13 = vld [vmem:[%s4571_s20 + $0x138] sm:$0xff]  ;;  %v4733_v27 = vld [vmem:[%s4571_s20 + $0x140] sm:$0xff] }
  0xc8   : > { %1283 = vmatpush1.msra.mxu0 %v534_v29  ;;  %1539 = vmatprep.subr.mxu1 %v663_v30  ;;  %v511_v14 = vld [vmem:[#allocation5 + $0xd8] sm:$0xff]  ;;  %v4725_v16 = vld [vmem:[%s4571_s20 + $0x130] sm:$0xff] }
  0xc9   : > { %850 = vmatprep.mubr.f32.mxu0 %v4633_v31  ;;  %1540 = vmatpush1.msra.mxu1 %v662_v32  ;;  %v510_v19 = vld [vmem:[#allocation5 + $0xd0] sm:$0xff]  ;;  %v639_v21 = vld [vmem:[#allocation5 + $0x4d8] sm:$0xff] }
  0xca   : > { %851 = vmatmul.mubr.f32.gmra.mxu0 %v4637_v33  ;;  %1107 = vmatprep.mubr.f32.mxu1 %v4641_v34  ;;  %v638_v24 = vld [vmem:[#allocation5 + $0x4d0] sm:$0xff]  ;;  %v4737_v29 = vld [vmem:[%s4571_s20 + $0x158] sm:$0xff] }
  0xcb   : > { %1284 = vmatprep.subr.mxu0 %v531_v35  ;;  %1108 = vmatmul.mubr.f32.gmra.mxu1 %v4645_v36  ;;  %v507_v30 = vld [vmem:[#allocation5 + $0xb8] sm:$0xff]  ;;  %v4741_v32 = vld [vmem:[%s4571_s20 + $0x150] sm:$0xff] }
  0xcc   : > { %1285 = vmatpush1.msra.mxu0 %v530_v37  ;;  %1541 = vmatprep.subr.mxu1 %v659_v38  ;;  %v506_v35 = vld [vmem:[#allocation5 + $0xb0] sm:$0xff]  ;;  %v635_v37 = vld [vmem:[#allocation5 + $0x4b8] sm:$0xff]  ;;  %v4745_v38 = vld [vmem:[%s4571_s20 + $0x168] sm:$0xff] }
  0xcd   : > { %856 = vmatprep.mubr.f32.mxu0 %v4649_v39  ;;  %1542 = vmatpush1.msra.mxu1 %v658_v40  ;;  %v634_v40 = vld [vmem:[#allocation5 + $0x4b0] sm:$0xff] }
  0xce   : > { %857 = vmatmul.mubr.f32.gmra.mxu0 %v4653_v41  ;;  %1113 = vmatprep.mubr.f32.mxu1 %v4657_v42 }
  0xcf   : > { %1286 = vmatprep.subr.mxu0 %v527_v43  ;;  %1114 = vmatmul.mubr.f32.gmra.mxu1 %v4661_v44  ;;  %v4749_v43 = vld [vmem:[%s4571_s20 + $0x160] sm:$0xff] }
  0xd0   : > { %1287 = vmatpush1.msra.mxu0 %v526_v45  ;;  %1543 = vmatprep.subr.mxu1 %v655_v46  ;;  %v4753_v45 = vld [vmem:[%s4571_s20 + $0x178] sm:$0xff] }
  0xd1   : > { %862 = vmatprep.mubr.f32.mxu0 %v4665_v47  ;;  %1544 = vmatpush1.msra.mxu1 %v654_v48  ;;  %v503_v46 = vld [vmem:[#allocation5 + $0x98] sm:$0xff]  ;;  %v4757_v48 = vld [vmem:[%s4571_s20 + $0x170] sm:$0xff] }
  0xd2   : > { %863 = vmatmul.mubr.f32.gmra.mxu0 %v4669_v49  ;;  %1119 = vmatprep.mubr.f32.mxu1 %v4673_v50 }
  0xd3   : > { %1288 = vmatprep.subr.mxu0 %v523_v51  ;;  %1120 = vmatmul.mubr.f32.gmra.mxu1 %v4677_v52  ;;  %v502_v51 = vld [vmem:[#allocation5 + $0x90] sm:$0xff] }
  0xd4   : > { %1289 = vmatpush1.msra.mxu0 %v522_v53  ;;  %1545 = vmatprep.subr.mxu1 %v651_v54  ;;  %v631_v53 = vld [vmem:[#allocation5 + $0x498] sm:$0xff]  ;;  %v4761_v54 = vld [vmem:[%s4571_s20 + $0x188] sm:$0xff] }
  0xd5   : > { %868 = vmatprep.mubr.f32.mxu0 %v4681_v55  ;;  %1546 = vmatpush1.msra.mxu1 %v650_v56  ;;  %v630_v56 = vld [vmem:[#allocation5 + $0x490] sm:$0xff] }
  0xd6   : > { %869 = vmatmul.mubr.f32.gmra.mxu0 %v4685_v57  ;;  %1125 = vmatprep.mubr.f32.mxu1 %v4689_v58 }
  0xd7   : > { %1290 = vmatprep.subr.mxu0 %v519_v59  ;;  %1126 = vmatmul.mubr.f32.gmra.mxu1 %v4693_v60  ;;  %v4765_v59 = vld [vmem:[%s4571_s20 + $0x180] sm:$0xff] }
  0xd8   : > { %1291 = vmatpush1.msra.mxu0 %v518_v61  ;;  %1547 = vmatprep.subr.mxu1 %v647_v62  ;;  %v4769_v61 = vld [vmem:[%s4571_s20 + $0x198] sm:$0xff] }
  0xd9   : > { %874 = vmatprep.mubr.f32.mxu0 %v4697_v63  ;;  %1548 = vmatpush1.msra.mxu1 %v646_v0  ;;  %v499_v62 = vld [vmem:[#allocation5 + $0x78] sm:$0xff]  ;;  %v4773_v0 = vld [vmem:[%s4571_s20 + $0x190] sm:$0xff] }
  0xda   : > { %875 = vmatmul.mubr.f32.gmra.mxu0 %v4701_v1  ;;  %1131 = vmatprep.mubr.f32.mxu1 %v4705_v2 }
  0xdb   : > { %1292 = vmatprep.subr.mxu0 %v515_v3  ;;  %1132 = vmatmul.mubr.f32.gmra.mxu1 %v4709_v4  ;;  %v498_v3 = vld [vmem:[#allocation5 + $0x70] sm:$0xff] }
  0xdc   : > { %1293 = vmatpush1.msra.mxu0 %v514_v5  ;;  %1549 = vmatprep.subr.mxu1 %v643_v6  ;;  %v627_v5 = vld [vmem:[#allocation5 + $0x478] sm:$0xff]  ;;  %v4777_v6 = vld [vmem:[%s4571_s20 + $0x1a8] sm:$0xff] }
  0xdd   : > { %880 = vmatprep.mubr.f32.mxu0 %v4713_v8  ;;  %1550 = vmatpush1.msra.mxu1 %v642_v9  ;;  %v626_v9 = vld [vmem:[#allocation5 + $0x470] sm:$0xff] }
  0xde   : > { %881 = vmatmul.mubr.f32.gmra.mxu0 %v4717_v11  ;;  %1137 = vmatprep.mubr.f32.mxu1 %v4721_v13 }
  0xdf   : > { %1294 = vmatprep.subr.mxu0 %v511_v14  ;;  %1138 = vmatmul.mubr.f32.gmra.mxu1 %v4725_v16  ;;  %v4781_v14 = vld [vmem:[%s4571_s20 + $0x1a0] sm:$0xff] }
  0xe0   : > { %1295 = vmatpush1.msra.mxu0 %v510_v19  ;;  %1551 = vmatprep.subr.mxu1 %v639_v21  ;;  %v4785_v19 = vld [vmem:[%s4571_s20 + $0x1b8] sm:$0xff] }
  0xe1   : > { %886 = vmatprep.mubr.f32.mxu0 %v4729_v22  ;;  %1552 = vmatpush1.msra.mxu1 %v638_v24  ;;  %v495_v21 = vld [vmem:[#allocation5 + $0x58] sm:$0xff]  ;;  %v4789_v24 = vld [vmem:[%s4571_s20 + $0x1b0] sm:$0xff] }
  0xe2   : > { %887 = vmatmul.mubr.f32.gmra.mxu0 %v4733_v27  ;;  %1143 = vmatprep.mubr.f32.mxu1 %v4737_v29 }
  0xe3   : > { %1296 = vmatprep.subr.mxu0 %v507_v30  ;;  %1144 = vmatmul.mubr.f32.gmra.mxu1 %v4741_v32  ;;  %v494_v30 = vld [vmem:[#allocation5 + $0x50] sm:$0xff] }
  0xe4   : > { %1297 = vmatpush1.msra.mxu0 %v506_v35  ;;  %1553 = vmatprep.subr.mxu1 %v635_v37  ;;  %v623_v35 = vld [vmem:[#allocation5 + $0x458] sm:$0xff]  ;;  %v4793_v37 = vld [vmem:[%s4571_s20 + $0x1c8] sm:$0xff] }
  0xe5   : > { %892 = vmatprep.mubr.f32.mxu0 %v4745_v38  ;;  %1554 = vmatpush1.msra.mxu1 %v634_v40  ;;  %v622_v40 = vld [vmem:[#allocation5 + $0x450] sm:$0xff] }
  0xe6   : > { %893 = vmatmul.mubr.f32.gmra.mxu0 %v4749_v43  ;;  %1149 = vmatprep.mubr.f32.mxu1 %v4753_v45 }
  0xe7   : > { %1298 = vmatprep.subr.mxu0 %v503_v46  ;;  %1150 = vmatmul.mubr.f32.gmra.mxu1 %v4757_v48  ;;  %v4797_v46 = vld [vmem:[%s4571_s20 + $0x1c0] sm:$0xff] }
  0xe8   : > { %1299 = vmatpush1.msra.mxu0 %v502_v51  ;;  %1555 = vmatprep.subr.mxu1 %v631_v53  ;;  %7715 = vst [vmem:[#allocation16_spill] sm:$0xff] %v4797_v46  ;;  %v4801_v51 = vld [vmem:[%s4571_s20 + $0x1d8] sm:$0xff] }
  0xe9   : > { %898 = vmatprep.mubr.f32.mxu0 %v4761_v54  ;;  %1556 = vmatpush1.msra.mxu1 %v630_v56  ;;  %7716 = vst [vmem:[#allocation17_spill] sm:$0xff] %v4801_v51  ;;  %v491_v53 = vld [vmem:[#allocation5 + $0x38] sm:$0xff]  ;;  %v4805_v56 = vld [vmem:[%s4571_s20 + $0x1d0] sm:$0xff] }
  0xea   : > { %899 = vmatmul.mubr.f32.gmra.mxu0 %v4765_v59  ;;  %1155 = vmatprep.mubr.f32.mxu1 %v4769_v61  ;;  %7717 = vst [vmem:[#allocation18_spill] sm:$0xff] %v4805_v56 }
  0xeb   : > { %1300 = vmatprep.subr.mxu0 %v499_v62  ;;  %1156 = vmatmul.mubr.f32.gmra.mxu1 %v4773_v0  ;;  %v490_v62 = vld [vmem:[#allocation5 + $0x30] sm:$0xff] }
  0xec   : > { %1301 = vmatpush1.msra.mxu0 %v498_v3  ;;  %1557 = vmatprep.subr.mxu1 %v627_v5  ;;  %v619_v3 = vld [vmem:[#allocation5 + $0x438] sm:$0xff]  ;;  %v4809_v5 = vld [vmem:[%s4571_s20 + $0x1e8] sm:$0xff] }
  0xed   : > { %904 = vmatprep.mubr.f32.mxu0 %v4777_v6  ;;  %1558 = vmatpush1.msra.mxu1 %v626_v9  ;;  %7718 = vst [vmem:[#allocation19_spill] sm:$0xff] %v4809_v5  ;;  %v618_v9 = vld [vmem:[#allocation5 + $0x430] sm:$0xff] }
  0xee   : > { %905 = vmatmul.mubr.f32.gmra.mxu0 %v4781_v14  ;;  %1161 = vmatprep.mubr.f32.mxu1 %v4785_v19 }
  0xef   : > { %1302 = vmatprep.subr.mxu0 %v495_v21  ;;  %1162 = vmatmul.mubr.f32.gmra.mxu1 %v4789_v24  ;;  %v4813_v21 = vld [vmem:[%s4571_s20 + $0x1e0] sm:$0xff] }
  0xf0   : > { %1303 = vmatpush1.msra.mxu0 %v494_v30  ;;  %1559 = vmatprep.subr.mxu1 %v623_v35  ;;  %7719 = vst [vmem:[#allocation20_spill] sm:$0xff] %v4813_v21  ;;  %v4817_v30 = vld [vmem:[%s4571_s20 + $0x1f8] sm:$0xff] }
  0xf1   : > { %910 = vmatprep.mubr.f32.mxu0 %v4793_v37  ;;  %1560 = vmatpush1.msra.mxu1 %v622_v40  ;;  %7720 = vst [vmem:[#allocation21_spill] sm:$0xff] %v4817_v30  ;;  %v487_v35 = vld [vmem:[#allocation5 + $0x18] sm:$0xff]  ;;  %v4821_v40 = vld [vmem:[%s4571_s20 + $0x1f0] sm:$0xff] }
  0xf2   : > { %911 = vmatmul.mubr.f32.gmra.mxu0 %v4797_v46  ;;  %1167 = vmatprep.mubr.f32.mxu1 %v4801_v51  ;;  %7721 = vst [vmem:[#allocation22_spill] sm:$0xff] %v4821_v40  ;;  %v486_v46 = vld [vmem:[#allocation5 + $0x10] sm:$0xff]  ;;  %v4825_v51 = vld [vmem:[%s4571_s20 + $0x208] sm:$0xff] }
  0xf3   : > { %1304 = vmatprep.subr.mxu0 %v491_v53  ;;  %1168 = vmatmul.mubr.f32.gmra.mxu1 %v4805_v56  ;;  %v615_v53 = vld [vmem:[#allocation5 + $0x418] sm:$0xff]  ;;  %7722 = vst [vmem:[#allocation23_spill] sm:$0xff] %v4825_v51  ;;  %v4829_v56 = vld [vmem:[%s4571_s20 + $0x200] sm:$0xff] }
  0xf4   : > { %1305 = vmatpush1.msra.mxu0 %v490_v62  ;;  %1561 = vmatprep.subr.mxu1 %v619_v3  ;;  %v614_v62 = vld [vmem:[#allocation5 + $0x410] sm:$0xff]  ;;  %7723 = vst [vmem:[#allocation24_spill] sm:$0xff] %v4829_v56  ;;  %v4833_v3 = vld [vmem:[%s4571_s20 + $0x218] sm:$0xff] }
  0xf5   : > { %916 = vmatprep.mubr.f32.mxu0 %v4809_v5  ;;  %1562 = vmatpush1.msra.mxu1 %v618_v9  ;;  %7724 = vst [vmem:[#allocation25_spill] sm:$0xff] %v4833_v3  ;;  %v611_v9 = vld [vmem:[#allocation5 + $0x3f8] sm:$0xff]  ;;  %v610_v5 = vld [vmem:[#allocation5 + $0x3f0] sm:$0xff] }
  0xf6   : > { %917 = vmatmul.mubr.f32.gmra.mxu0 %v4813_v21  ;;  %1173 = vmatprep.mubr.f32.mxu1 %v4817_v30  ;;  %v4837_v21 = vld [vmem:[%s4571_s20 + $0x210] sm:$0xff]  ;;  %v4841_v30 = vld [vmem:[%s4571_s20 + $0x228] sm:$0xff] }
  0xf7   : > { %1306 = vmatprep.subr.mxu0 %v487_v35  ;;  %1174 = vmatmul.mubr.f32.gmra.mxu1 %v4821_v40  ;;  %7725 = vst [vmem:[#allocation26_spill] sm:$0xff] %v4837_v21  ;;  %v739_v35 = vld [vmem:[#allocation5 + $0x7f8] sm:$0xff]  ;;  %7726 = vst [vmem:[#allocation27_spill] sm:$0xff] %v4841_v30  ;;  %v4845_v40 = vld [vmem:[%s4571_s20 + $0x220] sm:$0xff] }
  0xf8   : > { %1307 = vmatpush1.msra.mxu0 %v486_v46  ;;  %1563 = vmatprep.subr.mxu1 %v615_v53  ;;  %v738_v46 = vld [vmem:[#allocation5 + $0x7f0] sm:$0xff]  ;;  %7727 = vst [vmem:[#allocation28_spill] sm:$0xff] %v4845_v40  ;;  %v4849_v53 = vld [vmem:[%s4571_s20 + $0x238] sm:$0xff] }
  0xf9   : > { %922 = vmatprep.mubr.f32.mxu0 %v4825_v51  ;;  %1564 = vmatpush1.msra.mxu1 %v614_v62  ;;  %7728 = vst [vmem:[#allocation29_spill] sm:$0xff] %v4849_v53  ;;  %v607_v62 = vld [vmem:[#allocation5 + $0x3d8] sm:$0xff]  ;;  %v606_v51 = vld [vmem:[#allocation5 + $0x3d0] sm:$0xff] }
  0xfa   : > { %923 = vmatmul.mubr.f32.gmra.mxu0 %v4829_v56  ;;  %1179 = vmatprep.mubr.f32.mxu1 %v4833_v3  ;;  %v4853_v56 = vld [vmem:[%s4571_s20 + $0x230] sm:$0xff]  ;;  %v4857_v3 = vld [vmem:[%s4571_s20 + $0x248] sm:$0xff] }
  0xfb   : > { %1308 = vmatprep.subr.mxu0 %v611_v9  ;;  %1180 = vmatmul.mubr.f32.gmra.mxu1 %v4837_v21  ;;  %7729 = vst [vmem:[#allocation30_spill] sm:$0xff] %v4853_v56  ;;  %v735_v9 = vld [vmem:[#allocation5 + $0x7d8] sm:$0xff]  ;;  %7730 = vst [vmem:[#allocation31_spill] sm:$0xff] %v4857_v3  ;;  %v4861_v21 = vld [vmem:[%s4571_s20 + $0x240] sm:$0xff] }
  0xfc   : > { %1309 = vmatpush2.msra.mxu0 %v610_v5  ;;  %1565 = vmatprep.subr.mxu1 %v739_v35  ;;  %v734_v5 = vld [vmem:[#allocation5 + $0x7d0] sm:$0xff]  ;;  %7731 = vst [vmem:[#allocation32_spill] sm:$0xff] %v4861_v21  ;;  %v4865_v35 = vld [vmem:[%s4571_s20 + $0x258] sm:$0xff] }
  0xfd   : > { %928 = vmatprep.mubr.f32.mxu0 %v4841_v30  ;;  %1566 = vmatpush2.msra.mxu1 %v738_v46  ;;  %7732 = vst [vmem:[#allocation33_spill] sm:$0xff] %v4865_v35  ;;  %v603_v46 = vld [vmem:[#allocation5 + $0x3b8] sm:$0xff]  ;;  %v602_v30 = vld [vmem:[#allocation5 + $0x3b0] sm:$0xff] }
  0xfe   : > { %929 = vmatmul.mubr.f32.gmra.mxu0 %v4845_v40  ;;  %1185 = vmatprep.mubr.f32.mxu1 %v4849_v53  ;;  %v4869_v40 = vld [vmem:[%s4571_s20 + $0x250] sm:$0xff]  ;;  %v4873_v53 = vld [vmem:[%s4571_s20 + $0x268] sm:$0xff] }
  0xff   : > { %1310 = vmatprep.subr.mxu0 %v607_v62  ;;  %1186 = vmatmul.mubr.f32.gmra.mxu1 %v4853_v56  ;;  %7733 = vst [vmem:[#allocation34_spill] sm:$0xff] %v4869_v40  ;;  %v731_v62 = vld [vmem:[#allocation5 + $0x7b8] sm:$0xff]  ;;  %7734 = vst [vmem:[#allocation35_spill] sm:$0xff] %v4873_v53  ;;  %v4877_v56 = vld [vmem:[%s4571_s20 + $0x260] sm:$0xff] }
 0x100   : > { %1311 = vmatpush2.msra.mxu0 %v606_v51  ;;  %1567 = vmatprep.subr.mxu1 %v735_v9  ;;  %v730_v51 = vld [vmem:[#allocation5 + $0x7b0] sm:$0xff]  ;;  %7735 = vst [vmem:[#allocation36_spill] sm:$0xff] %v4877_v56  ;;  %v4881_v9 = vld [vmem:[%s4571_s20 + $0x278] sm:$0xff] }
 0x101   : > { %934 = vmatprep.mubr.f32.mxu0 %v4857_v3  ;;  %1568 = vmatpush2.msra.mxu1 %v734_v5  ;;  %7736 = vst [vmem:[#allocation37_spill] sm:$0xff] %v4881_v9  ;;  %v599_v5 = vld [vmem:[#allocation5 + $0x398] sm:$0xff]  ;;  %v598_v3 = vld [vmem:[#allocation5 + $0x390] sm:$0xff] }
 0x102   : > { %935 = vmatmul.mubr.f32.gmra.mxu0 %v4861_v21  ;;  %1191 = vmatprep.mubr.f32.mxu1 %v4865_v35  ;;  %v4885_v21 = vld [vmem:[%s4571_s20 + $0x270] sm:$0xff]  ;;  %v4889_v35 = vld [vmem:[%s4571_s20 + $0x288] sm:$0xff] }
 0x103   : > { %1312 = vmatprep.subr.mxu0 %v603_v46  ;;  %1192 = vmatmul.mubr.f32.gmra.mxu1 %v4869_v40  ;;  %7737 = vst [vmem:[#allocation38_spill] sm:$0xff] %v4885_v21  ;;  %v727_v46 = vld [vmem:[#allocation5 + $0x798] sm:$0xff]  ;;  %7738 = vst [vmem:[#allocation39_spill] sm:$0xff] %v4889_v35  ;;  %v4893_v40 = vld [vmem:[%s4571_s20 + $0x280] sm:$0xff] }
 0x104   : > { %1313 = vmatpush2.msra.mxu0 %v602_v30  ;;  %1569 = vmatprep.subr.mxu1 %v731_v62  ;;  %v726_v30 = vld [vmem:[#allocation5 + $0x790] sm:$0xff]  ;;  %7739 = vst [vmem:[#allocation40_spill] sm:$0xff] %v4893_v40  ;;  %v4897_v62 = vld [vmem:[%s4571_s20 + $0x298] sm:$0xff] }
 0x105   : > { %940 = vmatprep.mubr.f32.mxu0 %v4873_v53  ;;  %1570 = vmatpush2.msra.mxu1 %v730_v51  ;;  %7740 = vst [vmem:[#allocation41_spill] sm:$0xff] %v4897_v62  ;;  %v595_v51 = vld [vmem:[#allocation5 + $0x378] sm:$0xff]  ;;  %v594_v53 = vld [vmem:[#allocation5 + $0x370] sm:$0xff] }
 0x106   : > { %941 = vmatmul.mubr.f32.gmra.mxu0 %v4877_v56  ;;  %1197 = vmatprep.mubr.f32.mxu1 %v4881_v9  ;;  %v4901_v56 = vld [vmem:[%s4571_s20 + $0x290] sm:$0xff]  ;;  %v4905_v9 = vld [vmem:[%s4571_s20 + $0x2a8] sm:$0xff] }
 0x107   : > { %1314 = vmatprep.subr.mxu0 %v599_v5  ;;  %1198 = vmatmul.mubr.f32.gmra.mxu1 %v4885_v21  ;;  %7741 = vst [vmem:[#allocation42_spill] sm:$0xff] %v4901_v56  ;;  %v723_v5 = vld [vmem:[#allocation5 + $0x778] sm:$0xff]  ;;  %7742 = vst [vmem:[#allocation43_spill] sm:$0xff] %v4905_v9  ;;  %v4909_v21 = vld [vmem:[%s4571_s20 + $0x2a0] sm:$0xff] }
 0x108   : > { %1315 = vmatpush2.msra.mxu0 %v598_v3  ;;  %1571 = vmatprep.subr.mxu1 %v727_v46  ;;  %v722_v3 = vld [vmem:[#allocation5 + $0x770] sm:$0xff]  ;;  %7743 = vst [vmem:[#allocation44_spill] sm:$0xff] %v4909_v21  ;;  %v4913_v46 = vld [vmem:[%s4571_s20 + $0x2b8] sm:$0xff] }
 0x109   : > { %946 = vmatprep.mubr.f32.mxu0 %v4889_v35  ;;  %1572 = vmatpush2.msra.mxu1 %v726_v30  ;;  %7744 = vst [vmem:[#allocation45_spill] sm:$0xff] %v4913_v46  ;;  %v591_v30 = vld [vmem:[#allocation5 + $0x358] sm:$0xff]  ;;  %v590_v35 = vld [vmem:[#allocation5 + $0x350] sm:$0xff] }
 0x10a   : > { %947 = vmatmul.mubr.f32.gmra.mxu0 %v4893_v40  ;;  %1203 = vmatprep.mubr.f32.mxu1 %v4897_v62  ;;  %v4917_v40 = vld [vmem:[%s4571_s20 + $0x2b0] sm:$0xff]  ;;  %v4921_v62 = vld [vmem:[%s4571_s20 + $0x2c8] sm:$0xff] }
 0x10b   : > { %1316 = vmatprep.subr.mxu0 %v595_v51  ;;  %1204 = vmatmul.mubr.f32.gmra.mxu1 %v4901_v56  ;;  %7745 = vst [vmem:[#allocation46_spill] sm:$0xff] %v4917_v40  ;;  %v719_v51 = vld [vmem:[#allocation5 + $0x758] sm:$0xff]  ;;  %7746 = vst [vmem:[#allocation47_spill] sm:$0xff] %v4921_v62  ;;  %v4925_v56 = vld [vmem:[%s4571_s20 + $0x2c0] sm:$0xff] }
 0x10c   : > { %1317 = vmatpush2.msra.mxu0 %v594_v53  ;;  %1573 = vmatprep.subr.mxu1 %v723_v5  ;;  %v718_v53 = vld [vmem:[#allocation5 + $0x750] sm:$0xff]  ;;  %7747 = vst [vmem:[#allocation48_spill] sm:$0xff] %v4925_v56  ;;  %v4929_v5 = vld [vmem:[%s4571_s20 + $0x2d8] sm:$0xff] }
 0x10d   : > { %952 = vmatprep.mubr.f32.mxu0 %v4905_v9  ;;  %1574 = vmatpush2.msra.mxu1 %v722_v3  ;;  %7748 = vst [vmem:[#allocation49_spill] sm:$0xff] %v4929_v5  ;;  %v587_v3 = vld [vmem:[#allocation5 + $0x338] sm:$0xff]  ;;  %v586_v9 = vld [vmem:[#allocation5 + $0x330] sm:$0xff] }
 0x10e   : > { %953 = vmatmul.mubr.f32.gmra.mxu0 %v4909_v21  ;;  %1209 = vmatprep.mubr.f32.mxu1 %v4913_v46  ;;  %v4933_v21 = vld [vmem:[%s4571_s20 + $0x2d0] sm:$0xff]  ;;  %v4937_v46 = vld [vmem:[%s4571_s20 + $0x2e8] sm:$0xff] }
 0x10f   : > { %1318 = vmatprep.subr.mxu0 %v591_v30  ;;  %1210 = vmatmul.mubr.f32.gmra.mxu1 %v4917_v40  ;;  %7749 = vst [vmem:[#allocation50_spill] sm:$0xff] %v4933_v21  ;;  %v715_v30 = vld [vmem:[#allocation5 + $0x738] sm:$0xff]  ;;  %7750 = vst [vmem:[#allocation51_spill] sm:$0xff] %v4937_v46  ;;  %v4941_v40 = vld [vmem:[%s4571_s20 + $0x2e0] sm:$0xff] }
 0x110   : > { %1319 = vmatpush2.msra.mxu0 %v590_v35  ;;  %1575 = vmatprep.subr.mxu1 %v719_v51  ;;  %v714_v35 = vld [vmem:[#allocation5 + $0x730] sm:$0xff]  ;;  %7751 = vst [vmem:[#allocation52_spill] sm:$0xff] %v4941_v40  ;;  %v4945_v51 = vld [vmem:[%s4571_s20 + $0x2f8] sm:$0xff] }
 0x111   : > { %958 = vmatprep.mubr.f32.mxu0 %v4921_v62  ;;  %1576 = vmatpush2.msra.mxu1 %v718_v53  ;;  %7752 = vst [vmem:[#allocation53_spill] sm:$0xff] %v4945_v51  ;;  %v583_v53 = vld [vmem:[#allocation5 + $0x318] sm:$0xff]  ;;  %v582_v62 = vld [vmem:[#allocation5 + $0x310] sm:$0xff] }
 0x112   : > { %959 = vmatmul.mubr.f32.gmra.mxu0 %v4925_v56  ;;  %1215 = vmatprep.mubr.f32.mxu1 %v4929_v5  ;;  %v4949_v56 = vld [vmem:[%s4571_s20 + $0x2f0] sm:$0xff]  ;;  %v4953_v5 = vld [vmem:[%s4571_s20 + $0x308] sm:$0xff] }
 0x113   : > { %1320 = vmatprep.subr.mxu0 %v587_v3  ;;  %1216 = vmatmul.mubr.f32.gmra.mxu1 %v4933_v21  ;;  %7753 = vst [vmem:[#allocation54_spill] sm:$0xff] %v4949_v56  ;;  %v711_v3 = vld [vmem:[#allocation5 + $0x718] sm:$0xff]  ;;  %7754 = vst [vmem:[#allocation55_spill] sm:$0xff] %v4953_v5  ;;  %v4957_v21 = vld [vmem:[%s4571_s20 + $0x300] sm:$0xff] }
 0x114   : > { %1321 = vmatpush2.msra.mxu0 %v586_v9  ;;  %1577 = vmatprep.subr.mxu1 %v715_v30  ;;  %v710_v9 = vld [vmem:[#allocation5 + $0x710] sm:$0xff]  ;;  %7755 = vst [vmem:[#allocation56_spill] sm:$0xff] %v4957_v21  ;;  %v4961_v30 = vld [vmem:[%s4571_s20 + $0x318] sm:$0xff] }
 0x115   : > { %964 = vmatprep.mubr.f32.mxu0 %v4937_v46  ;;  %1578 = vmatpush2.msra.mxu1 %v714_v35  ;;  %7756 = vst [vmem:[#allocation57_spill] sm:$0xff] %v4961_v30  ;;  %v579_v35 = vld [vmem:[#allocation5 + $0x2f8] sm:$0xff]  ;;  %v578_v46 = vld [vmem:[#allocation5 + $0x2f0] sm:$0xff] }
 0x116   : > { %965 = vmatmul.mubr.f32.gmra.mxu0 %v4941_v40  ;;  %1221 = vmatprep.mubr.f32.mxu1 %v4945_v51  ;;  %v4965_v40 = vld [vmem:[%s4571_s20 + $0x310] sm:$0xff]  ;;  %v4969_v51 = vld [vmem:[%s4571_s20 + $0x328] sm:$0xff] }
 0x117   : > { %1322 = vmatprep.subr.mxu0 %v583_v53  ;;  %1222 = vmatmul.mubr.f32.gmra.mxu1 %v4949_v56  ;;  %7757 = vst [vmem:[#allocation58_spill] sm:$0xff] %v4965_v40  ;;  %v707_v53 = vld [vmem:[#allocation5 + $0x6f8] sm:$0xff]  ;;  %7758 = vst [vmem:[#allocation59_spill] sm:$0xff] %v4969_v51  ;;  %v4973_v56 = vld [vmem:[%s4571_s20 + $0x320] sm:$0xff] }
 0x118   : > { %1323 = vmatpush2.msra.mxu0 %v582_v62  ;;  %1579 = vmatprep.subr.mxu1 %v711_v3  ;;  %v706_v62 = vld [vmem:[#allocation5 + $0x6f0] sm:$0xff]  ;;  %7759 = vst [vmem:[#allocation60_spill] sm:$0xff] %v4973_v56  ;;  %v4977_v3 = vld [vmem:[%s4571_s20 + $0x338] sm:$0xff] }
 0x119   : > { %970 = vmatprep.mubr.f32.mxu0 %v4953_v5  ;;  %1580 = vmatpush2.msra.mxu1 %v710_v9  ;;  %7760 = vst [vmem:[#allocation61_spill] sm:$0xff] %v4977_v3  ;;  %v575_v9 = vld [vmem:[#allocation5 + $0x2d8] sm:$0xff]  ;;  %v574_v5 = vld [vmem:[#allocation5 + $0x2d0] sm:$0xff] }
 0x11a   : > { %971 = vmatmul.mubr.f32.gmra.mxu0 %v4957_v21  ;;  %1227 = vmatprep.mubr.f32.mxu1 %v4961_v30  ;;  %v4981_v21 = vld [vmem:[%s4571_s20 + $0x330] sm:$0xff]  ;;  %v4985_v30 = vld [vmem:[%s4571_s20 + $0x348] sm:$0xff] }
 0x11b   : > { %1324 = vmatprep.subr.mxu0 %v579_v35  ;;  %1228 = vmatmul.mubr.f32.gmra.mxu1 %v4965_v40  ;;  %7761 = vst [vmem:[#allocation62_spill] sm:$0xff] %v4981_v21  ;;  %v703_v35 = vld [vmem:[#allocation5 + $0x6d8] sm:$0xff]  ;;  %7762 = vst [vmem:[#allocation63_spill] sm:$0xff] %v4985_v30  ;;  %v4989_v40 = vld [vmem:[%s4571_s20 + $0x340] sm:$0xff] }
 0x11c   : > { %1325 = vmatpush2.msra.mxu0 %v578_v46  ;;  %1581 = vmatprep.subr.mxu1 %v707_v53  ;;  %v702_v46 = vld [vmem:[#allocation5 + $0x6d0] sm:$0xff]  ;;  %7763 = vst [vmem:[#allocation64_spill] sm:$0xff] %v4989_v40  ;;  %v4993_v53 = vld [vmem:[%s4571_s20 + $0x358] sm:$0xff] }
 0x11d   : > { %976 = vmatprep.mubr.f32.mxu0 %v4969_v51  ;;  %1582 = vmatpush2.msra.mxu1 %v706_v62  ;;  %7764 = vst [vmem:[#allocation65_spill] sm:$0xff] %v4993_v53  ;;  %v571_v62 = vld [vmem:[#allocation5 + $0x2b8] sm:$0xff]  ;;  %v570_v51 = vld [vmem:[#allocation5 + $0x2b0] sm:$0xff] }
 0x11e   : > { %977 = vmatmul.mubr.f32.gmra.mxu0 %v4973_v56  ;;  %1233 = vmatprep.mubr.f32.mxu1 %v4977_v3  ;;  %v4997_v56 = vld [vmem:[%s4571_s20 + $0x350] sm:$0xff]  ;;  %v5001_v3 = vld [vmem:[%s4571_s20 + $0x368] sm:$0xff] }
 0x11f   : > { %1326 = vmatprep.subr.mxu0 %v575_v9  ;;  %1234 = vmatmul.mubr.f32.gmra.mxu1 %v4981_v21  ;;  %7765 = vst [vmem:[#allocation66_spill] sm:$0xff] %v4997_v56  ;;  %v699_v9 = vld [vmem:[#allocation5 + $0x6b8] sm:$0xff]  ;;  %7766 = vst [vmem:[#allocation67_spill] sm:$0xff] %v5001_v3  ;;  %v5005_v21 = vld [vmem:[%s4571_s20 + $0x360] sm:$0xff] }
 0x120   : > { %1327 = vmatpush2.msra.mxu0 %v574_v5  ;;  %1583 = vmatprep.subr.mxu1 %v703_v35  ;;  %v698_v5 = vld [vmem:[#allocation5 + $0x6b0] sm:$0xff]  ;;  %7767 = vst [vmem:[#allocation68_spill] sm:$0xff] %v5005_v21  ;;  %v5009_v35 = vld [vmem:[%s4571_s20 + $0x378] sm:$0xff] }
 0x121   : > { %982 = vmatprep.mubr.f32.mxu0 %v4985_v30  ;;  %1584 = vmatpush2.msra.mxu1 %v702_v46  ;;  %7768 = vst [vmem:[#allocation69_spill] sm:$0xff] %v5009_v35  ;;  %v567_v46 = vld [vmem:[#allocation5 + $0x298] sm:$0xff]  ;;  %v566_v30 = vld [vmem:[#allocation5 + $0x290] sm:$0xff] }
 0x122   : > { %983 = vmatmul.mubr.f32.gmra.mxu0 %v4989_v40  ;;  %1239 = vmatprep.mubr.f32.mxu1 %v4993_v53  ;;  %v5013_v40 = vld [vmem:[%s4571_s20 + $0x370] sm:$0xff]  ;;  %v5017_v53 = vld [vmem:[%s4571_s20 + $0x388] sm:$0xff] }
 0x123   : > { %1328 = vmatprep.subr.mxu0 %v571_v62  ;;  %1240 = vmatmul.mubr.f32.gmra.mxu1 %v4997_v56  ;;  %7769 = vst [vmem:[#allocation70_spill] sm:$0xff] %v5013_v40  ;;  %v695_v62 = vld [vmem:[#allocation5 + $0x698] sm:$0xff]  ;;  %7770 = vst [vmem:[#allocation71_spill] sm:$0xff] %v5017_v53  ;;  %v5021_v56 = vld [vmem:[%s4571_s20 + $0x380] sm:$0xff] }
 0x124   : > { %1329 = vmatpush2.msra.mxu0 %v570_v51  ;;  %1585 = vmatprep.subr.mxu1 %v699_v9  ;;  %v694_v51 = vld [vmem:[#allocation5 + $0x690] sm:$0xff]  ;;  %7771 = vst [vmem:[#allocation72_spill] sm:$0xff] %v5021_v56  ;;  %v5025_v9 = vld [vmem:[%s4571_s20 + $0x398] sm:$0xff] }
 0x125   : > { %988 = vmatprep.mubr.f32.mxu0 %v5001_v3  ;;  %1586 = vmatpush2.msra.mxu1 %v698_v5  ;;  %7772 = vst [vmem:[#allocation73_spill] sm:$0xff] %v5025_v9  ;;  %v563_v5 = vld [vmem:[#allocation5 + $0x278] sm:$0xff]  ;;  %v562_v3 = vld [vmem:[#allocation5 + $0x270] sm:$0xff] }
 0x126   : > { %989 = vmatmul.mubr.f32.gmra.mxu0 %v5005_v21  ;;  %1245 = vmatprep.mubr.f32.mxu1 %v5009_v35  ;;  %v5029_v21 = vld [vmem:[%s4571_s20 + $0x390] sm:$0xff]  ;;  %v5033_v35 = vld [vmem:[%s4571_s20 + $0x3a8] sm:$0xff] }
 0x127   : > { %1330 = vmatprep.subr.mxu0 %v567_v46  ;;  %1246 = vmatmul.mubr.f32.gmra.mxu1 %v5013_v40  ;;  %7773 = vst [vmem:[#allocation74_spill] sm:$0xff] %v5029_v21  ;;  %v691_v46 = vld [vmem:[#allocation5 + $0x678] sm:$0xff]  ;;  %7774 = vst [vmem:[#allocation75_spill] sm:$0xff] %v5033_v35  ;;  %v5037_v40 = vld [vmem:[%s4571_s20 + $0x3a0] sm:$0xff] }
 0x128   : > { %1331 = vmatpush2.msra.mxu0 %v566_v30  ;;  %1587 = vmatprep.subr.mxu1 %v695_v62  ;;  %v690_v30 = vld [vmem:[#allocation5 + $0x670] sm:$0xff]  ;;  %7775 = vst [vmem:[#allocation76_spill] sm:$0xff] %v5037_v40  ;;  %v5041_v62 = vld [vmem:[%s4571_s20 + $0x3b8] sm:$0xff] }
 0x129   : > { %994 = vmatprep.mubr.f32.mxu0 %v5017_v53  ;;  %1588 = vmatpush2.msra.mxu1 %v694_v51  ;;  %7776 = vst [vmem:[#allocation77_spill] sm:$0xff] %v5041_v62  ;;  %v559_v51 = vld [vmem:[#allocation5 + $0x258] sm:$0xff]  ;;  %v558_v53 = vld [vmem:[#allocation5 + $0x250] sm:$0xff] }
 0x12a   : > { %995 = vmatmul.mubr.f32.gmra.mxu0 %v5021_v56  ;;  %1251 = vmatprep.mubr.f32.mxu1 %v5025_v9  ;;  %v5045_v56 = vld [vmem:[%s4571_s20 + $0x3b0] sm:$0xff]  ;;  %v5049_v9 = vld [vmem:[%s4571_s20 + $0x3c8] sm:$0xff] }
 0x12b   : > { %1332 = vmatprep.subr.mxu0 %v563_v5  ;;  %1252 = vmatmul.mubr.f32.gmra.mxu1 %v5029_v21  ;;  %7777 = vst [vmem:[#allocation78_spill] sm:$0xff] %v5045_v56  ;;  %v687_v5 = vld [vmem:[#allocation5 + $0x658] sm:$0xff]  ;;  %7778 = vst [vmem:[#allocation79_spill] sm:$0xff] %v5049_v9  ;;  %v5053_v21 = vld [vmem:[%s4571_s20 + $0x3c0] sm:$0xff] }
 0x12c   : > { %1333 = vmatpush2.msra.mxu0 %v562_v3  ;;  %1589 = vmatprep.subr.mxu1 %v691_v46  ;;  %v686_v3 = vld [vmem:[#allocation5 + $0x650] sm:$0xff]  ;;  %7779 = vst [vmem:[#allocation80_spill] sm:$0xff] %v5053_v21  ;;  %v5057_v46 = vld [vmem:[%s4571_s20 + $0x3d8] sm:$0xff] }
 0x12d   : > { %1000 = vmatprep.mubr.f32.mxu0 %v5033_v35  ;;  %1590 = vmatpush2.msra.mxu1 %v690_v30  ;;  %7780 = vst [vmem:[#allocation81_spill] sm:$0xff] %v5057_v46  ;;  %v555_v30 = vld [vmem:[#allocation5 + $0x238] sm:$0xff]  ;;  %v554_v35 = vld [vmem:[#allocation5 + $0x230] sm:$0xff] }
 0x12e   : > { %1001 = vmatmul.mubr.f32.gmra.mxu0 %v5037_v40  ;;  %1257 = vmatprep.mubr.f32.mxu1 %v5041_v62  ;;  %v5061_v40 = vld [vmem:[%s4571_s20 + $0x3d0] sm:$0xff]  ;;  %v5065_v62 = vld [vmem:[%s4571_s20 + $0x3e8] sm:$0xff] }
 0x12f   : > { %1334 = vmatprep.subr.mxu0 %v559_v51  ;;  %1258 = vmatmul.mubr.f32.gmra.mxu1 %v5045_v56  ;;  %7781 = vst [vmem:[#allocation82_spill] sm:$0xff] %v5061_v40  ;;  %v683_v51 = vld [vmem:[#allocation5 + $0x638] sm:$0xff]  ;;  %7782 = vst [vmem:[#allocation83_spill] sm:$0xff] %v5065_v62  ;;  %v5069_v56 = vld [vmem:[%s4571_s20 + $0x3e0] sm:$0xff] }
 0x130   : > { %1335 = vmatpush2.msra.mxu0 %v558_v53  ;;  %1591 = vmatprep.subr.mxu1 %v687_v5  ;;  %v682_v53 = vld [vmem:[#allocation5 + $0x630] sm:$0xff]  ;;  %7783 = vst [vmem:[#allocation84_spill] sm:$0xff] %v5069_v56  ;;  %v5073_v5 = vld [vmem:[%s4571_s20 + $0x3f8] sm:$0xff] }
 0x131   : > { %1006 = vmatprep.mubr.f32.mxu0 %v5049_v9  ;;  %1592 = vmatpush2.msra.mxu1 %v686_v3  ;;  %7784 = vst [vmem:[#allocation85_spill] sm:$0xff] %v5073_v5  ;;  %v551_v9 = vld [vmem:[#allocation5 + $0x218] sm:$0xff]  ;;  %v5077_v3 = vld [vmem:[%s4571_s20 + $0x3f0] sm:$0xff] }
 0x132   : > { %1007 = vmatmul.mubr.f32.gmra.mxu0 %v5053_v21  ;;  %1263 = vmatprep.mubr.f32.mxu1 %v5057_v46  ;;  %v550_v21 = vld [vmem:[#allocation5 + $0x210] sm:$0xff]  ;;  %v4153_v46 = vld [vmem:[%s4571_s20 + $0x18] sm:$0xff] }
 0x133   : > { %1336 = vmatprep.subr.mxu0 %v555_v30  ;;  %1264 = vmatmul.mubr.f32.gmra.mxu1 %v5061_v40  ;;  %v679_v30 = vld [vmem:[#allocation5 + $0x618] sm:$0xff]  ;;  %v1979_v40 = vld [vmem:[#allocation8 + $0x1e8] sm:$0xff] }
 0x134   : > { %1337 = vmatpush2.msra.mxu0 %v554_v35  ;;  %1593 = vmatprep.subr.mxu1 %v683_v51  ;;  %v678_v35 = vld [vmem:[#allocation5 + $0x610] sm:$0xff]  ;;  %v4151_v51 = vld [vmem:[%s4571_s20 + $0x8] sm:$0xff] }
 0x135   : > { %1012 = vmatprep.mubr.f32.mxu0 %v5065_v62  ;;  %1594 = vmatpush2.msra.mxu1 %v682_v53  ;;  %v4152_v62 = vld [vmem:[%s4571_s20] sm:$0xff] }
 0x136   : > { %1013 = vmatmul.mubr.f32.gmra.mxu0 %v5069_v56  ;;  %1269 = vmatprep.mubr.f32.mxu1 %v5073_v5  ;;  %v1978_v53 = vld [vmem:[#allocation8 + $0x1e0] sm:$0xff]  ;;  %v1975_v56 = vld [vmem:[#allocation8 + $0x1c8] sm:$0xff] }
 0x137   : > { %1338 = vmatprep.subr.mxu0 %v551_v9  ;;  %1270 = vmatmul.mubr.f32.gmra.mxu1 %v5077_v3  ;;  %v4154_v9 = vld [vmem:[%s4571_s20 + $0x10] sm:$0xff]  ;;  %v1974_v5 = vld [vmem:[#allocation8 + $0x1c0] sm:$0xff] }
 0x138   : > { %1339 = vmatpush2.msra.mxu0 %v550_v21  ;;  %1595 = vmatprep.subr.mxu1 %v679_v30  ;;  %v1971_v21 = vld [vmem:[#allocation8 + $0x1a8] sm:$0xff]  ;;  %v4155_v30 = vld [vmem:[%s4571_s20 + $0x20] sm:$0xff]  ;;  %s4292_s20 = sshll.u32 %s4372_s14, 4  ;;  %s4293_s20 = int_to_ptr.vmem [resolvable:$false] %s4292_s20 }
 0x139   : > { %1340 = vmatprep.mubr.f32.mxu0 %v4151_v51  ;;  %1596 = vmatpush2.msra.mxu1 %v678_v35  ;;  %v1970_v35 = vld [vmem:[#allocation8 + $0x1a0] sm:$0xff]  ;;  %v7787_v51 = vld [vmem:[#allocation19_spill] sm:$0xff]  ;;  %s4294_s30 = scalar_lea.vmem %s4293_s20, 8192  ;;  %p4295_p9 = scmp.lt.s32.totalorder %s7421_s12, %s4293_s20 }
 0x13a   : > { %1341 = vmatmul.mubr.f32.vlgmr.msra.gmra.mxu0 %v4152_v62  ;;  %1597 = vmatprep.mubr.f32.mxu1 %v4153_v46  ;;  %v1967_v62 = vld [vmem:[#allocation8 + $0x188] sm:$0xff]  ;;  %p4296_p13 = scmp.lt.s32.totalorder %s4294_s30, %s4288_s1 }
 0x13b   : > { %1346 = vmatprep.mubr.f32.mxu0 %v4590_v7  ;;  %1598 = vmatmul.mubr.f32.vlgmr.msra.gmra.mxu1 %v4154_v9  ;;  %v1966_v7 = vld [vmem:[#allocation8 + $0x180] sm:$0xff]  ;;  %v7785_v46 = vld [vmem:[#allocation17_spill] sm:$0xff] }
 0x13c   : > { %2196 = vmatprep.subr.mxu0 %v1979_v40  ;;  %1603 = vmatprep.mubr.f32.mxu1 %v4594_v10  ;;  %v1963_v40 = vld [vmem:[#allocation8 + $0x168] sm:$0xff]  ;;  %v1962_v10 = vld [vmem:[#allocation8 + $0x160] sm:$0xff]  ;;  %p4297_p3 = por %p4296_p13, %p4295_p9 }
 0x13d   : > { %2197 = vmatpush1.msra.mxu0 %v1978_v53  ;;  %v7788_v53 = vld [vmem:[#allocation18_spill] sm:$0xff]  ;;  %v7789_v9 = vld [vmem:[#allocation21_spill] sm:$0xff] }
 0x13e   : > { %1347 = vmatmul.mubr.f32.gmra.mxu0 %v4155_v30  ;;  %2198 = vmatprep.subr.mxu0 %v1975_v56  ;;  %v1959_v56 = vld [vmem:[#allocation8 + $0x148] sm:$0xff]  ;;  %v2074_v30 = vld [vmem:[#allocation8 + $0x4e0] sm:$0xff]  ;;  %p4298_p5 = pnand %p4297_p3, %p4291_p7 }
 0x13f   : > { %1352 = vmatprep.mubr.f32.mxu0 %v4601_v15  ;;  %2199 = vmatpush1.msra.mxu0 %v1974_v5  ;;  %v2107_v15 = vld [vmem:[#allocation8 + $0x5e8] sm:$0xff]  ;;  %v7786_v5 = vld [vmem:[#allocation16_spill] sm:$0xff] }
 0x140   : > { %1604 = vmatmul.mubr.f32.gmra.mxu1 %v4598_v12  ;;  %2200 = vmatprep.subr.mxu0 %v1971_v21  ;;  %v1958_v12 = vld [vmem:[#allocation8 + $0x140] sm:$0xff] }
 0x141   : > { %1609 = vmatprep.mubr.f32.mxu1 %v4609_v18  ;;  %2201 = vmatpush1.msra.mxu0 %v1970_v35  ;;  %v2106_v18 = vld [vmem:[#allocation8 + $0x5e0] sm:$0xff]  ;;  %v7791_v35 = vld [vmem:[#allocation23_spill] sm:$0xff] }
 0x142   : > { %1353 = vmatmul.mubr.f32.gmra.mxu0 %v4605_v17  ;;  %2202 = vmatprep.subr.mxu0 %v1967_v62  ;;  %v1955_v17 = vld [vmem:[#allocation8 + $0x128] sm:$0xff]  ;;  %v7790_v21 = vld [vmem:[#allocation20_spill] sm:$0xff] }
 0x143   : > { %1358 = vmatprep.mubr.f32.mxu0 %v4617_v23  ;;  %2203 = vmatpush1.msra.mxu0 %v1966_v7  ;;  %v1954_v23 = vld [vmem:[#allocation8 + $0x120] sm:$0xff]  ;;  %v2019_v62 = vld [vmem:[#allocation8 + $0x328] sm:$0xff]  ;;  %v7792_v7 = vld [vmem:[#allocation22_spill] sm:$0xff] }
 0x144   : > { %1610 = vmatmul.mubr.f32.gmra.mxu1 %v4613_v20  ;;  %2204 = vmatprep.subr.mxu0 %v1963_v40  ;;  %v1951_v20 = vld [vmem:[#allocation8 + $0x108] sm:$0xff]  ;;  %v2018_v40 = vld [vmem:[#allocation8 + $0x320] sm:$0xff] }
 0x145   : > { %1615 = vmatprep.mubr.f32.mxu1 %v4625_v26  ;;  %2205 = vmatpush1.msra.mxu0 %v1962_v10  ;;  %v2103_v26 = vld [vmem:[#allocation8 + $0x5c8] sm:$0xff] }
 0x146   : > { %1359 = vmatmul.mubr.f32.gmra.mxu0 %v4621_v25  ;;  %2206 = vmatprep.subr.mxu0 %v1959_v56  ;;  %v2102_v25 = vld [vmem:[#allocation8 + $0x5c0] sm:$0xff]  ;;  %v7793_v10 = vld [vmem:[#allocation25_spill] sm:$0xff] }
 0x147   : > { %1364 = vmatprep.mubr.f32.mxu0 %v4633_v31  ;;  %2453 = vmatprep.subr.mxu1 %v2107_v15  ;;  %v1950_v31 = vld [vmem:[#allocation8 + $0x100] sm:$0xff]  ;;  %v2015_v56 = vld [vmem:[#allocation8 + $0x308] sm:$0xff] }
 0x148   : > { %1616 = vmatmul.mubr.f32.gmra.mxu1 %v4629_v28  ;;  %2207 = vmatpush1.msra.mxu0 %v1958_v12  ;;  %v1947_v28 = vld [vmem:[#allocation8 + $0xe8] sm:$0xff]  ;;  %v7794_v12 = vld [vmem:[#allocation24_spill] sm:$0xff] }
 0x149   : > { %1621 = vmatprep.mubr.f32.mxu1 %v4641_v34  ;;  %2454 = vmatpush1.msra.mxu1 %v2106_v18  ;;  %v1946_v34 = vld [vmem:[#allocation8 + $0xe0] sm:$0xff]  ;;  %v2071_v18 = vld [vmem:[#allocation8 + $0x4c8] sm:$0xff] }
 0x14a   : > { %1365 = vmatmul.mubr.f32.gmra.mxu0 %v4637_v33  ;;  %2208 = vmatprep.subr.mxu0 %v1955_v17  ;;  %v1943_v33 = vld [vmem:[#allocation8 + $0xc8] sm:$0xff]  ;;  %v7795_v17 = vld [vmem:[#allocation27_spill] sm:$0xff] }
 0x14b   : > { %1370 = vmatprep.mubr.f32.mxu0 %v4649_v39  ;;  %2209 = vmatpush1.msra.mxu0 %v1954_v23  ;;  %v2099_v39 = vld [vmem:[#allocation8 + $0x5a8] sm:$0xff]  ;;  %v2070_v23 = vld [vmem:[#allocation8 + $0x4c0] sm:$0xff] }
 0x14c   : > { %1622 = vmatmul.mubr.f32.gmra.mxu1 %v4645_v36  ;;  %2210 = vmatprep.subr.mxu0 %v1951_v20  ;;  %v1942_v36 = vld [vmem:[#allocation8 + $0xc0] sm:$0xff] }
 0x14d   : > { %1627 = vmatprep.mubr.f32.mxu1 %v4657_v42  ;;  %2455 = vmatprep.subr.mxu1 %v2103_v26  ;;  %v2098_v42 = vld [vmem:[#allocation8 + $0x5a0] sm:$0xff]  ;;  %v7796_v26 = vld [vmem:[#allocation26_spill] sm:$0xff] }
 0x14e   : > { %1371 = vmatmul.mubr.f32.gmra.mxu0 %v4653_v41  ;;  %2456 = vmatpush1.msra.mxu1 %v2102_v25  ;;  %v1939_v41 = vld [vmem:[#allocation8 + $0xa8] sm:$0xff] }
 0x14f   : > { %1376 = vmatprep.mubr.f32.mxu0 %v4665_v47  ;;  %2211 = vmatpush1.msra.mxu0 %v1950_v31  ;;  %v1938_v47 = vld [vmem:[#allocation8 + $0xa0] sm:$0xff] }
 0x150   : > { %1628 = vmatmul.mubr.f32.gmra.mxu1 %v4661_v44  ;;  %2212 = vmatprep.subr.mxu0 %v1947_v28  ;;  %v1935_v44 = vld [vmem:[#allocation8 + $0x88] sm:$0xff]  ;;  %v2014_v31 = vld [vmem:[#allocation8 + $0x300] sm:$0xff] }
 0x151   : > { %1633 = vmatprep.mubr.f32.mxu1 %v4673_v50  ;;  %2213 = vmatpush1.msra.mxu0 %v1946_v34  ;;  %v2095_v50 = vld [vmem:[#allocation8 + $0x588] sm:$0xff] }
 0x152   : > { %1377 = vmatmul.mubr.f32.gmra.mxu0 %v4669_v49  ;;  %2214 = vmatprep.subr.mxu0 %v1943_v33  ;;  %v2094_v49 = vld [vmem:[#allocation8 + $0x580] sm:$0xff]  ;;  %v7797_v28 = vld [vmem:[#allocation29_spill] sm:$0xff] }
 0x153   : > { %1382 = vmatprep.mubr.f32.mxu0 %v4681_v55  ;;  %2457 = vmatprep.subr.mxu1 %v2099_v39  ;;  %v1934_v55 = vld [vmem:[#allocation8 + $0x80] sm:$0xff]  ;;  %v2011_v34 = vld [vmem:[#allocation8 + $0x2e8] sm:$0xff] }
 0x154   : > { %1634 = vmatmul.mubr.f32.gmra.mxu1 %v4677_v52  ;;  %2215 = vmatpush1.msra.mxu0 %v1942_v36  ;;  %v1931_v52 = vld [vmem:[#allocation8 + $0x68] sm:$0xff]  ;;  %v7798_v36 = vld [vmem:[#allocation28_spill] sm:$0xff] }
 0x155   : > { %1639 = vmatprep.mubr.f32.mxu1 %v4689_v58  ;;  %2458 = vmatpush1.msra.mxu1 %v2098_v42  ;;  %v1930_v58 = vld [vmem:[#allocation8 + $0x60] sm:$0xff] }
 0x156   : > { %1383 = vmatmul.mubr.f32.gmra.mxu0 %v4685_v57  ;;  %2216 = vmatprep.subr.mxu0 %v1939_v41  ;;  %v1927_v57 = vld [vmem:[#allocation8 + $0x48] sm:$0xff]  ;;  %v2010_v42 = vld [vmem:[#allocation8 + $0x2e0] sm:$0xff]  ;;  %v7799_v41 = vld [vmem:[#allocation31_spill] sm:$0xff] }
 0x157   : > { %1388 = vmatprep.mubr.f32.mxu0 %v4697_v63  ;;  %2217 = vmatpush1.msra.mxu0 %v1938_v47  ;;  %v2091_v63 = vld [vmem:[#allocation8 + $0x568] sm:$0xff] }
 0x158   : > { %1640 = vmatmul.mubr.f32.gmra.mxu1 %v4693_v60  ;;  %2218 = vmatprep.subr.mxu0 %v1935_v44  ;;  %v1926_v60 = vld [vmem:[#allocation8 + $0x40] sm:$0xff]  ;;  %v2007_v47 = vld [vmem:[#allocation8 + $0x2c8] sm:$0xff] }
 0x159   : > { %1645 = vmatprep.mubr.f32.mxu1 %v4705_v2  ;;  %2459 = vmatprep.subr.mxu1 %v2095_v50  ;;  %v2090_v2 = vld [vmem:[#allocation8 + $0x560] sm:$0xff]  ;;  %v7800_v50 = vld [vmem:[#allocation30_spill] sm:$0xff] }
 0x15a   : > { %1389 = vmatmul.mubr.f32.gmra.mxu0 %v4701_v1  ;;  %2460 = vmatpush1.msra.mxu1 %v2094_v49  ;;  %v1923_v1 = vld [vmem:[#allocation8 + $0x28] sm:$0xff] }
 0x15b   : > { %1394 = vmatprep.mubr.f32.mxu0 %v4713_v8  ;;  %2219 = vmatpush1.msra.mxu0 %v1934_v55  ;;  %v1922_v8 = vld [vmem:[#allocation8 + $0x20] sm:$0xff]  ;;  %v2067_v55 = vld [vmem:[#allocation8 + $0x4a8] sm:$0xff] }
 0x15c   : > { %1646 = vmatmul.mubr.f32.gmra.mxu1 %v4709_v4  ;;  %2220 = vmatprep.subr.mxu0 %v1931_v52  ;;  %v1919_v4 = vld [vmem:[#allocation8 + $0x8] sm:$0xff] }
 0x15d   : > { %1651 = vmatprep.mubr.f32.mxu1 %v4721_v13  ;;  %2221 = vmatpush1.msra.mxu0 %v1930_v58  ;;  %v2087_v13 = vld [vmem:[#allocation8 + $0x548] sm:$0xff]  ;;  %v2006_v58 = vld [vmem:[#allocation8 + $0x2c0] sm:$0xff] }
 0x15e   : > { %1395 = vmatmul.mubr.f32.gmra.mxu0 %v4717_v11  ;;  %2222 = vmatprep.subr.mxu0 %v1927_v57  ;;  %v2086_v11 = vld [vmem:[#allocation8 + $0x540] sm:$0xff]  ;;  %v7801_v52 = vld [vmem:[#allocation33_spill] sm:$0xff] }
 0x15f   : > { %1400 = vmatprep.mubr.f32.mxu0 %v4729_v22  ;;  %2461 = vmatprep.subr.mxu1 %v2091_v63  ;;  %v1918_v22 = vld [vmem:[#allocation8] sm:$0xff] }
 0x160   : > { %1652 = vmatmul.mubr.f32.gmra.mxu1 %v4725_v16  ;;  %2223 = vmatpush1.msra.mxu0 %v1926_v60  ;;  %v2043_v16 = vld [vmem:[#allocation8 + $0x3e8] sm:$0xff]  ;;  %v7802_v60 = vld [vmem:[#allocation32_spill] sm:$0xff] }
 0x161   : > { %1657 = vmatprep.mubr.f32.mxu1 %v4737_v29  ;;  %2462 = vmatpush1.msra.mxu1 %v2090_v2  ;;  %v2042_v29 = vld [vmem:[#allocation8 + $0x3e0] sm:$0xff] }
 0x162   : > { %1401 = vmatmul.mubr.f32.gmra.mxu0 %v4733_v27  ;;  %2224 = vmatprep.subr.mxu0 %v1923_v1  ;;  %v2039_v27 = vld [vmem:[#allocation8 + $0x3c8] sm:$0xff]  ;;  %v2066_v2 = vld [vmem:[#allocation8 + $0x4a0] sm:$0xff]  ;;  %v7803_v1 = vld [vmem:[#allocation35_spill] sm:$0xff] }
 0x163   : > { %1406 = vmatprep.mubr.f32.mxu0 %v4745_v38  ;;  %2225 = vmatpush1.msra.mxu0 %v1922_v8  ;;  %v2083_v38 = vld [vmem:[#allocation8 + $0x528] sm:$0xff] }
 0x164   : > { %1658 = vmatmul.mubr.f32.gmra.mxu1 %v4741_v32  ;;  %2226 = vmatprep.subr.mxu0 %v1919_v4  ;;  %v2038_v32 = vld [vmem:[#allocation8 + $0x3c0] sm:$0xff]  ;;  %v2003_v8 = vld [vmem:[#allocation8 + $0x2a8] sm:$0xff] }
 0x165   : > { %1663 = vmatprep.mubr.f32.mxu1 %v4753_v45  ;;  %2463 = vmatprep.subr.mxu1 %v2087_v13  ;;  %v2082_v45 = vld [vmem:[#allocation8 + $0x520] sm:$0xff]  ;;  %v7804_v13 = vld [vmem:[#allocation34_spill] sm:$0xff] }
 0x166   : > { %1407 = vmatmul.mubr.f32.gmra.mxu0 %v4749_v43  ;;  %2464 = vmatpush1.msra.mxu1 %v2086_v11  ;;  %v2035_v43 = vld [vmem:[#allocation8 + $0x3a8] sm:$0xff] }
 0x167   : > { %1412 = vmatprep.mubr.f32.mxu0 %v4761_v54  ;;  %2227 = vmatpush1.msra.mxu0 %v1918_v22  ;;  %v2034_v54 = vld [vmem:[#allocation8 + $0x3a0] sm:$0xff] }
 0x168   : > { %1664 = vmatmul.mubr.f32.gmra.mxu1 %v4757_v48  ;;  %2228 = vmatprep.subr.mxu0 %v2043_v16  ;;  %v2031_v48 = vld [vmem:[#allocation8 + $0x388] sm:$0xff]  ;;  %v2002_v22 = vld [vmem:[#allocation8 + $0x2a0] sm:$0xff] }
 0x169   : > { %1669 = vmatprep.mubr.f32.mxu1 %v4769_v61  ;;  %2229 = vmatpush2.msra.mxu0 %v2042_v29  ;;  %v2079_v61 = vld [vmem:[#allocation8 + $0x508] sm:$0xff] }
 0x16a   : > { %1413 = vmatmul.mubr.f32.gmra.mxu0 %v4765_v59  ;;  %2230 = vmatprep.subr.mxu0 %v2039_v27  ;;  %v2078_v59 = vld [vmem:[#allocation8 + $0x500] sm:$0xff]  ;;  %v7805_v16 = vld [vmem:[#allocation37_spill] sm:$0xff] }
 0x16b   : > { %1418 = vmatprep.mubr.f32.mxu0 %v4777_v6  ;;  %2465 = vmatprep.subr.mxu1 %v2083_v38  ;;  %v2030_v6 = vld [vmem:[#allocation8 + $0x380] sm:$0xff]  ;;  %v1999_v29 = vld [vmem:[#allocation8 + $0x288] sm:$0xff] }
 0x16c   : > { %1670 = vmatmul.mubr.f32.gmra.mxu1 %v4773_v0  ;;  %2231 = vmatpush2.msra.mxu0 %v2038_v32  ;;  %v2027_v0 = vld [vmem:[#allocation8 + $0x368] sm:$0xff]  ;;  %v7806_v32 = vld [vmem:[#allocation36_spill] sm:$0xff] }
 0x16d   : > { %1675 = vmatprep.mubr.f32.mxu1 %v4785_v19  ;;  %2466 = vmatpush1.msra.mxu1 %v2082_v45  ;;  %v2026_v19 = vld [vmem:[#allocation8 + $0x360] sm:$0xff]  ;;  %v2063_v45 = vld [vmem:[#allocation8 + $0x488] sm:$0xff] }
 0x16e   : > { %1419 = vmatmul.mubr.f32.gmra.mxu0 %v4781_v14  ;;  %2232 = vmatprep.subr.mxu0 %v2035_v43  ;;  %v2023_v14 = vld [vmem:[#allocation8 + $0x348] sm:$0xff]  ;;  %v7807_v43 = vld [vmem:[#allocation39_spill] sm:$0xff] }
 0x16f   : > { %1424 = vmatprep.mubr.f32.mxu0 %v4793_v37  ;;  %2233 = vmatpush2.msra.mxu0 %v2034_v54  ;;  %v2075_v37 = vld [vmem:[#allocation8 + $0x4e8] sm:$0xff]  ;;  %v2062_v54 = vld [vmem:[#allocation8 + $0x480] sm:$0xff] }
 0x170   : > { %1676 = vmatmul.mubr.f32.gmra.mxu1 %v4789_v24  ;;  %2234 = vmatprep.subr.mxu0 %v2031_v48  ;;  %v2022_v24 = vld [vmem:[#allocation8 + $0x340] sm:$0xff] }
 0x171   : > { %1681 = vmatprep.mubr.f32.mxu1 %v7785_v46  ;;  %2467 = vmatprep.subr.mxu1 %v2079_v61  ;;  %v7808_v61 = vld [vmem:[#allocation38_spill] sm:$0xff]  ;;  %v7809_v46 = vld [vmem:[#allocation41_spill] sm:$0xff] }
 0x172   : > { %1425 = vmatmul.mubr.f32.gmra.mxu0 %v7786_v5  ;;  %2468 = vmatpush1.msra.mxu1 %v2078_v59 }
 0x173   : > { %1430 = vmatprep.mubr.f32.mxu0 %v7787_v51  ;;  %2235 = vmatpush2.msra.mxu0 %v2030_v6  ;;  %v1998_v6 = vld [vmem:[#allocation8 + $0x280] sm:$0xff] }
 0x174   : > { %1682 = vmatmul.mubr.f32.gmra.mxu1 %v7788_v53  ;;  %2236 = vmatprep.subr.mxu0 %v2027_v0  ;;  %v1995_v0 = vld [vmem:[#allocation8 + $0x268] sm:$0xff]  ;;  %v7810_v51 = vld [vmem:[#allocation40_spill] sm:$0xff]  ;;  %v7811_v53 = vld [vmem:[#allocation43_spill] sm:$0xff] }
 0x175   : > { %1687 = vmatprep.mubr.f32.mxu1 %v7789_v9  ;;  %2237 = vmatpush2.msra.mxu0 %v2026_v19 }
 0x176   : > { %1431 = vmatmul.mubr.f32.gmra.mxu0 %v7790_v21  ;;  %2238 = vmatprep.subr.mxu0 %v2023_v14  ;;  %v1994_v14 = vld [vmem:[#allocation8 + $0x260] sm:$0xff] }
 0x177   : > { %1436 = vmatprep.mubr.f32.mxu0 %v7791_v35  ;;  %2469 = vmatprep.subr.mxu1 %v2075_v37  ;;  %v1991_v37 = vld [vmem:[#allocation8 + $0x248] sm:$0xff] }
 0x178   : > { %1688 = vmatmul.mubr.f32.gmra.mxu1 %v7792_v7  ;;  %2239 = vmatpush2.msra.mxu0 %v2022_v24  ;;  %v7812_v24 = vld [vmem:[#allocation42_spill] sm:$0xff]  ;;  %v7813_v35 = vld [vmem:[#allocation45_spill] sm:$0xff] }
 0x179   : > { %1693 = vmatprep.mubr.f32.mxu1 %v7793_v10  ;;  %2470 = vmatpush1.msra.mxu1 %v2074_v30  ;;  %v5148_v15 = vpop.f32.mrf.mxu0  ;;  %v2059_v30 = vld [vmem:[#allocation8 + $0x468] sm:$0xff]  ;;  %v7814_v10 = vld [vmem:[#allocation44_spill] sm:$0xff] }
 0x17a   : > { %1437 = vmatmul.mubr.f32.gmra.mxu0 %v7794_v12  ;;  %2240 = vmatprep.subr.mxu0 %v2019_v62  ;;  %v1990_v62 = vld [vmem:[#allocation8 + $0x240] sm:$0xff]  ;;  %v7815_v12 = vld [vmem:[#allocation47_spill] sm:$0xff] }
 0x17b   : > { %1442 = vmatprep.mubr.f32.mxu0 %v7795_v17  ;;  %2241 = vmatpush2.msra.mxu0 %v2018_v40  ;;  %v5152_v20 = vpop.f32.mrf.mxu1  ;;  %v5155_v25 = vpop.f32.mrf.mxu0 }
 0x17c   : > { %1694 = vmatmul.mubr.f32.gmra.mxu1 %v7796_v26  ;;  %2242 = vmatprep.subr.mxu0 %v2015_v56  ;;  %v2058_v56 = vld [vmem:[#allocation8 + $0x460] sm:$0xff] }
 0x17d   : > { %1699 = vmatprep.mubr.f32.mxu1 %v7797_v28  ;;  %2471 = vmatprep.subr.mxu1 %v2071_v18  ;;  %v5158_v33 = vpop.f32.mrf.mxu1  ;;  %v1987_v18 = vld [vmem:[#allocation8 + $0x228] sm:$0xff] }
 0x17e   : > { %v5160_v39 = vpop.f32.mrf.mxu0  ;;  %1443 = vmatmul.mubr.f32.gmra.mxu0 %v7798_v36  ;;  %2472 = vmatpush1.msra.mxu1 %v2070_v23  ;;  %v7816_v23 = vld [vmem:[#allocation46_spill] sm:$0xff]  ;;  %v7817_v28 = vld [vmem:[#allocation49_spill] sm:$0xff] }
 0x17f   : > { %1448 = vmatprep.mubr.f32.mxu0 %v7799_v41  ;;  %2243 = vmatpush2.msra.mxu0 %v2014_v31  ;;  %v5164_v44 = vpop.f32.mrf.mxu1  ;;  %v1986_v31 = vld [vmem:[#allocation8 + $0x220] sm:$0xff] }
 0x180   : > { %1700 = vmatmul.mubr.f32.gmra.mxu1 %v7800_v50  ;;  %v5167_v49 = vpop.f32.mrf.mxu0  ;;  %2244 = vmatprep.subr.mxu0 %v2011_v34  ;;  %v1983_v34 = vld [vmem:[#allocation8 + $0x208] sm:$0xff]  ;;  %v7818_v41 = vld [vmem:[#allocation48_spill] sm:$0xff]  ;;  %v7819_v50 = vld [vmem:[#allocation51_spill] sm:$0xff] }
 0x181   : > { %1705 = vmatprep.mubr.f32.mxu1 %v7801_v52  ;;  %2245 = vmatpush2.msra.mxu0 %v2010_v42  ;;  %v5170_v57 = vpop.f32.mrf.mxu1 }
 0x182   : > { %v5172_v63 = vpop.f32.mrf.mxu0  ;;  %1449 = vmatmul.mubr.f32.gmra.mxu0 %v7802_v60  ;;  %2246 = vmatprep.subr.mxu0 %v2007_v47  ;;  %v2055_v47 = vld [vmem:[#allocation8 + $0x448] sm:$0xff] }
 0x183   : > { %1454 = vmatprep.mubr.f32.mxu0 %v7803_v1  ;;  %2473 = vmatprep.subr.mxu1 %v2067_v55  ;;  %v5176_v4 = vpop.f32.mrf.mxu1  ;;  %v2054_v55 = vld [vmem:[#allocation8 + $0x440] sm:$0xff]  ;;  %v7821_v1 = vld [vmem:[#allocation53_spill] sm:$0xff] }
 0x184   : > { %1706 = vmatmul.mubr.f32.gmra.mxu1 %v7804_v13  ;;  %v5179_v11 = vpop.f32.mrf.mxu0  ;;  %2247 = vmatpush2.msra.mxu0 %v2006_v58  ;;  %v7820_v58 = vld [vmem:[#allocation50_spill] sm:$0xff] }
 0x185   : > { %1711 = vmatprep.mubr.f32.mxu1 %v7805_v16  ;;  %2474 = vmatpush1.msra.mxu1 %v2066_v2  ;;  %v5182_v27 = vpop.f32.mrf.mxu1  ;;  %v1982_v2 = vld [vmem:[#allocation8 + $0x200] sm:$0xff] }
 0x186   : > { %v5184_v38 = vpop.f32.mrf.mxu0  ;;  %1455 = vmatmul.mubr.f32.gmra.mxu0 %v7806_v32  ;;  %2248 = vmatprep.subr.mxu0 %v2003_v8  ;;  %v2051_v8 = vld [vmem:[#allocation8 + $0x428] sm:$0xff]  ;;  %v7822_v16 = vld [vmem:[#allocation52_spill] sm:$0xff]  ;;  %v7823_v32 = vld [vmem:[#allocation55_spill] sm:$0xff] }
 0x187   : > { %1460 = vmatprep.mubr.f32.mxu0 %v7807_v43  ;;  %2249 = vmatpush2.msra.mxu0 %v2002_v22  ;;  %v5188_v48 = vpop.f32.mrf.mxu1 }
 0x188   : > { %1712 = vmatmul.mubr.f32.gmra.mxu1 %v7808_v61  ;;  %v5191_v59 = vpop.f32.mrf.mxu0  ;;  %2250 = vmatprep.subr.mxu0 %v1999_v29  ;;  %v2050_v29 = vld [vmem:[#allocation8 + $0x420] sm:$0xff] }
 0x189   : > { %1717 = vmatprep.mubr.f32.mxu1 %v7809_v46  ;;  %2475 = vmatprep.subr.mxu1 %v2063_v45  ;;  %v5194_v5 = vpop.f32.mrf.mxu1  ;;  %v2047_v45 = vld [vmem:[#allocation8 + $0x408] sm:$0xff] }
 0x18a   : > { %v5196_v19 = vpop.f32.mrf.mxu0  ;;  %1461 = vmatmul.mubr.f32.gmra.mxu0 %v7810_v51  ;;  %2476 = vmatpush1.msra.mxu1 %v2062_v54  ;;  %v7824_v54 = vld [vmem:[#allocation54_spill] sm:$0xff]  ;;  %v7825_v46 = vld [vmem:[#allocation57_spill] sm:$0xff] }
 0x18b   : > { %1466 = vmatprep.mubr.f32.mxu0 %v7811_v53  ;;  %2251 = vmatpush2.msra.mxu0 %v1998_v6  ;;  %v5200_v9 = vpop.f32.mrf.mxu1  ;;  %v2046_v6 = vld [vmem:[#allocation8 + $0x400] sm:$0xff] }
 0x18c   : > { %1718 = vmatmul.mubr.f32.gmra.mxu1 %v7812_v24  ;;  %v5203_v21 = vpop.f32.mrf.mxu0  ;;  %2252 = vmatprep.subr.mxu0 %v1995_v0  ;;  %v2171_v0 = vld [vmem:[#allocation8 + $0x7e8] sm:$0xff]  ;;  %v7826_v53 = vld [vmem:[#allocation56_spill] sm:$0xff]  ;;  %v7827_v24 = vld [vmem:[#allocation59_spill] sm:$0xff] }
 0x18d   : > { %1723 = vmatprep.mubr.f32.mxu1 %v7813_v35  ;;  %2253 = vmatpush2.msra.mxu0 %v1994_v14  ;;  %v5206_v7 = vpop.f32.mrf.mxu1 }
 0x18e   : > { %v5208_v40 = vpop.f32.mrf.mxu0  ;;  %1467 = vmatmul.mubr.f32.gmra.mxu0 %v7814_v10  ;;  %2254 = vmatprep.subr.mxu0 %v1991_v37  ;;  %v2170_v37 = vld [vmem:[#allocation8 + $0x7e0] sm:$0xff] }
 0x18f   : > { %1472 = vmatprep.mubr.f32.mxu0 %v7815_v12  ;;  %2477 = vmatprep.subr.mxu1 %v2059_v30  ;;  %v5212_v17 = vpop.f32.mrf.mxu1  ;;  %v2167_v30 = vld [vmem:[#allocation8 + $0x7c8] sm:$0xff] }
 0x190   : > { %1724 = vmatmul.mubr.f32.gmra.mxu1 %v7816_v23  ;;  %v5215_v26 = vpop.f32.mrf.mxu0  ;;  %2255 = vmatpush2.msra.mxu0 %v1990_v62  ;;  %v7828_v62 = vld [vmem:[#allocation58_spill] sm:$0xff]  ;;  %v7829_v12 = vld [vmem:[#allocation61_spill] sm:$0xff] }
 0x191   : > { %1729 = vmatprep.mubr.f32.mxu1 %v7817_v28  ;;  %2478 = vmatpush1.msra.mxu1 %v2058_v56  ;;  %v5218_v36 = vpop.f32.mrf.mxu1  ;;  %v2166_v56 = vld [vmem:[#allocation8 + $0x7c0] sm:$0xff] }
 0x192   : > { %v5220_v42 = vpop.f32.mrf.mxu0  ;;  %1473 = vmatmul.mubr.f32.gmra.mxu0 %v7818_v41  ;;  %2256 = vmatprep.subr.mxu0 %v1987_v18  ;;  %v2163_v18 = vld [vmem:[#allocation8 + $0x7a8] sm:$0xff]  ;;  %v7830_v28 = vld [vmem:[#allocation60_spill] sm:$0xff]  ;;  %v742_v41 = vlaneseq }
 0x193   : > { %1478 = vmatprep.mubr.f32.mxu0 %v7819_v50  ;;  %2257 = vmatpush2.msra.mxu0 %v1986_v31  ;;  %v5224_v52 = vpop.f32.mrf.mxu1  ;;  %v2159_v50 = vld [vmem:[#allocation8 + $0x788] sm:$0xff] }
 0x194   : > { %1730 = vmatmul.mubr.f32.gmra.mxu1 %v7820_v58  ;;  %v5227_v60 = vpop.f32.mrf.mxu0  ;;  %2258 = vmatprep.subr.mxu0 %v1983_v34  ;;  %v2162_v34 = vld [vmem:[#allocation8 + $0x7a0] sm:$0xff]  ;;  %v7832_v58 = vld [vmem:[#allocation62_spill] sm:$0xff] }
 0x195   : > { %1735 = vmatprep.mubr.f32.mxu1 %v7821_v1  ;;  %2479 = vmatprep.subr.mxu1 %v2055_v47  ;;  %v5230_v13 = vpop.f32.mrf.mxu1  ;;  %v7831_v47 = vld [vmem:[#allocation63_spill] sm:$0xff]  ;;  %v2158_v1 = vld [vmem:[#allocation8 + $0x780] sm:$0xff] }
 0x196   : > { %v5232_v22 = vpop.f32.mrf.mxu0  ;;  %1479 = vmatmul.mubr.f32.gmra.mxu0 %v7822_v16  ;;  %2480 = vmatpush1.msra.mxu1 %v2054_v55  ;;  %v2155_v16 = vld [vmem:[#allocation8 + $0x768] sm:$0xff] }
 0x197   : > { %1484 = vmatprep.mubr.f32.mxu0 %v7823_v32  ;;  %2259 = vmatpush2.msra.mxu0 %v1982_v2  ;;  %v5236_v43 = vpop.f32.mrf.mxu1 }
 0x198   : > { %1736 = vmatmul.mubr.f32.gmra.mxu1 %v7824_v54  ;;  %v5239_v61 = vpop.f32.mrf.mxu0  ;;  %2481 = vmatprep.subr.mxu1 %v2051_v8  ;;  %v7833_v8 = vld [vmem:[#allocation65_spill] sm:$0xff]  ;;  %v2154_v54 = vld [vmem:[#allocation8 + $0x760] sm:$0xff] }
 0x199   : > { %1741 = vmatprep.mubr.f32.mxu1 %v7825_v46  ;;  %2482 = vmatpush1.msra.mxu1 %v2050_v29  ;;  %v5242_v51 = vpop.f32.mrf.mxu1  ;;  %v7836_v46 = vld [vmem:[#allocation67_spill] sm:$0xff] }
 0x19a   : > { %v5244_v14 = vpop.f32.mrf.mxu0  ;;  %1485 = vmatmul.mubr.f32.gmra.mxu0 %v7826_v53  ;;  %2483 = vmatprep.subr.mxu1 %v2047_v45  ;;  %v7834_v45 = vld [vmem:[#allocation64_spill] sm:$0xff] }
 0x19b   : > { %1490 = vmatprep.mubr.f32.mxu0 %v7827_v24  ;;  %2484 = vmatpush1.msra.mxu1 %v2046_v6  ;;  %v5248_v35 = vpop.f32.mrf.mxu1  ;;  %v5271_v6 = vshrl.u32 %v742_v41, 7  ;;  %v2146_v41 = vld [vmem:[#allocation8 + $0x720] sm:$0xff] }
 0x19c   : > { %1742 = vmatmul.mubr.f32.gmra.mxu1 %v7828_v62  ;;  %v5251_v10 = vpop.f32.mrf.mxu0  ;;  %2485 = vmatprep.subr.mxu1 %v2171_v0  ;;  %v2151_v0 = vld [vmem:[#allocation8 + $0x748] sm:$0xff] }
 0x19d   : > { %1747 = vmatprep.mubr.f32.mxu1 %v7829_v12  ;;  %2486 = vmatpush2.msra.mxu1 %v2170_v37  ;;  %v5254_v23 = vpop.f32.mrf.mxu1  ;;  %7835 = vst [vmem:[#allocation17_spill] sm:$0xff] %v5271_v6  ;;  %v7837_v37 = vld [vmem:[#allocation66_spill] sm:$0xff]  ;;  %v7549_v62 = vsub.s32 1, %v5271_v6  ;;  %v2147_v12 = vld [vmem:[#allocation8 + $0x728] sm:$0xff] }
 0x19e   : > { %v5256_v31 = vpop.f32.mrf.mxu0  ;;  %1491 = vmatmul.mubr.f32.gmra.mxu0 %v7830_v28  ;;  %2487 = vmatprep.subr.mxu1 %v2167_v30  ;;  %v2150_v30 = vld [vmem:[#allocation8 + $0x740] sm:$0xff] }
 0x19f   : > { %1496 = vmatprep.mubr.f32.mxu0 %v7831_v47  ;;  %2488 = vmatpush2.msra.mxu1 %v2166_v56  ;;  %v5260_v55 = vpop.f32.mrf.mxu1  ;;  %v7838_v56 = vld [vmem:[#allocation69_spill] sm:$0xff]  ;;  %v7840_v47 = vld [vmem:[#allocation71_spill] sm:$0xff] }
 0x1a0   : > { %1748 = vmatmul.mubr.f32.gmra.mxu1 %v7832_v58  ;;  %v5263_v2 = vpop.f32.mrf.mxu0  ;;  %2489 = vmatprep.subr.mxu1 %v2163_v18  ;;  %v5287_v58 = vld [vmem:[#allocation7] sm:$0xf] }
 0x1a1   : > { %1753 = vmatprep.mubr.f32.mxu1 %v7833_v8  ;;  %2490 = vmatpush2.msra.mxu1 %v2162_v34  ;;  %v5266_v29 = vpop.f32.mrf.mxu1  ;;  %v7839_v34 = vld [vmem:[#allocation68_spill] sm:$0xff]  ;;  %7841 = vst [vmem:[#allocation16_spill] sm:$0xff] %v5287_v58 }
 0x1a2   : > { %v5268_v32 = vpop.f32.mrf.mxu0  ;;  %1497 = vmatmul.mubr.f32.gmra.mxu0 %v7834_v45  ;;  %2491 = vmatprep.subr.mxu1 %v2159_v50  ;;  %v2143_v50 = vld [vmem:[#allocation8 + $0x708] sm:$0xff] }
 0x1a3   : > { %1502 = vmatprep.mubr.f32.mxu0 %v7836_v46  ;;  %2492 = vmatpush2.msra.mxu1 %v2158_v1  ;;  %v5274_v53 = vpop.f32.mrf.mxu1  ;;  %v7552_v1 = vsub.s32 0, %v5271_v6  ;;  %v5298_v46 = vrot.slane %v5287_v58, %v7549_v62 }
 0x1a4   : > { %1754 = vmatmul.mubr.f32.gmra.mxu1 %v7837_v37  ;;  %v5277_v24 = vpop.f32.mrf.mxu0  ;;  %2493 = vmatprep.subr.mxu1 %v2155_v16  ;;  %v7843_v16 = vld [vmem:[#allocation70_spill] sm:$0xff]  ;;  %v2139_v37 = vld [vmem:[#allocation8 + $0x6e8] sm:$0xff] }
 0x1a5   : > { %1759 = vmatprep.mubr.f32.mxu1 %v7838_v56  ;;  %2494 = vmatpush2.msra.mxu1 %v2154_v54  ;;  %v5281_v18 = vpop.f32.mrf.mxu1  ;;  %v2142_v54 = vld [vmem:[#allocation8 + $0x700] sm:$0xff]  ;;  %v5310_v62 = vrot.slane %v5287_v58, %v7552_v1 }
 0x1a6   : > { %v5283_v28 = vpop.f32.mrf.mxu0  ;;  %1503 = vmatmul.mubr.f32.gmra.mxu0 %v7839_v34  ;;  %2495 = vmatprep.subr.mxu1 %v2151_v0  ;;  %v7844_v0 = vld [vmem:[#allocation73_spill] sm:$0xff]  ;;  %v7846_v34 = vld [vmem:[#allocation72_spill] sm:$0xff] }
 0x1a7   : > { %1508 = vmatprep.mubr.f32.mxu0 %v7840_v47  ;;  %2496 = vmatpush2.msra.mxu1 %v2150_v30  ;;  %v5290_v8 = vpop.f32.mrf.mxu1  ;;  %v2138_v47 = vld [vmem:[#allocation8 + $0x6e0] sm:$0xff] }
 0x1a8   : > { %7842 = vst [vmem:[#allocation19_spill] sm:$0xff] %v5290_v8  ;;  %1760 = vmatmul.mubr.f32.gmra.mxu1 %v7843_v16  ;;  %v5293_v45 = vpop.f32.mrf.mxu0  ;;  %2497 = vmatprep.subr.mxu1 %v2147_v12  ;;  %v7847_v16 = vld [vmem:[#allocation75_spill] sm:$0xff]  ;;  %v2135_v12 = vld [vmem:[#allocation8 + $0x6c8] sm:$0xff]  ;;  %v7853_v1 = vld [vmem:[#allocation76_spill] sm:$0xff] }
 0x1a9   : > { %1765 = vmatprep.mubr.f32.mxu1 %v7844_v0  ;;  %2498 = vmatpush2.msra.mxu1 %v2146_v41  ;;  %v5301_v30 = vpop.f32.mrf.mxu1  ;;  %v7849_v41 = vld [vmem:[#allocation74_spill] sm:$0xff]  ;;  %v2130_v58 = vld [vmem:[#allocation8 + $0x6a0] sm:$0xff] }
 0x1aa   : > { %v5303_v56 = vpop.f32.mrf.mxu0  ;;  %1509 = vmatmul.mubr.f32.gmra.mxu0 %v7846_v34  ;;  %2499 = vmatprep.subr.mxu1 %v2143_v50  ;;  %v831_v50 = vadd.f32 %v5155_v25, %v5298_v46  ;;  %v7850_v34 = vld [vmem:[#allocation77_spill] sm:$0xff] }
 0x1ab   : > { %7845 = vst [vmem:[#allocation18_spill] sm:$0xff] %v5303_v56  ;;  %1514 = vmatprep.mubr.f32.mxu0 %v7847_v16  ;;  %2500 = vmatpush2.msra.mxu1 %v2142_v54  ;;  %v5312_v0 = vpop.f32.mrf.mxu1  ;;  %v2134_v56 = vld [vmem:[#allocation8 + $0x6c0] sm:$0xff]  ;;  %v2131_v54 = vld [vmem:[#allocation8 + $0x6a8] sm:$0xff] }
 0x1ac   : > { %7848 = vst [vmem:[#allocation21_spill] sm:$0xff] %v5312_v0  ;;  %1766 = vmatmul.mubr.f32.gmra.mxu1 %v7849_v41  ;;  %v5315_v8 = vpop.f32.mrf.mxu0  ;;  %2501 = vmatprep.subr.mxu1 %v2139_v37  ;;  %v7854_v41 = vld [vmem:[#allocation79_spill] sm:$0xff]  ;;  %v2127_v37 = vld [vmem:[#allocation8 + $0x688] sm:$0xff]  ;;  %v829_v0 = vadd.f32 %v5148_v15, %v5310_v62 }
 0x1ad   : > { %1771 = vmatprep.mubr.f32.mxu1 %v7850_v34  ;;  %2502 = vmatpush2.msra.mxu1 %v2138_v47  ;;  %v5320_v16 = vpop.f32.mrf.mxu1  ;;  %v7856_v34 = vld [vmem:[#allocation78_spill] sm:$0xff] }
 0x1ae   : > { %7851 = vst [vmem:[#allocation20_spill] sm:$0xff] %v5320_v16  ;;  %v5322_v6 = vpop.f32.mrf.mxu0  ;;  %1515 = vmatmul.mubr.f32.gmra.mxu0 %v7853_v1  ;;  %2503 = vmatprep.subr.mxu1 %v2135_v12  ;;  %v2126_v16 = vld [vmem:[#allocation8 + $0x680] sm:$0xff]  ;;  %v837_v1 = vadd.f32 %v5167_v49, %v5298_v46  ;;  %v7858_v12 = vld [vmem:[#allocation81_spill] sm:$0xff]  ;;  %v835_v49 = vadd.f32 %v5160_v39, %v5310_v62  ;;  %v1981_v39 = vld [vmem:[#allocation8 + $0x1f8] sm:$0xff] }
 0x1af   : > { %7852 = vst [vmem:[#allocation23_spill] sm:$0xff] %v5322_v6  ;;  %1520 = vmatprep.mubr.f32.mxu0 %v7854_v41  ;;  %2504 = vmatpush2.msra.mxu1 %v2134_v56  ;;  %v5328_v25 = vpop.f32.mrf.mxu1  ;;  %v5334_v6 = vadd.f32 %v5158_v33, %v831_v50  ;;  %v2123_v56 = vld [vmem:[#allocation8 + $0x668] sm:$0xff]  ;;  %v5346_v50 = vadd.f32 %v5152_v20, %v829_v0 }
 0x1b0   : > { %7855 = vst [vmem:[#allocation22_spill] sm:$0xff] %v5328_v25  ;;  %1772 = vmatmul.mubr.f32.gmra.mxu1 %v7856_v34  ;;  %v5331_v47 = vpop.f32.mrf.mxu0  ;;  %2505 = vmatprep.subr.mxu1 %v2131_v54  ;;  %v7860_v25 = vld [vmem:[#allocation80_spill] sm:$0xff]  ;;  %v7861_v54 = vld [vmem:[#allocation83_spill] sm:$0xff]  ;;  %v2119_v33 = vld [vmem:[#allocation8 + $0x648] sm:$0xff]  ;;  %v843_v20 = vadd.f32 %v5179_v11, %v5298_v46  ;;  %v5371_v11 = vadd.f32 %v5164_v44, %v835_v49 }
 0x1b1   : > { %7857 = vst [vmem:[#allocation25_spill] sm:$0xff] %v5334_v6  ;;  %1777 = vmatprep.mubr.f32.mxu1 %v7858_v12  ;;  %2506 = vmatpush2.msra.mxu1 %v2130_v58  ;;  %v5339_v41 = vpop.f32.mrf.mxu1  ;;  %v2122_v34 = vld [vmem:[#allocation8 + $0x660] sm:$0xff]  ;;  %7862 = vst [vmem:[#allocation27_spill] sm:$0xff] %v5346_v50  ;;  %v7864_v12 = vld [vmem:[#allocation82_spill] sm:$0xff]  ;;  %v849_v44 = vadd.f32 %v5191_v59, %v5298_v46 }
 0x1b2   : > { %7859 = vst [vmem:[#allocation24_spill] sm:$0xff] %v5339_v41  ;;  %v5341_v15 = vpop.f32.mrf.mxu0  ;;  %1521 = vmatmul.mubr.f32.gmra.mxu0 %v7860_v25  ;;  %2507 = vmatprep.subr.mxu1 %v2127_v37  ;;  %v2118_v25 = vld [vmem:[#allocation8 + $0x640] sm:$0xff]  ;;  %v7555_v37 = vmax.f32 %v5334_v6, 0.0  ;;  %v7866_v0 = vld [vmem:[#allocation85_spill] sm:$0xff]  ;;  %7868 = vst [vmem:[#allocation28_spill] sm:$0xff] %v5371_v11 }
 0x1b3   : > { %1526 = vmatprep.mubr.f32.mxu0 %v7861_v54  ;;  %2508 = vmatpush2.msra.mxu1 %v2126_v16  ;;  %v5350_v58 = vpop.f32.mrf.mxu1  ;;  %v5357_v54 = vadd.f32 %v5170_v57, %v837_v1  ;;  %v2114_v57 = vld [vmem:[#allocation8 + $0x620] sm:$0xff]  ;;  %v1977_v49 = vld [vmem:[#allocation8 + $0x1d8] sm:$0xff]  ;;  %v2111_v1 = vld [vmem:[#allocation8 + $0x608] sm:$0xff] }
 0x1b4   : > { %7863 = vst [vmem:[#allocation26_spill] sm:$0xff] %v5350_v58  ;;  %1778 = vmatmul.mubr.f32.gmra.mxu1 %v7864_v12  ;;  %v5353_v41 = vpop.f32.mrf.mxu0  ;;  %2509 = vmatprep.subr.mxu1 %v2123_v56  ;;  %v7867_v12 = vld [vmem:[#allocation84_spill] sm:$0xff]  ;;  %v2115_v56 = vld [vmem:[#allocation8 + $0x628] sm:$0xff] }
 0x1b5   : > { %7865 = vst [vmem:[#allocation29_spill] sm:$0xff] %v5357_v54  ;;  %1783 = vmatprep.mubr.f32.mxu1 %v7866_v0  ;;  %2510 = vmatpush2.msra.mxu1 %v2122_v34  ;;  %v5362_v16 = vpop.f32.mrf.mxu1  ;;  %v841_v34 = vadd.f32 %v5172_v63, %v5310_v62 }
 0x1b6   : > { %v5364_v58 = vpop.f32.mrf.mxu0  ;;  %1527 = vmatmul.mubr.f32.gmra.mxu0 %v7867_v12  ;;  %2511 = vmatprep.subr.mxu1 %v2119_v33  ;;  %v1980_v33 = vld [vmem:[#allocation8 + $0x1f0] sm:$0xff] }
 0x1b7   : > { %2260 = vmatprep.mubr.f32.mxu0 %v7555_v37  ;;  %2512 = vmatpush2.msra.mxu1 %v2118_v25  ;;  %v5375_v0 = vpop.f32.mrf.mxu1  ;;  %v7558_v37 = vmax.f32 %v5357_v54, 0.0  ;;  %v5382_v25 = vadd.f32 %v5182_v27, %v843_v20  ;;  %v1973_v27 = vld [vmem:[#allocation8 + $0x1b8] sm:$0xff]  ;;  %v5396_v20 = vadd.f32 %v5176_v4, %v841_v34 }
 0x1b8   : > { %7869 = vst [vmem:[#allocation31_spill] sm:$0xff] %v5375_v0  ;;  %1784 = vmatmul.mubr.f32.gmra.mxu1 %v5077_v3  ;;  %v5378_v12 = vpop.f32.mrf.mxu0  ;;  %2710 = vmatprep.subr.mxu0 %v1981_v39  ;;  %v7872_v3 = vmax.f32 %v5346_v50, 0.0  ;;  %v1976_v39 = vld [vmem:[#allocation8 + $0x1d0] sm:$0xff]  ;;  %v2110_v0 = vld [vmem:[#allocation8 + $0x600] sm:$0xff]  ;;  %v1969_v4 = vld [vmem:[#allocation8 + $0x198] sm:$0xff] }
 0x1b9   : > { %7870 = vst [vmem:[#allocation30_spill] sm:$0xff] %v5382_v25  ;;  %2513 = vmatprep.subr.mxu1 %v2115_v56  ;;  %v5386_v63 = vpop.f32.mrf.mxu1  ;;  %7873 = vst [vmem:[#allocation32_spill] sm:$0xff] %v5396_v20  ;;  %v847_v56 = vadd.f32 %v5184_v38, %v5310_v62  ;;  %v2109_v34 = vld [vmem:[#allocation8 + $0x5f8] sm:$0xff] }
 0x1ba   : > { %v5388_v6 = vpop.f32.mrf.mxu0  ;;  %2261 = vmatmul.mubr.f32.vlgmr.msra.gmra.mxu0 %v7872_v3  ;;  %2514 = vmatpush2.msra.mxu1 %v2114_v57  ;;  %v1972_v57 = vld [vmem:[#allocation8 + $0x1b0] sm:$0xff]  ;;  %v7560_v3 = vmax.f32 %v5382_v25, 0.0 }
 0x1bb   : > { %7871 = vst [vmem:[#allocation33_spill] sm:$0xff] %v5388_v6  ;;  %2266 = vmatprep.mubr.f32.mxu0 %v7558_v37  ;;  %2711 = vmatpush1.msra.mxu0 %v1980_v33  ;;  %v5400_v6 = vpop.f32.mrf.mxu1  ;;  %v5406_v33 = vadd.f32 %v5194_v5, %v849_v44  ;;  %v855_v37 = vadd.f32 %v5203_v21, %v5298_v46  ;;  %v1965_v5 = vld [vmem:[#allocation8 + $0x178] sm:$0xff]  ;;  %v7562_v21 = vmax.f32 %v5396_v20, 0.0 }
 0x1bc   : > { %v5402_v50 = vpop.f32.mrf.mxu0  ;;  %2712 = vmatprep.subr.mxu0 %v1977_v49  ;;  %2515 = vmatprep.subr.mxu1 %v2111_v1  ;;  %v7875_v49 = vmax.f32 %v5371_v11, 0.0  ;;  %v1968_v1 = vld [vmem:[#allocation8 + $0x190] sm:$0xff]  ;;  %v5420_v44 = vadd.f32 %v5188_v48, %v847_v56  ;;  %v1961_v48 = vld [vmem:[#allocation8 + $0x158] sm:$0xff] }
 0x1bd   : > { %7874 = vst [vmem:[#allocation35_spill] sm:$0xff] %v5406_v33  ;;  %2713 = vmatpush1.msra.mxu0 %v1976_v39  ;;  %2516 = vmatpush2.msra.mxu1 %v2110_v0  ;;  %v5410_v38 = vpop.f32.mrf.mxu1  ;;  %v853_v0 = vadd.f32 %v5196_v19, %v5310_v62 }
 0x1be   : > { %v5412_v59 = vpop.f32.mrf.mxu0  ;;  %2267 = vmatmul.mubr.f32.gmra.mxu0 %v7875_v49  ;;  %2714 = vmatprep.subr.mxu0 %v1973_v27  ;;  %7876 = vst [vmem:[#allocation34_spill] sm:$0xff] %v5420_v44  ;;  %v1964_v27 = vld [vmem:[#allocation8 + $0x170] sm:$0xff]  ;;  %v7563_v49 = vmax.f32 %v5406_v33, 0.0 }
 0x1bf   : > { %2272 = vmatprep.mubr.f32.mxu0 %v7560_v3  ;;  %2715 = vmatpush1.msra.mxu0 %v1972_v57  ;;  %v5424_v39 = vpop.f32.mrf.mxu1  ;;  %v5430_v57 = vadd.f32 %v5206_v7, %v855_v37  ;;  %v861_v3 = vadd.f32 %v5215_v26, %v5298_v46  ;;  %v1957_v7 = vld [vmem:[#allocation8 + $0x138] sm:$0xff]  ;;  %v5444_v26 = vadd.f32 %v5200_v9, %v853_v0 }
 0x1c0   : > { %v5426_v54 = vpop.f32.mrf.mxu0  ;;  %2716 = vmatprep.subr.mxu0 %v1969_v4  ;;  %2967 = vmatprep.subr.mxu1 %v2109_v34  ;;  %v1960_v4 = vld [vmem:[#allocation8 + $0x150] sm:$0xff]  ;;  %v859_v34 = vadd.f32 %v5208_v40, %v5310_v62  ;;  %v1953_v9 = vld [vmem:[#allocation8 + $0x118] sm:$0xff]  ;;  %v7880_v40 = vmax.f32 %v5420_v44, 0.0 }
 0x1c1   : > { %7877 = vst [vmem:[#allocation37_spill] sm:$0xff] %v5430_v57  ;;  %2717 = vmatpush1.msra.mxu0 %v1968_v1  ;;  %v5434_v56 = vpop.f32.mrf.mxu1  ;;  %7878 = vst [vmem:[#allocation36_spill] sm:$0xff] %v5444_v26 }
 0x1c2   : > { %v5436_v19 = vpop.f32.mrf.mxu0  ;;  %2273 = vmatmul.mubr.f32.gmra.mxu0 %v7562_v21  ;;  %2718 = vmatprep.subr.mxu0 %v1965_v5  ;;  %v1956_v5 = vld [vmem:[#allocation8 + $0x130] sm:$0xff]  ;;  %v7566_v21 = vmax.f32 %v5430_v57, 0.0 }
 0x1c3   : > { %2278 = vmatprep.mubr.f32.mxu0 %v7563_v49  ;;  %2719 = vmatpush1.msra.mxu0 %v1964_v27  ;;  %v5448_v1 = vpop.f32.mrf.mxu1  ;;  %v5454_v49 = vadd.f32 %v5218_v36, %v861_v3  ;;  %v867_v27 = vadd.f32 %v5227_v60, %v5298_v46  ;;  %v1949_v36 = vld [vmem:[#allocation8 + $0xf8] sm:$0xff]  ;;  %v5468_v60 = vadd.f32 %v5212_v17, %v859_v34 }
 0x1c4   : > { %v5450_v25 = vpop.f32.mrf.mxu0  ;;  %2720 = vmatprep.subr.mxu0 %v1961_v48  ;;  %v1952_v48 = vld [vmem:[#allocation8 + $0x110] sm:$0xff]  ;;  %v1945_v17 = vld [vmem:[#allocation8 + $0xd8] sm:$0xff] }
 0x1c5   : > { %7879 = vst [vmem:[#allocation39_spill] sm:$0xff] %v5454_v49  ;;  %2721 = vmatpush1.msra.mxu0 %v1960_v4  ;;  %v5458_v0 = vpop.f32.mrf.mxu1  ;;  %7881 = vst [vmem:[#allocation38_spill] sm:$0xff] %v5468_v60  ;;  %v865_v4 = vadd.f32 %v5220_v42, %v5310_v62  ;;  %v7883_v42 = vmax.f32 %v5444_v26, 0.0 }
 0x1c6   : > { %v5460_v37 = vpop.f32.mrf.mxu0  ;;  %2279 = vmatmul.mubr.f32.gmra.mxu0 %v7880_v40  ;;  %2722 = vmatprep.subr.mxu0 %v1957_v7  ;;  %v1948_v7 = vld [vmem:[#allocation8 + $0xf0] sm:$0xff]  ;;  %v7569_v40 = vmax.f32 %v5454_v49, 0.0 }
 0x1c7   : > { %2284 = vmatprep.mubr.f32.mxu0 %v7566_v21  ;;  %2723 = vmatpush1.msra.mxu0 %v1956_v5  ;;  %v5472_v33 = vpop.f32.mrf.mxu1  ;;  %v5478_v21 = vadd.f32 %v5230_v13, %v867_v27  ;;  %v873_v5 = vadd.f32 %v5239_v61, %v5298_v46  ;;  %v1941_v13 = vld [vmem:[#allocation8 + $0xb8] sm:$0xff]  ;;  %v5492_v61 = vadd.f32 %v5224_v52, %v865_v4 }
 0x1c8   : > { %v5474_v20 = vpop.f32.mrf.mxu0  ;;  %2724 = vmatprep.subr.mxu0 %v1953_v9  ;;  %v1944_v9 = vld [vmem:[#allocation8 + $0xd0] sm:$0xff]  ;;  %v1937_v52 = vld [vmem:[#allocation8 + $0x98] sm:$0xff] }
 0x1c9   : > { %7882 = vst [vmem:[#allocation41_spill] sm:$0xff] %v5478_v21  ;;  %2725 = vmatpush1.msra.mxu0 %v1952_v48  ;;  %v5482_v34 = vpop.f32.mrf.mxu1  ;;  %7884 = vst [vmem:[#allocation40_spill] sm:$0xff] %v5492_v61  ;;  %v871_v48 = vadd.f32 %v5232_v22, %v5310_v62  ;;  %v7886_v22 = vmax.f32 %v5468_v60, 0.0 }
 0x1ca   : > { %v5484_v3 = vpop.f32.mrf.mxu0  ;;  %2285 = vmatmul.mubr.f32.gmra.mxu0 %v7883_v42  ;;  %2726 = vmatprep.subr.mxu0 %v1949_v36  ;;  %v1940_v36 = vld [vmem:[#allocation8 + $0xb0] sm:$0xff]  ;;  %v7572_v42 = vmax.f32 %v5478_v21, 0.0 }
 0x1cb   : > { %2290 = vmatprep.mubr.f32.mxu0 %v7569_v40  ;;  %2727 = vmatpush1.msra.mxu0 %v1948_v7  ;;  %v5496_v57 = vpop.f32.mrf.mxu1  ;;  %v5502_v40 = vadd.f32 %v5242_v51, %v873_v5  ;;  %v879_v7 = vadd.f32 %v5251_v10, %v5298_v46  ;;  %v1933_v51 = vld [vmem:[#allocation8 + $0x78] sm:$0xff]  ;;  %v5516_v10 = vadd.f32 %v5236_v43, %v871_v48 }
 0x1cc   : > { %v5498_v44 = vpop.f32.mrf.mxu0  ;;  %2728 = vmatprep.subr.mxu0 %v1945_v17  ;;  %v1936_v17 = vld [vmem:[#allocation8 + $0x90] sm:$0xff]  ;;  %v1929_v43 = vld [vmem:[#allocation8 + $0x58] sm:$0xff] }
 0x1cd   : > { %7885 = vst [vmem:[#allocation43_spill] sm:$0xff] %v5502_v40  ;;  %2729 = vmatpush1.msra.mxu0 %v1944_v9  ;;  %v5506_v4 = vpop.f32.mrf.mxu1  ;;  %7887 = vst [vmem:[#allocation42_spill] sm:$0xff] %v5516_v10  ;;  %v877_v9 = vadd.f32 %v5244_v14, %v5310_v62  ;;  %v7889_v14 = vmax.f32 %v5492_v61, 0.0 }
 0x1ce   : > { %v5508_v27 = vpop.f32.mrf.mxu0  ;;  %2291 = vmatmul.mubr.f32.gmra.mxu0 %v7886_v22  ;;  %2730 = vmatprep.subr.mxu0 %v1941_v13  ;;  %v1932_v13 = vld [vmem:[#allocation8 + $0x70] sm:$0xff]  ;;  %v7575_v22 = vmax.f32 %v5502_v40, 0.0 }
 0x1cf   : > { %2296 = vmatprep.mubr.f32.mxu0 %v7572_v42  ;;  %2731 = vmatpush1.msra.mxu0 %v1940_v36  ;;  %v5520_v49 = vpop.f32.mrf.mxu1  ;;  %v5526_v42 = vadd.f32 %v5254_v23, %v879_v7  ;;  %v885_v36 = vadd.f32 %v5263_v2, %v5298_v46  ;;  %v1925_v23 = vld [vmem:[#allocation8 + $0x38] sm:$0xff]  ;;  %v5540_v2 = vadd.f32 %v5248_v35, %v877_v9 }
 0x1d0   : > { %v5522_v26 = vpop.f32.mrf.mxu0  ;;  %2732 = vmatprep.subr.mxu0 %v1937_v52  ;;  %v1928_v52 = vld [vmem:[#allocation8 + $0x50] sm:$0xff]  ;;  %v1921_v35 = vld [vmem:[#allocation8 + $0x18] sm:$0xff] }
 0x1d1   : > { %7888 = vst [vmem:[#allocation45_spill] sm:$0xff] %v5526_v42  ;;  %2733 = vmatpush1.msra.mxu0 %v1936_v17  ;;  %v5530_v48 = vpop.f32.mrf.mxu1  ;;  %7890 = vst [vmem:[#allocation44_spill] sm:$0xff] %v5540_v2  ;;  %v883_v17 = vadd.f32 %v5256_v31, %v5310_v62  ;;  %v7892_v31 = vmax.f32 %v5516_v10, 0.0 }
 0x1d2   : > { %v5532_v5 = vpop.f32.mrf.mxu0  ;;  %2297 = vmatmul.mubr.f32.gmra.mxu0 %v7889_v14  ;;  %2734 = vmatprep.subr.mxu0 %v1933_v51  ;;  %v1924_v51 = vld [vmem:[#allocation8 + $0x30] sm:$0xff]  ;;  %v7578_v14 = vmax.f32 %v5526_v42, 0.0 }
 0x1d3   : > { %2302 = vmatprep.mubr.f32.mxu0 %v7575_v22  ;;  %2735 = vmatpush1.msra.mxu0 %v1932_v13  ;;  %v5544_v21 = vpop.f32.mrf.mxu1  ;;  %v5550_v22 = vadd.f32 %v5266_v29, %v885_v36  ;;  %v891_v13 = vadd.f32 %v5277_v24, %v5298_v46  ;;  %v2045_v29 = vld [vmem:[#allocation8 + $0x3f8] sm:$0xff]  ;;  %v5564_v24 = vadd.f32 %v5260_v55, %v883_v17 }
 0x1d4   : > { %v5546_v60 = vpop.f32.mrf.mxu0  ;;  %2736 = vmatprep.subr.mxu0 %v1929_v43  ;;  %v1920_v43 = vld [vmem:[#allocation8 + $0x10] sm:$0xff]  ;;  %v2041_v55 = vld [vmem:[#allocation8 + $0x3d8] sm:$0xff] }
 0x1d5   : > { %7891 = vst [vmem:[#allocation47_spill] sm:$0xff] %v5550_v22  ;;  %2737 = vmatpush1.msra.mxu0 %v1928_v52  ;;  %v5554_v9 = vpop.f32.mrf.mxu1  ;;  %7893 = vst [vmem:[#allocation46_spill] sm:$0xff] %v5564_v24  ;;  %v889_v52 = vadd.f32 %v5268_v32, %v5310_v62  ;;  %v7895_v32 = vmax.f32 %v5540_v2, 0.0 }
 0x1d6   : > { %v5556_v7 = vpop.f32.mrf.mxu0  ;;  %2303 = vmatmul.mubr.f32.gmra.mxu0 %v7892_v31  ;;  %2738 = vmatprep.subr.mxu0 %v1925_v23  ;;  %v2044_v23 = vld [vmem:[#allocation8 + $0x3f0] sm:$0xff]  ;;  %v7581_v31 = vmax.f32 %v5550_v22, 0.0  ;;  %v7900_v22 = vld [vmem:[#allocation19_spill] sm:$0xff] }
 0x1d7   : > { %2308 = vmatprep.mubr.f32.mxu0 %v7578_v14  ;;  %2739 = vmatpush1.msra.mxu0 %v1924_v51  ;;  %v5568_v40 = vpop.f32.mrf.mxu1  ;;  %v5574_v14 = vadd.f32 %v5281_v18, %v891_v13  ;;  %v897_v51 = vadd.f32 %v5293_v45, %v5298_v46  ;;  %v2037_v18 = vld [vmem:[#allocation8 + $0x3b8] sm:$0xff]  ;;  %v5588_v45 = vadd.f32 %v5274_v53, %v889_v52 }
 0x1d8   : > { %v5570_v61 = vpop.f32.mrf.mxu0  ;;  %2740 = vmatprep.subr.mxu0 %v1921_v35  ;;  %v2040_v35 = vld [vmem:[#allocation8 + $0x3d0] sm:$0xff]  ;;  %v2033_v53 = vld [vmem:[#allocation8 + $0x398] sm:$0xff] }
 0x1d9   : > { %7894 = vst [vmem:[#allocation49_spill] sm:$0xff] %v5574_v14  ;;  %2741 = vmatpush1.msra.mxu0 %v1920_v43  ;;  %v5578_v17 = vpop.f32.mrf.mxu1  ;;  %7896 = vst [vmem:[#allocation48_spill] sm:$0xff] %v5588_v45  ;;  %v895_v43 = vadd.f32 %v5283_v28, %v5310_v62  ;;  %v7899_v28 = vmax.f32 %v5564_v24, 0.0  ;;  %v7909_v24 = vld [vmem:[#allocation21_spill] sm:$0xff] }
 0x1da   : > { %v5580_v36 = vpop.f32.mrf.mxu0  ;;  %2309 = vmatmul.mubr.f32.gmra.mxu0 %v7895_v32  ;;  %2742 = vmatprep.subr.mxu0 %v2045_v29  ;;  %v2036_v29 = vld [vmem:[#allocation8 + $0x3b0] sm:$0xff]  ;;  %v7586_v32 = vmax.f32 %v5574_v14, 0.0  ;;  %v7904_v14 = vld [vmem:[#allocation20_spill] sm:$0xff] }
 0x1db   : > { %2314 = vmatprep.mubr.f32.mxu0 %v7581_v31  ;;  %2743 = vmatpush2.msra.mxu0 %v2044_v23  ;;  %v5592_v42 = vpop.f32.mrf.mxu1  ;;  %v5598_v31 = vadd.f32 %v5301_v30, %v897_v51  ;;  %v903_v23 = vadd.f32 %v5315_v8, %v5298_v46  ;;  %v2029_v30 = vld [vmem:[#allocation8 + $0x378] sm:$0xff]  ;;  %v5612_v8 = vadd.f32 %v7900_v22, %v895_v43 }
 0x1dc   : > { %v5594_v10 = vpop.f32.mrf.mxu0  ;;  %2744 = vmatprep.subr.mxu0 %v2041_v55  ;;  %v2032_v55 = vld [vmem:[#allocation8 + $0x390] sm:$0xff]  ;;  %v2025_v22 = vld [vmem:[#allocation8 + $0x358] sm:$0xff] }
 0x1dd   : > { %7897 = vst [vmem:[#allocation51_spill] sm:$0xff] %v5598_v31  ;;  %2745 = vmatpush2.msra.mxu0 %v2040_v35  ;;  %v5602_v52 = vpop.f32.mrf.mxu1  ;;  %7901 = vst [vmem:[#allocation53_spill] sm:$0xff] %v5612_v8  ;;  %v7902_v35 = vld [vmem:[#allocation18_spill] sm:$0xff] }
 0x1de   : > { %v5604_v13 = vpop.f32.mrf.mxu0  ;;  %2315 = vmatmul.mubr.f32.gmra.mxu0 %v7899_v28  ;;  %2746 = vmatprep.subr.mxu0 %v2037_v18  ;;  %v901_v2 = vadd.f32 %v7902_v35, %v5310_v62  ;;  %v2028_v18 = vld [vmem:[#allocation8 + $0x370] sm:$0xff]  ;;  %v7589_v28 = vmax.f32 %v5598_v31, 0.0  ;;  %v7908_v35 = vmax.f32 %v5588_v45, 0.0  ;;  %v7913_v31 = vld [vmem:[#allocation24_spill] sm:$0xff] }
 0x1df   : > { %7898 = vst [vmem:[#allocation50_spill] sm:$0xff] %v5604_v13  ;;  %2320 = vmatprep.mubr.f32.mxu0 %v7586_v32  ;;  %2747 = vmatpush2.msra.mxu0 %v2036_v29  ;;  %v5616_v11 = vpop.f32.mrf.mxu1  ;;  %v5622_v32 = vadd.f32 %v7904_v14, %v903_v23  ;;  %v909_v29 = vadd.f32 %v5331_v47, %v5298_v46  ;;  %v2021_v14 = vld [vmem:[#allocation8 + $0x338] sm:$0xff]  ;;  %v7917_v45 = vld [vmem:[#allocation22_spill] sm:$0xff] }
 0x1e0   : > { %7903 = vst [vmem:[#allocation52_spill] sm:$0xff] %v5616_v11  ;;  %v5618_v13 = vpop.f32.mrf.mxu0  ;;  %2748 = vmatprep.subr.mxu0 %v2033_v53  ;;  %v2024_v53 = vld [vmem:[#allocation8 + $0x350] sm:$0xff]  ;;  %v5636_v47 = vadd.f32 %v7909_v24, %v901_v2  ;;  %v2017_v2 = vld [vmem:[#allocation8 + $0x318] sm:$0xff] }
 0x1e1   : > { %7905 = vst [vmem:[#allocation55_spill] sm:$0xff] %v5622_v32  ;;  %2749 = vmatpush2.msra.mxu0 %v2032_v55  ;;  %v5626_v43 = vpop.f32.mrf.mxu1  ;;  %v7911_v55 = vld [vmem:[#allocation23_spill] sm:$0xff] }
 0x1e2   : > { %7906 = vst [vmem:[#allocation54_spill] sm:$0xff] %v5626_v43  ;;  %v5628_v51 = vpop.f32.mrf.mxu0  ;;  %2321 = vmatmul.mubr.f32.gmra.mxu0 %v7908_v35  ;;  %2750 = vmatprep.subr.mxu0 %v2029_v30  ;;  %7910 = vst [vmem:[#allocation56_spill] sm:$0xff] %v5636_v47  ;;  %v907_v11 = vadd.f32 %v7911_v55, %v5310_v62  ;;  %v2020_v30 = vld [vmem:[#allocation8 + $0x330] sm:$0xff]  ;;  %v7591_v35 = vmax.f32 %v5622_v32, 0.0  ;;  %v7916_v55 = vmax.f32 %v5612_v8, 0.0 }
 0x1e3   : > { %7907 = vst [vmem:[#allocation57_spill] sm:$0xff] %v5628_v51  ;;  %2326 = vmatprep.mubr.f32.mxu0 %v7589_v28  ;;  %2751 = vmatpush2.msra.mxu0 %v2028_v18  ;;  %v5640_v43 = vpop.f32.mrf.mxu1  ;;  %v5646_v28 = vadd.f32 %v7913_v31, %v909_v29  ;;  %v915_v18 = vadd.f32 %v5353_v41, %v5298_v46  ;;  %v2013_v31 = vld [vmem:[#allocation8 + $0x2f8] sm:$0xff]  ;;  %v7922_v32 = vld [vmem:[#allocation26_spill] sm:$0xff] }
 0x1e4   : > { %7912 = vst [vmem:[#allocation59_spill] sm:$0xff] %v5640_v43  ;;  %v5642_v51 = vpop.f32.mrf.mxu0  ;;  %2752 = vmatprep.subr.mxu0 %v2025_v22  ;;  %v2016_v22 = vld [vmem:[#allocation8 + $0x310] sm:$0xff]  ;;  %v5660_v41 = vadd.f32 %v7917_v45, %v907_v11  ;;  %v2009_v11 = vld [vmem:[#allocation8 + $0x2d8] sm:$0xff] }
 0x1e5   : > { %7914 = vst [vmem:[#allocation58_spill] sm:$0xff] %v5646_v28  ;;  %2753 = vmatpush2.msra.mxu0 %v2024_v53  ;;  %v5650_v24 = vpop.f32.mrf.mxu1  ;;  %v913_v53 = vadd.f32 %v5341_v15, %v5310_v62  ;;  %v7921_v15 = vmax.f32 %v5636_v47, 0.0 }
 0x1e6   : > { %v5652_v23 = vpop.f32.mrf.mxu0  ;;  %2327 = vmatmul.mubr.f32.gmra.mxu0 %v7916_v55  ;;  %2754 = vmatprep.subr.mxu0 %v2021_v14  ;;  %7918 = vst [vmem:[#allocation60_spill] sm:$0xff] %v5660_v41  ;;  %v2012_v14 = vld [vmem:[#allocation8 + $0x2f0] sm:$0xff]  ;;  %v7594_v55 = vmax.f32 %v5646_v28, 0.0  ;;  %v7927_v28 = vld [vmem:[#allocation31_spill] sm:$0xff] }
 0x1e7   : > { %7915 = vst [vmem:[#allocation61_spill] sm:$0xff] %v5652_v23  ;;  %2332 = vmatprep.mubr.f32.mxu0 %v7591_v35  ;;  %2755 = vmatpush2.msra.mxu0 %v2020_v30  ;;  %v5664_v43 = vpop.f32.mrf.mxu1  ;;  %v5670_v35 = vadd.f32 %v5362_v16, %v915_v18  ;;  %v921_v30 = vadd.f32 %v5378_v12, %v5298_v46  ;;  %v2005_v16 = vld [vmem:[#allocation8 + $0x2b8] sm:$0xff] }
 0x1e8   : > { %v5666_v23 = vpop.f32.mrf.mxu0  ;;  %2756 = vmatprep.subr.mxu0 %v2017_v2  ;;  %v2008_v2 = vld [vmem:[#allocation8 + $0x2d0] sm:$0xff]  ;;  %v5684_v12 = vadd.f32 %v7922_v32, %v913_v53  ;;  %v2001_v32 = vld [vmem:[#allocation8 + $0x298] sm:$0xff] }
 0x1e9   : > { %7919 = vst [vmem:[#allocation63_spill] sm:$0xff] %v5670_v35  ;;  %2757 = vmatpush2.msra.mxu0 %v2016_v22  ;;  %v5674_v45 = vpop.f32.mrf.mxu1  ;;  %v919_v22 = vadd.f32 %v5364_v58, %v5310_v62  ;;  %v7926_v58 = vmax.f32 %v5660_v41, 0.0  ;;  %v931_v41 = vadd.f32 %v5412_v59, %v5310_v62 }
 0x1ea   : > { %v5676_v29 = vpop.f32.mrf.mxu0  ;;  %2333 = vmatmul.mubr.f32.gmra.mxu0 %v7921_v15  ;;  %2758 = vmatprep.subr.mxu0 %v2013_v31  ;;  %v2004_v31 = vld [vmem:[#allocation8 + $0x2b0] sm:$0xff]  ;;  %v7597_v15 = vmax.f32 %v5670_v35, 0.0  ;;  %v7933_v35 = vld [vmem:[#allocation17_spill] sm:$0xff] }
 0x1eb   : > { %7920 = vst [vmem:[#allocation62_spill] sm:$0xff] %v5676_v29  ;;  %2338 = vmatprep.mubr.f32.mxu0 %v7594_v55  ;;  %2759 = vmatpush2.msra.mxu0 %v2012_v14  ;;  %v5688_v8 = vpop.f32.mrf.mxu1  ;;  %v5694_v55 = vadd.f32 %v5386_v63, %v921_v30  ;;  %v927_v14 = vadd.f32 %v5402_v50, %v5298_v46  ;;  %v1997_v63 = vld [vmem:[#allocation8 + $0x278] sm:$0xff] }
 0x1ec   : > { %7923 = vst [vmem:[#allocation65_spill] sm:$0xff] %v5688_v8  ;;  %v5690_v29 = vpop.f32.mrf.mxu0  ;;  %2760 = vmatprep.subr.mxu0 %v2009_v11  ;;  %v2000_v11 = vld [vmem:[#allocation8 + $0x290] sm:$0xff]  ;;  %v5708_v50 = vadd.f32 %v7927_v28, %v919_v22  ;;  %v1993_v28 = vld [vmem:[#allocation8 + $0x258] sm:$0xff] }
 0x1ed   : > { %7924 = vst [vmem:[#allocation64_spill] sm:$0xff] %v5694_v55  ;;  %2761 = vmatpush2.msra.mxu0 %v2008_v2  ;;  %v5698_v53 = vpop.f32.mrf.mxu1  ;;  %v7929_v2 = vld [vmem:[#allocation33_spill] sm:$0xff] }
 0x1ee   : > { %v5700_v18 = vpop.f32.mrf.mxu0  ;;  %2339 = vmatmul.mubr.f32.gmra.mxu0 %v7926_v58  ;;  %2762 = vmatprep.subr.mxu0 %v2005_v16  ;;  %7928 = vst [vmem:[#allocation66_spill] sm:$0xff] %v5708_v50  ;;  %v925_v47 = vadd.f32 %v7929_v2, %v5310_v62  ;;  %v1996_v16 = vld [vmem:[#allocation8 + $0x270] sm:$0xff]  ;;  %v7600_v58 = vmax.f32 %v5694_v55, 0.0  ;;  %v7932_v2 = vmax.f32 %v5684_v12, 0.0  ;;  %v7934_v55 = vmax.f32 %v5708_v50, 0.0 }
 0x1ef   : > { %7925 = vst [vmem:[#allocation67_spill] sm:$0xff] %v5700_v18  ;;  %2344 = vmatprep.mubr.f32.mxu0 %v7597_v15  ;;  %2763 = vmatpush2.msra.mxu0 %v2004_v31  ;;  %v5712_v8 = vpop.f32.mrf.mxu1  ;;  %v5718_v15 = vadd.f32 %v5410_v38, %v927_v14  ;;  %v933_v31 = vadd.f32 %v5426_v54, %v5298_v46  ;;  %v1989_v14 = vld [vmem:[#allocation8 + $0x238] sm:$0xff] }
 0x1f0   : > { %v5714_v18 = vpop.f32.mrf.mxu0  ;;  %2764 = vmatprep.subr.mxu0 %v2001_v32  ;;  %v1992_v32 = vld [vmem:[#allocation8 + $0x250] sm:$0xff]  ;;  %v937_v50 = vadd.f32 %v5436_v19, %v5310_v62 }
 0x1f1   : > { %7930 = vst [vmem:[#allocation69_spill] sm:$0xff] %v5718_v15  ;;  %2765 = vmatpush2.msra.mxu0 %v2000_v11  ;;  %v5722_v22 = vpop.f32.mrf.mxu1  ;;  %v5733_v11 = vadd.f32 %v5400_v6, %v925_v47  ;;  %v5743_v38 = vadd.f32 %v5434_v56, %v933_v31  ;;  %v1985_v47 = vld [vmem:[#allocation8 + $0x218] sm:$0xff]  ;;  %v7935_v56 = vsub.s32 2, %v7933_v35  ;;  %v7936_v31 = vld [vmem:[#allocation16_spill] sm:$0xff]  ;;  %v5763_v6 = vadd.f32 %v5424_v39, %v931_v41 }
 0x1f2   : > { %v5724_v30 = vpop.f32.mrf.mxu0  ;;  %2345 = vmatmul.mubr.f32.gmra.mxu0 %v7932_v2  ;;  %2766 = vmatprep.subr.mxu0 %v1997_v63  ;;  %v1988_v63 = vld [vmem:[#allocation8 + $0x230] sm:$0xff] }
 0x1f3   : > { %7931 = vst [vmem:[#allocation68_spill] sm:$0xff] %v5724_v30  ;;  %2350 = vmatprep.mubr.f32.mxu0 %v7600_v58  ;;  %2767 = vmatpush2.msra.mxu0 %v1996_v16  ;;  %v5737_v30 = vpop.f32.mrf.mxu1  ;;  %v7603_v58 = vmax.f32 %v5718_v15, 0.0  ;;  %v939_v16 = vadd.f32 %v5450_v25, %v5298_v46  ;;  %v5759_v25 = vrot.slane %v7936_v31, %v7935_v56  ;;  %7937 = vst [vmem:[#allocation71_spill] sm:$0xff] %v5763_v6 }
 0x1f4   : > { %v5739_v2 = vpop.f32.mrf.mxu0  ;;  %2768 = vmatprep.subr.mxu0 %v1993_v28  ;;  %v1984_v28 = vld [vmem:[#allocation8 + $0x210] sm:$0xff]  ;;  %v7605_v56 = vmax.f32 %v5743_v38, 0.0 }
 0x1f5   : > { %2769 = vmatpush2.msra.mxu0 %v1992_v32  ;;  %v5748_v54 = vpop.f32.mrf.mxu1  ;;  %v7938_v32 = vsub.s32 3, %v7933_v35 }
 0x1f6   : > { %v5750_v59 = vpop.f32.mrf.mxu0  ;;  %2351 = vmatmul.mubr.f32.gmra.mxu0 %v7934_v55  ;;  %2770 = vmatprep.subr.mxu0 %v1989_v14  ;;  %v945_v55 = vadd.f32 %v5474_v20, %v5298_v46  ;;  %v7939_v20 = vmax.f32 %v5733_v11, 0.0 }
 0x1f7   : > { %2356 = vmatprep.mubr.f32.mxu0 %v7603_v58  ;;  %2771 = vmatpush2.msra.mxu0 %v1988_v63  ;;  %v5769_v14 = vpop.f32.mrf.mxu1  ;;  %v5775_v63 = vadd.f32 %v5458_v0, %v939_v16  ;;  %v5780_v39 = vrot.slane %v7936_v31, %v7938_v32  ;;  %v5791_v16 = vadd.f32 %v5448_v1, %v937_v50  ;;  %v7942_v50 = vmax.f32 %v5763_v6, 0.0 }
 0x1f8   : > { %v5771_v58 = vpop.f32.mrf.mxu0  ;;  %2772 = vmatprep.subr.mxu0 %v1985_v47  ;;  %v943_v47 = vadd.f32 %v5460_v37, %v5310_v62 }
 0x1f9   : > { %2773 = vmatpush2.msra.mxu0 %v1984_v28  ;;  %v5782_v19 = vpop.f32.mrf.mxu1  ;;  %7940 = vst [vmem:[#allocation70_spill] sm:$0xff] %v5791_v16  ;;  %v5796_v28 = vadd.f32 %v5482_v34, %v945_v55  ;;  %v7609_v55 = vmax.f32 %v5791_v16, 0.0 }
 0x1fa   : > { %v1342_v41 = vpop.f32.mrf.mxu0  ;;  %2357 = vmatmul.mubr.f32.gmra.mxu0 %v7939_v20  ;;  %v7608_v20 = vmax.f32 %v5775_v63, 0.0 }
 0x1fb   : > { %v1343_v15 = vadd.f32 %v1342_v41, %v5759_v25  ;;  %2362 = vmatprep.mubr.f32.mxu0 %v7605_v56  ;;  %7941 = vst [vmem:[#allocation73_spill] sm:$0xff] %v5796_v28  ;;  %v1599_v31 = vpop.f32.mrf.mxu1  ;;  %v951_v41 = vadd.f32 %v5498_v44, %v5298_v46  ;;  %v5813_v44 = vadd.f32 %v5472_v33, %v943_v47 }
 0x1fc   : > { %v1344_v32 = vpop.f32.mrf.mxu0 }
 0x1fd   : > { %v1345_v56 = vadd.f32 %v1344_v32, %v5780_v39  ;;  %v5802_v35 = vadd.f32 %v1599_v31, %v1343_v15  ;;  %v1601_v0 = vpop.f32.mrf.mxu1  ;;  %v949_v31 = vadd.f32 %v5484_v3, %v5310_v62  ;;  %v2108_v3 = vld [vmem:[#allocation8 + $0x5f0] sm:$0xff]  ;;  %v7946_v16 = vmax.f32 %v5813_v44, 0.0 }
 0x1fe   : > { %v1348_v1 = vpop.f32.mrf.mxu0  ;;  %2363 = vmatmul.mubr.f32.gmra.mxu0 %v7942_v50 }
 0x1ff   : > { %v5806_v37 = vadd.f32 %v1601_v0, %v1345_v56  ;;  %v1349_v34 = vadd.f32 %v1348_v1, %v5759_v25  ;;  %2368 = vmatprep.mubr.f32.mxu0 %v7608_v20  ;;  %v5819_v56 = vadd.f32 %v5506_v4, %v951_v41  ;;  %v957_v0 = vadd.f32 %v5522_v26, %v5298_v46 }
 0x200   : > { %v1605_v32 = vpop.f32.mrf.mxu1  ;;  %v1350_v6 = vpop.f32.mrf.mxu0  ;;  %v955_v4 = vadd.f32 %v5508_v27, %v5310_v62  ;;  %v7943_v1 = vmax.f32 %v5796_v28, 0.0  ;;  %v5841_v33 = vadd.f32 %v5496_v57, %v949_v31 }
 0x201   : > { %v1351_v50 = vadd.f32 %v1350_v6, %v5780_v39  ;;  %v5826_v47 = vadd.f32 %v1605_v32, %v1349_v34  ;;  %v7944_v6 = vmax.f32 %v5806_v37, 0.0  ;;  %v2105_v34 = vld [vmem:[#allocation8 + $0x5d8] sm:$0xff] }
 0x202   : > { %v1607_v20 = vpop.f32.mrf.mxu1  ;;  %v1354_v15 = vpop.f32.mrf.mxu0  ;;  %2369 = vmatmul.mubr.f32.gmra.mxu0 %v7609_v55  ;;  %v963_v55 = vadd.f32 %v5546_v60, %v5298_v46 }
 0x203   : > { %v5832_v41 = vadd.f32 %v1607_v20, %v1351_v50  ;;  %v1355_v26 = vadd.f32 %v1354_v15, %v5759_v25  ;;  %2374 = vmatprep.mubr.f32.mxu0 %v7943_v1  ;;  %2517 = vmatprep.mubr.f32.mxu1 %v7944_v6  ;;  %v7945_v50 = vmax.f32 %v5802_v35, 0.0  ;;  %v5849_v1 = vadd.f32 %v5530_v48, %v957_v0 }
 0x204   : > { %v1611_v27 = vpop.f32.mrf.mxu1  ;;  %v1356_v20 = vpop.f32.mrf.mxu0  ;;  %v7612_v57 = vmax.f32 %v5826_v47, 0.0  ;;  %v5859_v15 = vadd.f32 %v5520_v49, %v955_v4  ;;  %v969_v49 = vadd.f32 %v5570_v61, %v5298_v46  ;;  %v2100_v61 = vld [vmem:[#allocation8 + $0x5b0] sm:$0xff] }
 0x205   : > { %2518 = vmatmul.mubr.f32.vlgmr.msra.gmra.mxu1 %v7945_v50  ;;  %v7613_v6 = vmax.f32 %v5832_v41, 0.0  ;;  %v1357_v32 = vadd.f32 %v1356_v20, %v5780_v39  ;;  %v5854_v31 = vadd.f32 %v1611_v27, %v1355_v26  ;;  %v2104_v50 = vld [vmem:[#allocation8 + $0x5d0] sm:$0xff]  ;;  %v2101_v26 = vld [vmem:[#allocation8 + $0x5b8] sm:$0xff]  ;;  %v7615_v27 = vmax.f32 %v5841_v33, 0.0 }
 0x206   : > { %2968 = vmatpush1.msra.mxu1 %v2108_v3  ;;  %v1613_v60 = vpop.f32.mrf.mxu1  ;;  %v1360_v28 = vpop.f32.mrf.mxu0  ;;  %2375 = vmatmul.mubr.f32.gmra.mxu0 %v7946_v16  ;;  %v7947_v3 = vmax.f32 %v5819_v56, 0.0  ;;  %v961_v16 = vadd.f32 %v5532_v5, %v5310_v62 }
 0x207   : > { %2969 = vmatprep.subr.mxu1 %v2105_v34  ;;  %v5861_v48 = vadd.f32 %v1613_v60, %v1357_v32  ;;  %v1361_v0 = vadd.f32 %v1360_v28, %v5759_v25  ;;  %2523 = vmatprep.mubr.f32.mxu1 %v7613_v6  ;;  %v5872_v34 = vadd.f32 %v5554_v9, %v963_v55  ;;  %v7614_v32 = vmax.f32 %v5849_v1, 0.0 }
 0x208   : > { %2380 = vmatprep.mubr.f32.mxu0 %v7947_v3  ;;  %v1617_v4 = vpop.f32.mrf.mxu1  ;;  %v1362_v28 = vpop.f32.mrf.mxu0  ;;  %2970 = vmatpush1.msra.mxu1 %v2104_v50  ;;  %v7616_v5 = vmax.f32 %v5854_v31, 0.0 }
 0x209   : > { %2524 = vmatmul.mubr.f32.gmra.mxu1 %v7612_v57  ;;  %v1363_v60 = vadd.f32 %v1362_v28, %v5780_v39  ;;  %v5882_v3 = vadd.f32 %v1617_v4, %v1361_v0  ;;  %2971 = vmatprep.subr.mxu1 %v2101_v26  ;;  %v7618_v57 = vmax.f32 %v5859_v15, 0.0  ;;  %v7948_v50 = vmax.f32 %v5861_v48, 0.0  ;;  %v2097_v0 = vld [vmem:[#allocation8 + $0x598] sm:$0xff] }
 0x20a   : > { %v1619_v9 = vpop.f32.mrf.mxu1  ;;  %v1366_v55 = vpop.f32.mrf.mxu0  ;;  %2381 = vmatmul.mubr.f32.gmra.mxu0 %v7615_v27  ;;  %v5895_v4 = vadd.f32 %v5544_v21, %v961_v16  ;;  %v7617_v28 = vmax.f32 %v5872_v34, 0.0  ;;  %v967_v26 = vadd.f32 %v5556_v7, %v5310_v62  ;;  %2972 = vmatpush1.msra.mxu1 %v2100_v61  ;;  %v2093_v61 = vld [vmem:[#allocation8 + $0x578] sm:$0xff] }
 0x20b   : > { %v5887_v6 = vadd.f32 %v1619_v9, %v1363_v60  ;;  %v1367_v20 = vadd.f32 %v1366_v55, %v5759_v25  ;;  %2386 = vmatprep.mubr.f32.mxu0 %v7614_v32  ;;  %2529 = vmatprep.mubr.f32.mxu1 %v7948_v50  ;;  %v5901_v60 = vadd.f32 %v5578_v17, %v969_v49  ;;  %v7620_v16 = vmax.f32 %v5882_v3, 0.0  ;;  %v2096_v49 = vld [vmem:[#allocation8 + $0x590] sm:$0xff] }
 0x20c   : > { %7949 = vst [vmem:[#allocation72_spill] sm:$0xff] %v5895_v4  ;;  %v1623_v9 = vpop.f32.mrf.mxu1  ;;  %v1368_v55 = vpop.f32.mrf.mxu0  ;;  %v975_v50 = vadd.f32 %v5594_v10, %v5298_v46  ;;  %2973 = vmatprep.subr.mxu1 %v2097_v0  ;;  %v973_v0 = vadd.f32 %v5580_v36, %v5310_v62 }
 0x20d   : > { %7950 = vst [vmem:[#allocation75_spill] sm:$0xff] %v5901_v60  ;;  %2530 = vmatmul.mubr.f32.gmra.mxu1 %v7616_v5  ;;  %v7619_v32 = vmax.f32 %v5887_v6, 0.0  ;;  %v1369_v21 = vadd.f32 %v1368_v55, %v5780_v39  ;;  %v5910_v27 = vadd.f32 %v1623_v9, %v1367_v20  ;;  %v7623_v20 = vmax.f32 %v5895_v4, 0.0 }
 0x20e   : > { %v1625_v7 = vpop.f32.mrf.mxu1  ;;  %v1372_v17 = vpop.f32.mrf.mxu0  ;;  %2387 = vmatmul.mubr.f32.gmra.mxu0 %v7618_v57  ;;  %v5923_v9 = vadd.f32 %v5568_v40, %v967_v26  ;;  %v981_v40 = vadd.f32 %v5618_v13, %v5298_v46  ;;  %2974 = vmatpush1.msra.mxu1 %v2096_v49  ;;  %v2089_v49 = vld [vmem:[#allocation8 + $0x558] sm:$0xff] }
 0x20f   : > { %v5914_v5 = vadd.f32 %v1625_v7, %v1369_v21  ;;  %v1373_v10 = vadd.f32 %v1372_v17, %v5759_v25  ;;  %2392 = vmatprep.mubr.f32.mxu0 %v7617_v28  ;;  %2535 = vmatprep.mubr.f32.mxu1 %v7619_v32  ;;  %v7621_v17 = vmov 0.0   ;;  %v5932_v28 = vadd.f32 %v5602_v52, %v975_v50  ;;  %v2092_v52 = vld [vmem:[#allocation8 + $0x570] sm:$0xff] }
 0x210   : > { %v1629_v21 = vpop.f32.mrf.mxu1  ;;  %v1374_v7 = vpop.f32.mrf.mxu0  ;;  %3423 = vmatprep.subr.mxu0 %v7621_v17  ;;  %v7627_v36 = vmax.f32 %v5910_v27, 0.0  ;;  %2975 = vmatprep.subr.mxu1 %v2093_v61  ;;  %v7952_v17 = vmax.f32 %v5901_v60, 0.0  ;;  %v7958_v4 = vmax.f32 %v5923_v9, 0.0 }
 0x211   : > { %2536 = vmatmul.mubr.f32.gmra.mxu1 %v7620_v16  ;;  %7951 = vst [vmem:[#allocation74_spill] sm:$0xff] %v5932_v28  ;;  %v7624_v26 = vmax.f32 %v5914_v5, 0.0  ;;  %v1375_v57 = vadd.f32 %v1374_v7, %v5780_v39  ;;  %v5939_v32 = vadd.f32 %v1629_v21, %v1373_v10  ;;  %v5952_v21 = vadd.f32 %v5592_v42, %v973_v0  ;;  %v7954_v7 = vld [vmem:[#allocation50_spill] sm:$0xff] }
 0x212   : > { %v1631_v55 = vpop.f32.mrf.mxu1  ;;  %v1378_v16 = vpop.f32.mrf.mxu0  ;;  %2393 = vmatmul.mubr.f32.gmra.mxu0 %v7623_v20  ;;  %v979_v61 = vadd.f32 %v7954_v7, %v5310_v62  ;;  %v7955_v20 = vld [vmem:[#allocation54_spill] sm:$0xff]  ;;  %2976 = vmatpush1.msra.mxu1 %v2092_v52  ;;  %v2085_v52 = vld [vmem:[#allocation8 + $0x538] sm:$0xff] }
 0x213   : > { %v5943_v50 = vadd.f32 %v1631_v55, %v1375_v57  ;;  %v1379_v13 = vadd.f32 %v1378_v16, %v5759_v25  ;;  %2398 = vmatprep.mubr.f32.mxu0 %v7952_v17  ;;  %2541 = vmatprep.mubr.f32.mxu1 %v7624_v26  ;;  %7953 = vst [vmem:[#allocation77_spill] sm:$0xff] %v5952_v21  ;;  %v7630_v0 = vmax.f32 %v5939_v32, 0.0 }
 0x214   : > { %v987_v57 = vadd.f32 %v5642_v51, %v5298_v46  ;;  %v1635_v55 = vpop.f32.mrf.mxu1  ;;  %v1380_v16 = vpop.f32.mrf.mxu0  ;;  %v5962_v26 = vadd.f32 %v7955_v20, %v981_v40  ;;  %2977 = vmatprep.subr.mxu1 %v2089_v49  ;;  %v7959_v40 = vmax.f32 %v5932_v28, 0.0  ;;  %v7963_v28 = vmax.f32 %v5952_v21, 0.0 }
 0x215   : > { %2542 = vmatmul.mubr.f32.gmra.mxu1 %v7627_v36  ;;  %v7628_v10 = vmax.f32 %v5943_v50, 0.0  ;;  %v1381_v42 = vadd.f32 %v1380_v16, %v5780_v39  ;;  %v5967_v7 = vadd.f32 %v1635_v55, %v1379_v13  ;;  %v2088_v36 = vld [vmem:[#allocation8 + $0x550] sm:$0xff]  ;;  %v7960_v55 = vld [vmem:[#allocation52_spill] sm:$0xff] }
 0x216   : > { %7956 = vst [vmem:[#allocation76_spill] sm:$0xff] %v5962_v26  ;;  %v1637_v51 = vpop.f32.mrf.mxu1  ;;  %v1384_v60 = vpop.f32.mrf.mxu0  ;;  %2399 = vmatmul.mubr.f32.gmra.mxu0 %v7958_v4  ;;  %v5980_v16 = vadd.f32 %v7960_v55, %v979_v61  ;;  %v7961_v4 = vld [vmem:[#allocation57_spill] sm:$0xff]  ;;  %2978 = vmatpush1.msra.mxu1 %v2088_v36  ;;  %v7964_v13 = vmax.f32 %v5962_v26, 0.0 }
 0x217   : > { %7957 = vst [vmem:[#allocation79_spill] sm:$0xff] %v5967_v7  ;;  %v5971_v17 = vadd.f32 %v1637_v51, %v1381_v42  ;;  %v1385_v20 = vadd.f32 %v1384_v60, %v5759_v25  ;;  %2404 = vmatprep.mubr.f32.mxu0 %v7959_v40  ;;  %2547 = vmatprep.mubr.f32.mxu1 %v7628_v10 }
 0x218   : > { %v985_v49 = vadd.f32 %v7961_v4, %v5310_v62  ;;  %v5985_v42 = vadd.f32 %v5650_v24, %v987_v57  ;;  %v1641_v51 = vpop.f32.mrf.mxu1  ;;  %v1386_v60 = vpop.f32.mrf.mxu0  ;;  %v993_v10 = vadd.f32 %v5666_v23, %v5298_v46  ;;  %2979 = vmatprep.subr.mxu1 %v2085_v52  ;;  %v7967_v52 = vld [vmem:[#allocation61_spill] sm:$0xff] }
 0x219   : > { %2548 = vmatmul.mubr.f32.gmra.mxu1 %v7630_v0  ;;  %v1387_v61 = vadd.f32 %v1386_v60, %v5780_v39  ;;  %v5995_v4 = vadd.f32 %v1641_v51, %v1385_v20  ;;  %v2084_v0 = vld [vmem:[#allocation8 + $0x530] sm:$0xff]  ;;  %v7965_v36 = vmax.f32 %v5971_v17, 0.0  ;;  %v2081_v60 = vld [vmem:[#allocation8 + $0x518] sm:$0xff] }
 0x21a   : > { %7962 = vst [vmem:[#allocation78_spill] sm:$0xff] %v5985_v42  ;;  %v1643_v24 = vpop.f32.mrf.mxu1  ;;  %v1390_v57 = vpop.f32.mrf.mxu0  ;;  %2405 = vmatmul.mubr.f32.gmra.mxu0 %v7963_v28  ;;  %v7966_v51 = vld [vmem:[#allocation59_spill] sm:$0xff]  ;;  %2980 = vmatpush1.msra.mxu1 %v2084_v0 }
 0x21b   : > { %v5999_v40 = vadd.f32 %v1643_v24, %v1387_v61  ;;  %v1391_v23 = vadd.f32 %v1390_v57, %v5759_v25  ;;  %2410 = vmatprep.mubr.f32.mxu0 %v7964_v13  ;;  %2553 = vmatprep.mubr.f32.mxu1 %v7965_v36  ;;  %v6008_v55 = vadd.f32 %v7966_v51, %v985_v49  ;;  %v7968_v57 = vmax.f32 %v5967_v7, 0.0 }
 0x21c   : > { %v991_v61 = vadd.f32 %v7967_v52, %v5310_v62  ;;  %v1647_v24 = vpop.f32.mrf.mxu1  ;;  %v1392_v21 = vpop.f32.mrf.mxu0  ;;  %v6016_v13 = vadd.f32 %v5674_v45, %v993_v10  ;;  %v999_v36 = vadd.f32 %v5690_v29, %v5298_v46  ;;  %v7636_v51 = vmax.f32 %v5995_v4, 0.0  ;;  %2981 = vmatprep.subr.mxu1 %v2081_v60  ;;  %v2080_v45 = vld [vmem:[#allocation8 + $0x510] sm:$0xff] }
 0x21d   : > { %2554 = vmatmul.mubr.f32.gmra.mxu1 %v7968_v57  ;;  %v7634_v20 = vmax.f32 %v5999_v40, 0.0  ;;  %v1393_v49 = vadd.f32 %v1392_v21, %v5780_v39  ;;  %v6023_v28 = vadd.f32 %v1647_v24, %v1391_v23  ;;  %v7970_v7 = vmax.f32 %v5980_v16, 0.0  ;;  %v2077_v21 = vld [vmem:[#allocation8 + $0x4f8] sm:$0xff] }
 0x21e   : > { %7969 = vst [vmem:[#allocation81_spill] sm:$0xff] %v6016_v13  ;;  %v1649_v52 = vpop.f32.mrf.mxu1  ;;  %v1396_v26 = vpop.f32.mrf.mxu0  ;;  %v7971_v57 = vmax.f32 %v5985_v42, 0.0  ;;  %v6036_v23 = vadd.f32 %v5664_v43, %v991_v61  ;;  %v1005_v24 = vadd.f32 %v5714_v18, %v5298_v46  ;;  %2982 = vmatpush1.msra.mxu1 %v2080_v45  ;;  %v7975_v42 = vmax.f32 %v6008_v55, 0.0  ;;  %v2073_v45 = vld [vmem:[#allocation8 + $0x4d8] sm:$0xff] }
 0x21f   : > { %2411 = vmatmul.mubr.f32.gmra.mxu0 %v7970_v7  ;;  %v6027_v10 = vadd.f32 %v1649_v52, %v1393_v49  ;;  %v1397_v29 = vadd.f32 %v1396_v26, %v5759_v25  ;;  %2559 = vmatprep.mubr.f32.mxu1 %v7634_v20  ;;  %v7972_v7 = vld [vmem:[#allocation62_spill] sm:$0xff]  ;;  %v7639_v61 = vmax.f32 %v6023_v28, 0.0 }
 0x220   : > { %2416 = vmatprep.mubr.f32.mxu0 %v7971_v57  ;;  %v997_v60 = vadd.f32 %v7972_v7, %v5310_v62  ;;  %v1653_v49 = vpop.f32.mrf.mxu1  ;;  %v1398_v26 = vpop.f32.mrf.mxu0  ;;  %v6046_v57 = vadd.f32 %v5698_v53, %v999_v36  ;;  %2983 = vmatprep.subr.mxu1 %v2077_v21  ;;  %v7976_v36 = vmax.f32 %v6016_v13, 0.0  ;;  %v7979_v13 = vmax.f32 %v6036_v23, 0.0 }
 0x221   : > { %2560 = vmatmul.mubr.f32.gmra.mxu1 %v7636_v51  ;;  %v7637_v20 = vmax.f32 %v6027_v10, 0.0  ;;  %v1399_v43 = vadd.f32 %v1398_v26, %v5780_v39  ;;  %v6051_v7 = vadd.f32 %v1653_v49, %v1397_v29  ;;  %v2076_v51 = vld [vmem:[#allocation8 + $0x4f0] sm:$0xff]  ;;  %v7977_v49 = vld [vmem:[#allocation65_spill] sm:$0xff] }
 0x222   : > { %7973 = vst [vmem:[#allocation80_spill] sm:$0xff] %v6046_v57  ;;  %v1655_v18 = vpop.f32.mrf.mxu1  ;;  %v1402_v0 = vpop.f32.mrf.mxu0  ;;  %v6064_v26 = vadd.f32 %v7977_v49, %v997_v60  ;;  %2984 = vmatpush1.msra.mxu1 %v2076_v51  ;;  %v7980_v29 = vmax.f32 %v6046_v57, 0.0 }
 0x223   : > { %7974 = vst [vmem:[#allocation83_spill] sm:$0xff] %v6051_v7  ;;  %2417 = vmatmul.mubr.f32.gmra.mxu0 %v7975_v42  ;;  %v6055_v52 = vadd.f32 %v1655_v18, %v1399_v43  ;;  %v1403_v53 = vadd.f32 %v1402_v0, %v5759_v25  ;;  %2565 = vmatprep.mubr.f32.mxu1 %v7637_v20  ;;  %v7978_v42 = vld [vmem:[#allocation67_spill] sm:$0xff] }
 0x224   : > { %2422 = vmatprep.mubr.f32.mxu0 %v7976_v36  ;;  %v1003_v21 = vadd.f32 %v7978_v42, %v5310_v62  ;;  %v6069_v43 = vadd.f32 %v5722_v22, %v1005_v24  ;;  %v1659_v18 = vpop.f32.mrf.mxu1  ;;  %v1404_v0 = vpop.f32.mrf.mxu0  ;;  %v1011_v20 = vadd.f32 %v5739_v2, %v5298_v46  ;;  %2985 = vmatprep.subr.mxu1 %v2073_v45  ;;  %v7982_v45 = vld [vmem:[#allocation68_spill] sm:$0xff] }
 0x225   : > { %2566 = vmatmul.mubr.f32.gmra.mxu1 %v7639_v61  ;;  %v1405_v60 = vadd.f32 %v1404_v0, %v5780_v39  ;;  %v6079_v42 = vadd.f32 %v1659_v18, %v1403_v53  ;;  %v2072_v61 = vld [vmem:[#allocation8 + $0x4d0] sm:$0xff]  ;;  %v7981_v51 = vmax.f32 %v6055_v52, 0.0  ;;  %v2069_v0 = vld [vmem:[#allocation8 + $0x4b8] sm:$0xff] }
 0x226   : > { %v1661_v22 = vpop.f32.mrf.mxu1  ;;  %v1408_v24 = vpop.f32.mrf.mxu0  ;;  %v6092_v18 = vadd.f32 %v5712_v8, %v1003_v21  ;;  %2986 = vmatpush1.msra.mxu1 %v2072_v61  ;;  %v2065_v61 = vld [vmem:[#allocation8 + $0x498] sm:$0xff] }
 0x227   : > { %2423 = vmatmul.mubr.f32.gmra.mxu0 %v7979_v13  ;;  %v6083_v36 = vadd.f32 %v1661_v22, %v1405_v60  ;;  %v1409_v2 = vadd.f32 %v1408_v24, %v5759_v25  ;;  %2571 = vmatprep.mubr.f32.mxu1 %v7981_v51  ;;  %v1009_v60 = vadd.f32 %v7982_v45, %v5310_v62  ;;  %v7983_v24 = vmax.f32 %v6051_v7, 0.0 }
 0x228   : > { %2428 = vmatprep.mubr.f32.mxu0 %v7980_v29  ;;  %v1665_v22 = vpop.f32.mrf.mxu1  ;;  %v1410_v49 = vpop.f32.mrf.mxu0  ;;  %v6100_v29 = vadd.f32 %v5748_v54, %v1011_v20  ;;  %v1017_v51 = vadd.f32 %v5771_v58, %v5298_v46  ;;  %v7642_v21 = vmax.f32 %v6079_v42, 0.0  ;;  %v7984_v7 = vmax.f32 %v6064_v26, 0.0  ;;  %2987 = vmatprep.subr.mxu1 %v2069_v0  ;;  %v2068_v54 = vld [vmem:[#allocation8 + $0x4b0] sm:$0xff] }
 0x229   : > { %2572 = vmatmul.mubr.f32.gmra.mxu1 %v7983_v24  ;;  %v7650_v53 = vmax.f32 %v6083_v36, 0.0  ;;  %v1411_v8 = vadd.f32 %v1410_v49, %v5780_v39  ;;  %v6107_v13 = vadd.f32 %v1665_v22, %v1409_v2  ;;  %v7985_v58 = vmax.f32 %v6069_v43, 0.0 }
 0x22a   : > { %v1667_v45 = vpop.f32.mrf.mxu1  ;;  %v1414_v57 = vpop.f32.mrf.mxu0  ;;  %v7644_v49 = vmax.f32 %v6092_v18, 0.0  ;;  %v6120_v2 = vadd.f32 %v5737_v30, %v1009_v60  ;;  %v6128_v24 = vadd.f32 %v5782_v19, %v1017_v51  ;;  %2988 = vmatpush1.msra.mxu1 %v2068_v54  ;;  %v2061_v51 = vld [vmem:[#allocation8 + $0x478] sm:$0xff] }
 0x22b   : > { %2429 = vmatmul.mubr.f32.gmra.mxu0 %v7984_v7  ;;  %v6111_v20 = vadd.f32 %v1667_v45, %v1411_v8  ;;  %v1415_v46 = vadd.f32 %v1414_v57, %v5759_v25  ;;  %2577 = vmatprep.mubr.f32.mxu1 %v7650_v53  ;;  %v1015_v7 = vadd.f32 %v5750_v59, %v5310_v62  ;;  %v7643_v57 = vmax.f32 %v6100_v29, 0.0 }
 0x22c   : > { %2434 = vmatprep.mubr.f32.mxu0 %v7985_v58  ;;  %7986 = vst [vmem:[#allocation82_spill] sm:$0xff] %v6120_v2  ;;  %v1671_v0 = vpop.f32.mrf.mxu1  ;;  %v1416_v22 = vpop.f32.mrf.mxu0  ;;  %7987 = vst [vmem:[#allocation85_spill] sm:$0xff] %v6128_v24  ;;  %v7646_v30 = vmax.f32 %v6107_v13, 0.0  ;;  %2989 = vmatprep.subr.mxu1 %v2065_v61  ;;  %v2064_v58 = vld [vmem:[#allocation8 + $0x490] sm:$0xff]  ;;  %v7648_v54 = vmax.f32 %v6120_v2, 0.0  ;;  %v7647_v61 = vmax.f32 %v6128_v24, 0.0 }
 0x22d   : > { %2578 = vmatmul.mubr.f32.gmra.mxu1 %v7642_v21  ;;  %v7645_v8 = vmax.f32 %v6111_v20, 0.0  ;;  %v1417_v45 = vadd.f32 %v1416_v22, %v5780_v39  ;;  %v6133_v60 = vadd.f32 %v1671_v0, %v1415_v46  ;;  %v6146_v46 = vadd.f32 %v5769_v14, %v1015_v7  ;;  %v2060_v14 = vld [vmem:[#allocation8 + $0x470] sm:$0xff] }
 0x22e   : > { %v1673_v62 = vpop.f32.mrf.mxu1  ;;  %v1420_v59 = vpop.f32.mrf.mxu0  ;;  %2990 = vmatpush1.msra.mxu1 %v2064_v58  ;;  %v2057_v58 = vld [vmem:[#allocation8 + $0x458] sm:$0xff] }
 0x22f   : > { %7988 = vst [vmem:[#allocation84_spill] sm:$0xff] %v6133_v60  ;;  %2435 = vmatmul.mubr.f32.gmra.mxu0 %v7644_v49  ;;  %v6137_v21 = vadd.f32 %v1673_v62, %v1417_v45  ;;  %v1421_v19 = vadd.f32 %v1420_v59, %v5759_v25  ;;  %2583 = vmatprep.mubr.f32.mxu1 %v7645_v8  ;;  %7989 = vst [vmem:[#allocation19_spill] sm:$0xff] %v6146_v46  ;;  %v7651_v59 = vmax.f32 %v6133_v60, 0.0 }
 0x230   : > { %2440 = vmatprep.mubr.f32.mxu0 %v7643_v57  ;;  %v1677_v0 = vpop.f32.mrf.mxu1  ;;  %v1422_v22 = vpop.f32.mrf.mxu0  ;;  %2991 = vmatprep.subr.mxu1 %v2061_v51 }
 0x231   : > { %2584 = vmatmul.mubr.f32.gmra.mxu1 %v7646_v30  ;;  %v7649_v45 = vmax.f32 %v6137_v21, 0.0  ;;  %v1423_v62 = vadd.f32 %v1422_v22, %v5780_v39  ;;  %v6154_v57 = vadd.f32 %v1677_v0, %v1421_v19  ;;  %v7653_v19 = vmax.f32 %v6146_v46, 0.0 }
 0x232   : > { %v1679_v49 = vpop.f32.mrf.mxu1  ;;  %v1426_v8 = vpop.f32.mrf.mxu0  ;;  %2992 = vmatpush1.msra.mxu1 %v2060_v14 }
 0x233   : > { %7990 = vst [vmem:[#allocation18_spill] sm:$0xff] %v6154_v57  ;;  %2441 = vmatmul.mubr.f32.gmra.mxu0 %v7648_v54  ;;  %v6158_v7 = vadd.f32 %v1679_v49, %v1423_v62  ;;  %v1427_v30 = vadd.f32 %v1426_v8, %v5759_v25  ;;  %2589 = vmatprep.mubr.f32.mxu1 %v7649_v45  ;;  %v2056_v45 = vld [vmem:[#allocation8 + $0x450] sm:$0xff]  ;;  %v2053_v8 = vld [vmem:[#allocation8 + $0x438] sm:$0xff]  ;;  %v7996_v60 = vmax.f32 %v6154_v57, 0.0 }
 0x234   : > { %2446 = vmatprep.mubr.f32.mxu0 %v7647_v61  ;;  %v1683_v0 = vpop.f32.mrf.mxu1  ;;  %v1428_v22 = vpop.f32.mrf.mxu0  ;;  %2993 = vmatprep.subr.mxu1 %v2057_v58 }
 0x235   : > { %7991 = vst [vmem:[#allocation20_spill] sm:$0xff] %v6158_v7  ;;  %2590 = vmatmul.mubr.f32.gmra.mxu1 %v7651_v59  ;;  %v7654_v51 = vmax.f32 %v6158_v7, 0.0  ;;  %v1429_v49 = vadd.f32 %v1428_v22, %v5780_v39  ;;  %v6171_v62 = vadd.f32 %v1683_v0, %v1427_v30  ;;  %v7994_v22 = vld [vmem:[#allocation25_spill] sm:$0xff]  ;;  %v2052_v7 = vld [vmem:[#allocation8 + $0x430] sm:$0xff] }
 0x236   : > { %v1685_v61 = vpop.f32.mrf.mxu1  ;;  %v1432_v54 = vpop.f32.mrf.mxu0  ;;  %v7995_v14 = vmax.f32 %v7994_v22, 0.0  ;;  %2994 = vmatpush1.msra.mxu1 %v2056_v45  ;;  %v7998_v22 = vld [vmem:[#allocation27_spill] sm:$0xff]  ;;  %v8001_v45 = vld [vmem:[#allocation29_spill] sm:$0xff] }
 0x237   : > { %7992 = vst [vmem:[#allocation21_spill] sm:$0xff] %v6171_v62  ;;  %2447 = vmatmul.mubr.f32.gmra.mxu0 %v7653_v19  ;;  %v6175_v53 = vadd.f32 %v1685_v61, %v1429_v49  ;;  %v1433_v59 = vadd.f32 %v1432_v54, %v5759_v25  ;;  %2595 = vmatprep.mubr.f32.mxu1 %v7654_v51  ;;  %v3367_v61 = vld [vmem:[#allocation10 + $0x78] sm:$0xff]  ;;  %v8003_v57 = vmax.f32 %v6171_v62, 0.0 }
 0x238   : > { %2774 = vmatprep.mubr.f32.mxu0 %v7995_v14  ;;  %v1689_v30 = vpop.f32.mrf.mxu1  ;;  %v1434_v0 = vpop.f32.mrf.mxu0  ;;  %v7999_v14 = vmax.f32 %v7998_v22, 0.0  ;;  %2995 = vmatprep.subr.mxu1 %v2053_v8  ;;  %v2049_v54 = vld [vmem:[#allocation8 + $0x418] sm:$0xff] }
 0x239   : > { %7993 = vst [vmem:[#allocation23_spill] sm:$0xff] %v6175_v53  ;;  %2596 = vmatmul.mubr.f32.gmra.mxu1 %v7996_v60  ;;  %v7659_v19 = vmax.f32 %v6175_v53, 0.0  ;;  %v1435_v58 = vadd.f32 %v1434_v0, %v5780_v39  ;;  %v6187_v49 = vadd.f32 %v1689_v30, %v1433_v59  ;;  %v8002_v0 = vmax.f32 %v8001_v45, 0.0  ;;  %v2173_v22 = vld [vmem:[#allocation8 + $0x7f8] sm:$0xff] }
 0x23a   : > { %v1691_v51 = vpop.f32.mrf.mxu1  ;;  %v1438_v46 = vpop.f32.mrf.mxu0  ;;  %2996 = vmatpush1.msra.mxu1 %v2052_v7 }
 0x23b   : > { %7997 = vst [vmem:[#allocation24_spill] sm:$0xff] %v6187_v49  ;;  %2775 = vmatmul.mubr.f32.vlgmr.msra.gmra.mxu0 %v7999_v14  ;;  %v6191_v24 = vadd.f32 %v1691_v51, %v1435_v58  ;;  %v1439_v60 = vadd.f32 %v1438_v46, %v5759_v25  ;;  %2601 = vmatprep.mubr.f32.mxu1 %v7659_v19  ;;  %v8004_v58 = vmov 0.0   ;;  %v3366_v46 = vld [vmem:[#allocation10 + $0x70] sm:$0xff]  ;;  %v8006_v19 = vld [vmem:[#allocation28_spill] sm:$0xff]  ;;  %v8012_v2 = vmax.f32 %v6187_v49, 0.0 }
 0x23c   : > { %2780 = vmatprep.mubr.f32.mxu0 %v8002_v0  ;;  %v1695_v59 = vpop.f32.mrf.mxu1  ;;  %v1440_v30 = vpop.f32.mrf.mxu0  ;;  %3424 = vmatpush1.msra.mxu0 %v3367_v61  ;;  %v8007_v53 = vmax.f32 %v8006_v19, 0.0 }
 0x23d   : > { %8000 = vst [vmem:[#allocation22_spill] sm:$0xff] %v6191_v24  ;;  %2602 = vmatmul.mubr.f32.gmra.mxu1 %v8003_v57  ;;  %v1441_v51 = vadd.f32 %v1440_v30, %v5780_v39  ;;  %3425 = vmatprep.subr.mxu0 %v8004_v58  ;;  %v6204_v14 = vadd.f32 %v1695_v59, %v1439_v60  ;;  %v2048_v57 = vld [vmem:[#allocation8 + $0x410] sm:$0xff]  ;;  %v8009_v7 = vmax.f32 %v6191_v24, 0.0 }
 0x23e   : > { %v1697_v45 = vpop.f32.mrf.mxu1  ;;  %v1444_v0 = vpop.f32.mrf.mxu0  ;;  %2997 = vmatprep.subr.mxu1 %v2049_v54  ;;  %v8010_v30 = vld [vmem:[#allocation30_spill] sm:$0xff]  ;;  %3426 = vmatpush1.msra.mxu0 %v3366_v46  ;;  %v3365_v54 = vld [vmem:[#allocation10 + $0x68] sm:$0xff] }
 0x23f   : > { %8005 = vst [vmem:[#allocation26_spill] sm:$0xff] %v6204_v14  ;;  %2781 = vmatmul.mubr.f32.gmra.mxu0 %v8007_v53  ;;  %v6208_v61 = vadd.f32 %v1697_v45, %v1441_v51  ;;  %v1445_v8 = vadd.f32 %v1444_v0, %v5759_v25  ;;  %2607 = vmatprep.mubr.f32.mxu1 %v8009_v7  ;;  %v8011_v62 = vmax.f32 %v8010_v30, 0.0  ;;  %v8014_v7 = vld [vmem:[#allocation32_spill] sm:$0xff]  ;;  %v2169_v51 = vld [vmem:[#allocation8 + $0x7d8] sm:$0xff]  ;;  %v8020_v24 = vmax.f32 %v6204_v14, 0.0 }
 0x240   : > { %v1701_v60 = vpop.f32.mrf.mxu1  ;;  %v1446_v59 = vpop.f32.mrf.mxu0  ;;  %2998 = vmatpush1.msra.mxu1 %v2048_v57  ;;  %3427 = vmatprep.subr.mxu0 %v8004_v58  ;;  %v8015_v30 = vmax.f32 %v8014_v7, 0.0 }
 0x241   : > { %8008 = vst [vmem:[#allocation31_spill] sm:$0xff] %v6208_v61  ;;  %2786 = vmatprep.mubr.f32.mxu0 %v8011_v62  ;;  %2608 = vmatmul.mubr.f32.gmra.mxu1 %v8012_v2  ;;  %v1447_v19 = vadd.f32 %v1446_v59, %v5780_v39  ;;  %v6221_v45 = vadd.f32 %v1701_v60, %v1445_v8  ;;  %v2172_v2 = vld [vmem:[#allocation8 + $0x7f0] sm:$0xff]  ;;  %v8017_v57 = vmax.f32 %v6208_v61, 0.0  ;;  %v8018_v59 = vld [vmem:[#allocation35_spill] sm:$0xff] }
 0x242   : > { %v1703_v62 = vpop.f32.mrf.mxu1  ;;  %v1450_v0 = vpop.f32.mrf.mxu0  ;;  %2999 = vmatprep.subr.mxu1 %v2173_v22  ;;  %v8019_v49 = vmax.f32 %v8018_v59, 0.0  ;;  %3428 = vmatpush1.msra.mxu0 %v3365_v54 }
 0x243   : > { %8013 = vst [vmem:[#allocation33_spill] sm:$0xff] %v6221_v45  ;;  %2787 = vmatmul.mubr.f32.gmra.mxu0 %v8015_v30  ;;  %v6225_v46 = vadd.f32 %v1703_v62, %v1447_v19  ;;  %v1451_v53 = vadd.f32 %v1450_v0, %v5759_v25  ;;  %2613 = vmatprep.mubr.f32.mxu1 %v8017_v57  ;;  %v3364_v62 = vld [vmem:[#allocation10 + $0x60] sm:$0xff]  ;;  %v8022_v57 = vld [vmem:[#allocation34_spill] sm:$0xff]  ;;  %v2165_v0 = vld [vmem:[#allocation8 + $0x7b8] sm:$0xff]  ;;  %v8028_v61 = vmax.f32 %v6221_v45, 0.0 }
 0x244   : > { %2792 = vmatprep.mubr.f32.mxu0 %v8019_v49  ;;  %v1707_v8 = vpop.f32.mrf.mxu1  ;;  %v1452_v60 = vpop.f32.mrf.mxu0  ;;  %3000 = vmatpush2.msra.mxu1 %v2172_v2  ;;  %v8023_v59 = vmax.f32 %v8022_v57, 0.0 }
 0x245   : > { %8016 = vst [vmem:[#allocation16_spill] sm:$0xff] %v6225_v46  ;;  %2614 = vmatmul.mubr.f32.gmra.mxu1 %v8020_v24  ;;  %v1453_v19 = vadd.f32 %v1452_v60, %v5780_v39  ;;  %3429 = vmatprep.subr.mxu0 %v8004_v58  ;;  %v6238_v7 = vadd.f32 %v1707_v8, %v1451_v53  ;;  %v2168_v24 = vld [vmem:[#allocation8 + $0x7d0] sm:$0xff]  ;;  %v8025_v2 = vmax.f32 %v6225_v46, 0.0  ;;  %v8026_v60 = vld [vmem:[#allocation37_spill] sm:$0xff] }
 0x246   : > { %v1709_v49 = vpop.f32.mrf.mxu1  ;;  %v1456_v30 = vpop.f32.mrf.mxu0  ;;  %3001 = vmatprep.subr.mxu1 %v2169_v51  ;;  %v8027_v14 = vmax.f32 %v8026_v60, 0.0  ;;  %3430 = vmatpush1.msra.mxu0 %v3364_v62 }
 0x247   : > { %8021 = vst [vmem:[#allocation50_spill] sm:$0xff] %v6238_v7  ;;  %2793 = vmatmul.mubr.f32.gmra.mxu0 %v8023_v59  ;;  %v6242_v54 = vadd.f32 %v1709_v49, %v1453_v19  ;;  %v1457_v22 = vadd.f32 %v1456_v30, %v5759_v25  ;;  %2619 = vmatprep.mubr.f32.mxu1 %v8025_v2  ;;  %v3363_v49 = vld [vmem:[#allocation10 + $0x58] sm:$0xff]  ;;  %v8030_v2 = vld [vmem:[#allocation36_spill] sm:$0xff]  ;;  %v8036_v46 = vmax.f32 %v6238_v7, 0.0 }
 0x248   : > { %2798 = vmatprep.mubr.f32.mxu0 %v8027_v14  ;;  %v1713_v53 = vpop.f32.mrf.mxu1  ;;  %v1458_v8 = vpop.f32.mrf.mxu0  ;;  %3002 = vmatpush2.msra.mxu1 %v2168_v24  ;;  %v8031_v60 = vmax.f32 %v8030_v2, 0.0  ;;  %v2161_v30 = vld [vmem:[#allocation8 + $0x798] sm:$0xff] }
 0x249   : > { %8024 = vst [vmem:[#allocation54_spill] sm:$0xff] %v6242_v54  ;;  %2620 = vmatmul.mubr.f32.gmra.mxu1 %v8028_v61  ;;  %v1459_v19 = vadd.f32 %v1458_v8, %v5780_v39  ;;  %3431 = vmatprep.subr.mxu0 %v8004_v58  ;;  %v6255_v57 = vadd.f32 %v1713_v53, %v1457_v22  ;;  %v2164_v61 = vld [vmem:[#allocation8 + $0x7b0] sm:$0xff]  ;;  %v8033_v24 = vmax.f32 %v6242_v54, 0.0  ;;  %v8034_v8 = vld [vmem:[#allocation39_spill] sm:$0xff] }
 0x24a   : > { %v1715_v14 = vpop.f32.mrf.mxu1  ;;  %v1462_v59 = vpop.f32.mrf.mxu0  ;;  %3003 = vmatprep.subr.mxu1 %v2165_v0  ;;  %v8035_v45 = vmax.f32 %v8034_v8, 0.0  ;;  %3432 = vmatpush1.msra.mxu0 %v3363_v49 }
 0x24b   : > { %8029 = vst [vmem:[#allocation52_spill] sm:$0xff] %v6255_v57  ;;  %2799 = vmatmul.mubr.f32.gmra.mxu0 %v8031_v60  ;;  %v6259_v62 = vadd.f32 %v1715_v14, %v1459_v19  ;;  %v1463_v51 = vadd.f32 %v1462_v59, %v5759_v25  ;;  %2625 = vmatprep.mubr.f32.mxu1 %v8033_v24  ;;  %v3362_v14 = vld [vmem:[#allocation10 + $0x50] sm:$0xff]  ;;  %v2157_v59 = vld [vmem:[#allocation8 + $0x778] sm:$0xff]  ;;  %v8044_v54 = vmax.f32 %v6255_v57, 0.0 }
 0x24c   : > { %2804 = vmatprep.mubr.f32.mxu0 %v8035_v45  ;;  %v1719_v22 = vpop.f32.mrf.mxu1  ;;  %v1464_v53 = vpop.f32.mrf.mxu0  ;;  %3004 = vmatpush2.msra.mxu1 %v2164_v61  ;;  %v8038_v24 = vld [vmem:[#allocation38_spill] sm:$0xff] }
 0x24d   : > { %8032 = vst [vmem:[#allocation57_spill] sm:$0xff] %v6259_v62  ;;  %2626 = vmatmul.mubr.f32.gmra.mxu1 %v8036_v46  ;;  %v1465_v19 = vadd.f32 %v1464_v53, %v5780_v39  ;;  %3433 = vmatprep.subr.mxu0 %v8004_v58  ;;  %v6272_v2 = vadd.f32 %v1719_v22, %v1463_v51  ;;  %v8039_v8 = vmax.f32 %v8038_v24, 0.0  ;;  %v2160_v46 = vld [vmem:[#allocation8 + $0x790] sm:$0xff]  ;;  %v8041_v61 = vmax.f32 %v6259_v62, 0.0  ;;  %v8042_v53 = vld [vmem:[#allocation41_spill] sm:$0xff] }
 0x24e   : > { %v1721_v45 = vpop.f32.mrf.mxu1  ;;  %v1468_v60 = vpop.f32.mrf.mxu0  ;;  %3005 = vmatprep.subr.mxu1 %v2161_v30  ;;  %v8043_v7 = vmax.f32 %v8042_v53, 0.0  ;;  %3434 = vmatpush1.msra.mxu0 %v3362_v14 }
 0x24f   : > { %8037 = vst [vmem:[#allocation59_spill] sm:$0xff] %v6272_v2  ;;  %2805 = vmatmul.mubr.f32.gmra.mxu0 %v8039_v8  ;;  %v6276_v49 = vadd.f32 %v1721_v45, %v1465_v19  ;;  %v1469_v0 = vadd.f32 %v1468_v60, %v5759_v25  ;;  %2631 = vmatprep.mubr.f32.mxu1 %v8041_v61  ;;  %v3361_v45 = vld [vmem:[#allocation10 + $0x48] sm:$0xff]  ;;  %v8046_v61 = vld [vmem:[#allocation40_spill] sm:$0xff]  ;;  %v2153_v60 = vld [vmem:[#allocation8 + $0x758] sm:$0xff]  ;;  %v8052_v62 = vmax.f32 %v6272_v2, 0.0 }
 0x250   : > { %2810 = vmatprep.mubr.f32.mxu0 %v8043_v7  ;;  %v1725_v51 = vpop.f32.mrf.mxu1  ;;  %v1470_v22 = vpop.f32.mrf.mxu0  ;;  %3006 = vmatpush2.msra.mxu1 %v2160_v46  ;;  %v8047_v53 = vmax.f32 %v8046_v61, 0.0 }
 0x251   : > { %8040 = vst [vmem:[#allocation61_spill] sm:$0xff] %v6276_v49  ;;  %2632 = vmatmul.mubr.f32.gmra.mxu1 %v8044_v54  ;;  %v1471_v19 = vadd.f32 %v1470_v22, %v5780_v39  ;;  %3435 = vmatprep.subr.mxu0 %v8004_v58  ;;  %v6289_v24 = vadd.f32 %v1725_v51, %v1469_v0  ;;  %v2156_v54 = vld [vmem:[#allocation8 + $0x770] sm:$0xff]  ;;  %v8049_v46 = vmax.f32 %v6276_v49, 0.0  ;;  %v8050_v22 = vld [vmem:[#allocation43_spill] sm:$0xff] }
 0x252   : > { %v1727_v7 = vpop.f32.mrf.mxu1  ;;  %v1474_v8 = vpop.f32.mrf.mxu0  ;;  %3007 = vmatprep.subr.mxu1 %v2157_v59  ;;  %v8051_v57 = vmax.f32 %v8050_v22, 0.0  ;;  %3436 = vmatpush1.msra.mxu0 %v3361_v45 }
 0x253   : > { %8045 = vst [vmem:[#allocation62_spill] sm:$0xff] %v6289_v24  ;;  %2811 = vmatmul.mubr.f32.gmra.mxu0 %v8047_v53  ;;  %v6293_v14 = vadd.f32 %v1727_v7, %v1471_v19  ;;  %v1475_v30 = vadd.f32 %v1474_v8, %v5759_v25  ;;  %2637 = vmatprep.mubr.f32.mxu1 %v8049_v46  ;;  %v3360_v7 = vld [vmem:[#allocation10 + $0x40] sm:$0xff]  ;;  %v8054_v46 = vld [vmem:[#allocation42_spill] sm:$0xff]  ;;  %v2149_v8 = vld [vmem:[#allocation8 + $0x738] sm:$0xff]  ;;  %v8060_v49 = vmax.f32 %v6289_v24, 0.0 }
 0x254   : > { %2816 = vmatprep.mubr.f32.mxu0 %v8051_v57  ;;  %v1731_v0 = vpop.f32.mrf.mxu1  ;;  %v1476_v51 = vpop.f32.mrf.mxu0  ;;  %3008 = vmatpush2.msra.mxu1 %v2156_v54  ;;  %v8055_v22 = vmax.f32 %v8054_v46, 0.0 }
 0x255   : > { %8048 = vst [vmem:[#allocation65_spill] sm:$0xff] %v6293_v14  ;;  %2638 = vmatmul.mubr.f32.gmra.mxu1 %v8052_v62  ;;  %v1477_v19 = vadd.f32 %v1476_v51, %v5780_v39  ;;  %3437 = vmatprep.subr.mxu0 %v8004_v58  ;;  %v6306_v61 = vadd.f32 %v1731_v0, %v1475_v30  ;;  %v2152_v62 = vld [vmem:[#allocation8 + $0x750] sm:$0xff]  ;;  %v8057_v54 = vmax.f32 %v6293_v14, 0.0  ;;  %v8058_v51 = vld [vmem:[#allocation45_spill] sm:$0xff] }
 0x256   : > { %v1733_v57 = vpop.f32.mrf.mxu1  ;;  %v1480_v53 = vpop.f32.mrf.mxu0  ;;  %3009 = vmatprep.subr.mxu1 %v2153_v60  ;;  %v8059_v2 = vmax.f32 %v8058_v51, 0.0  ;;  %3438 = vmatpush1.msra.mxu0 %v3360_v7 }
 0x257   : > { %8053 = vst [vmem:[#allocation67_spill] sm:$0xff] %v6306_v61  ;;  %2817 = vmatmul.mubr.f32.gmra.mxu0 %v8055_v22  ;;  %v6310_v45 = vadd.f32 %v1733_v57, %v1477_v19  ;;  %v1481_v59 = vadd.f32 %v1480_v53, %v5759_v25  ;;  %2643 = vmatprep.mubr.f32.mxu1 %v8057_v54  ;;  %v3359_v57 = vld [vmem:[#allocation10 + $0x38] sm:$0xff]  ;;  %v8062_v54 = vld [vmem:[#allocation44_spill] sm:$0xff]  ;;  %v8068_v14 = vmax.f32 %v6306_v61, 0.0 }
 0x258   : > { %2822 = vmatprep.mubr.f32.mxu0 %v8059_v2  ;;  %v1737_v30 = vpop.f32.mrf.mxu1  ;;  %v1482_v0 = vpop.f32.mrf.mxu0  ;;  %3010 = vmatpush2.msra.mxu1 %v2152_v62  ;;  %v8063_v51 = vmax.f32 %v8062_v54, 0.0  ;;  %v2145_v53 = vld [vmem:[#allocation8 + $0x718] sm:$0xff] }
 0x259   : > { %8056 = vst [vmem:[#allocation68_spill] sm:$0xff] %v6310_v45  ;;  %2644 = vmatmul.mubr.f32.gmra.mxu1 %v8060_v49  ;;  %v1483_v19 = vadd.f32 %v1482_v0, %v5780_v39  ;;  %3439 = vmatprep.subr.mxu0 %v8004_v58  ;;  %v6323_v46 = vadd.f32 %v1737_v30, %v1481_v59  ;;  %v2148_v49 = vld [vmem:[#allocation8 + $0x730] sm:$0xff]  ;;  %v8065_v62 = vmax.f32 %v6310_v45, 0.0  ;;  %v8066_v0 = vld [vmem:[#allocation47_spill] sm:$0xff] }
 0x25a   : > { %v1739_v2 = vpop.f32.mrf.mxu1  ;;  %v1486_v22 = vpop.f32.mrf.mxu0  ;;  %3011 = vmatprep.subr.mxu1 %v2149_v8  ;;  %v8067_v24 = vmax.f32 %v8066_v0, 0.0  ;;  %3440 = vmatpush1.msra.mxu0 %v3359_v57 }
 0x25b   : > { %8061 = vst [vmem:[#allocation25_spill] sm:$0xff] %v6323_v46  ;;  %2823 = vmatmul.mubr.f32.gmra.mxu0 %v8063_v51  ;;  %v6327_v7 = vadd.f32 %v1739_v2, %v1483_v19  ;;  %v1487_v60 = vadd.f32 %v1486_v22, %v5759_v25  ;;  %2649 = vmatprep.mubr.f32.mxu1 %v8065_v62  ;;  %v3358_v2 = vld [vmem:[#allocation10 + $0x30] sm:$0xff]  ;;  %v2141_v22 = vld [vmem:[#allocation8 + $0x6f8] sm:$0xff]  ;;  %v8076_v45 = vmax.f32 %v6323_v46, 0.0 }
 0x25c   : > { %2828 = vmatprep.mubr.f32.mxu0 %v8067_v24  ;;  %v1743_v59 = vpop.f32.mrf.mxu1  ;;  %v1488_v30 = vpop.f32.mrf.mxu0  ;;  %3012 = vmatpush2.msra.mxu1 %v2148_v49  ;;  %v8070_v62 = vld [vmem:[#allocation46_spill] sm:$0xff] }
 0x25d   : > { %8064 = vst [vmem:[#allocation27_spill] sm:$0xff] %v6327_v7  ;;  %2650 = vmatmul.mubr.f32.gmra.mxu1 %v8068_v14  ;;  %v1489_v19 = vadd.f32 %v1488_v30, %v5780_v39  ;;  %3441 = vmatprep.subr.mxu0 %v8004_v58  ;;  %v6340_v54 = vadd.f32 %v1743_v59, %v1487_v60  ;;  %v8071_v0 = vmax.f32 %v8070_v62, 0.0  ;;  %v2144_v14 = vld [vmem:[#allocation8 + $0x710] sm:$0xff]  ;;  %v8073_v49 = vmax.f32 %v6327_v7, 0.0  ;;  %v8074_v30 = vld [vmem:[#allocation49_spill] sm:$0xff] }
 0x25e   : > { %v1745_v24 = vpop.f32.mrf.mxu1  ;;  %v1492_v51 = vpop.f32.mrf.mxu0  ;;  %3013 = vmatprep.subr.mxu1 %v2145_v53  ;;  %v8075_v61 = vmax.f32 %v8074_v30, 0.0  ;;  %3442 = vmatpush1.msra.mxu0 %v3358_v2 }
 0x25f   : > { %8069 = vst [vmem:[#allocation29_spill] sm:$0xff] %v6340_v54  ;;  %2829 = vmatmul.mubr.f32.gmra.mxu0 %v8071_v0  ;;  %v6344_v57 = vadd.f32 %v1745_v24, %v1489_v19  ;;  %v1493_v8 = vadd.f32 %v1492_v51, %v5759_v25  ;;  %2655 = vmatprep.mubr.f32.mxu1 %v8073_v49  ;;  %v3357_v24 = vld [vmem:[#allocation10 + $0x28] sm:$0xff]  ;;  %v8078_v49 = vld [vmem:[#allocation48_spill] sm:$0xff]  ;;  %v2137_v51 = vld [vmem:[#allocation8 + $0x6d8] sm:$0xff]  ;;  %v8084_v7 = vmax.f32 %v6340_v54, 0.0 }
 0x260   : > { %2834 = vmatprep.mubr.f32.mxu0 %v8075_v61  ;;  %v1749_v60 = vpop.f32.mrf.mxu1  ;;  %v1494_v59 = vpop.f32.mrf.mxu0  ;;  %3014 = vmatpush2.msra.mxu1 %v2144_v14  ;;  %v8079_v30 = vmax.f32 %v8078_v49, 0.0 }
 0x261   : > { %8072 = vst [vmem:[#allocation28_spill] sm:$0xff] %v6344_v57  ;;  %2656 = vmatmul.mubr.f32.gmra.mxu1 %v8076_v45  ;;  %v1495_v19 = vadd.f32 %v1494_v59, %v5780_v39  ;;  %3443 = vmatprep.subr.mxu0 %v8004_v58  ;;  %v6357_v62 = vadd.f32 %v1749_v60, %v1493_v8  ;;  %v2140_v45 = vld [vmem:[#allocation8 + $0x6f0] sm:$0xff]  ;;  %v8081_v14 = vmax.f32 %v6344_v57, 0.0  ;;  %v8082_v59 = vld [vmem:[#allocation51_spill] sm:$0xff] }
 0x262   : > { %v1751_v61 = vpop.f32.mrf.mxu1  ;;  %v1498_v0 = vpop.f32.mrf.mxu0  ;;  %3015 = vmatprep.subr.mxu1 %v2141_v22  ;;  %v8083_v46 = vmax.f32 %v8082_v59, 0.0  ;;  %3444 = vmatpush1.msra.mxu0 %v3357_v24 }
 0x263   : > { %8077 = vst [vmem:[#allocation30_spill] sm:$0xff] %v6357_v62  ;;  %2835 = vmatmul.mubr.f32.gmra.mxu0 %v8079_v30  ;;  %v6361_v2 = vadd.f32 %v1751_v61, %v1495_v19  ;;  %v1499_v53 = vadd.f32 %v1498_v0, %v5759_v25  ;;  %2661 = vmatprep.mubr.f32.mxu1 %v8081_v14  ;;  %v3356_v61 = vld [vmem:[#allocation10 + $0x20] sm:$0xff]  ;;  %v8086_v14 = vld [vmem:[#allocation53_spill] sm:$0xff]  ;;  %v2133_v0 = vld [vmem:[#allocation8 + $0x6b8] sm:$0xff]  ;;  %v8092_v57 = vmax.f32 %v6357_v62, 0.0 }
 0x264   : > { %2840 = vmatprep.mubr.f32.mxu0 %v8083_v46  ;;  %v1755_v8 = vpop.f32.mrf.mxu1  ;;  %v1500_v60 = vpop.f32.mrf.mxu0  ;;  %3016 = vmatpush2.msra.mxu1 %v2140_v45  ;;  %v8087_v59 = vmax.f32 %v8086_v14, 0.0 }
 0x265   : > { %8080 = vst [vmem:[#allocation32_spill] sm:$0xff] %v6361_v2  ;;  %2662 = vmatmul.mubr.f32.gmra.mxu1 %v8084_v7  ;;  %v1501_v19 = vadd.f32 %v1500_v60, %v5780_v39  ;;  %3445 = vmatprep.subr.mxu0 %v8004_v58  ;;  %v6374_v49 = vadd.f32 %v1755_v8, %v1499_v53  ;;  %v2136_v7 = vld [vmem:[#allocation8 + $0x6d0] sm:$0xff]  ;;  %v8089_v45 = vmax.f32 %v6361_v2, 0.0  ;;  %v8090_v60 = vld [vmem:[#allocation55_spill] sm:$0xff] }
 0x266   : > { %v1757_v46 = vpop.f32.mrf.mxu1  ;;  %v1504_v30 = vpop.f32.mrf.mxu0  ;;  %3017 = vmatprep.subr.mxu1 %v2137_v51  ;;  %v8091_v54 = vmax.f32 %v8090_v60, 0.0  ;;  %3446 = vmatpush1.msra.mxu0 %v3356_v61 }
 0x267   : > { %8085 = vst [vmem:[#allocation35_spill] sm:$0xff] %v6374_v49  ;;  %2841 = vmatmul.mubr.f32.gmra.mxu0 %v8087_v59  ;;  %v6378_v24 = vadd.f32 %v1757_v46, %v1501_v19  ;;  %v1505_v22 = vadd.f32 %v1504_v30, %v5759_v25  ;;  %2667 = vmatprep.mubr.f32.mxu1 %v8089_v45  ;;  %v3355_v46 = vld [vmem:[#allocation10 + $0x18] sm:$0xff]  ;;  %v8094_v45 = vld [vmem:[#allocation56_spill] sm:$0xff]  ;;  %v8099_v2 = vmax.f32 %v6374_v49, 0.0 }
 0x268   : > { %2846 = vmatprep.mubr.f32.mxu0 %v8091_v54  ;;  %v1761_v53 = vpop.f32.mrf.mxu1  ;;  %v1506_v8 = vpop.f32.mrf.mxu0  ;;  %3018 = vmatpush2.msra.mxu1 %v2136_v7  ;;  %v8095_v60 = vmax.f32 %v8094_v45, 0.0  ;;  %v2129_v30 = vld [vmem:[#allocation8 + $0x698] sm:$0xff] }
 0x269   : > { %8088 = vst [vmem:[#allocation34_spill] sm:$0xff] %v6378_v24  ;;  %2668 = vmatmul.mubr.f32.gmra.mxu1 %v8092_v57  ;;  %v1507_v19 = vadd.f32 %v1506_v8, %v5780_v39  ;;  %3447 = vmatprep.subr.mxu0 %v8004_v58  ;;  %v6391_v14 = vadd.f32 %v1761_v53, %v1505_v22  ;;  %v2132_v57 = vld [vmem:[#allocation8 + $0x6b0] sm:$0xff]  ;;  %v8096_v7 = vmax.f32 %v6378_v24, 0.0 }
 0x26a   : > { %v1763_v54 = vpop.f32.mrf.mxu1  ;;  %v1510_v59 = vpop.f32.mrf.mxu0  ;;  %3019 = vmatprep.subr.mxu1 %v2133_v0  ;;  %v8097_v8 = vld [vmem:[#allocation58_spill] sm:$0xff]  ;;  %3448 = vmatpush1.msra.mxu0 %v3355_v46 }
 0x26b   : > { %8093 = vst [vmem:[#allocation37_spill] sm:$0xff] %v6391_v14  ;;  %2847 = vmatmul.mubr.f32.gmra.mxu0 %v8095_v60  ;;  %v6395_v61 = vadd.f32 %v1763_v54, %v1507_v19  ;;  %v1511_v51 = vadd.f32 %v1510_v59, %v5759_v25  ;;  %2673 = vmatprep.mubr.f32.mxu1 %v8096_v7  ;;  %v8098_v62 = vmax.f32 %v8097_v8, 0.0  ;;  %v3354_v54 = vld [vmem:[#allocation10 + $0x10] sm:$0xff]  ;;  %v8101_v7 = vld [vmem:[#allocation60_spill] sm:$0xff]  ;;  %v2125_v59 = vld [vmem:[#allocation8 + $0x678] sm:$0xff]  ;;  %v8107_v24 = vmax.f32 %v6391_v14, 0.0 }
 0x26c   : > { %v1767_v22 = vpop.f32.mrf.mxu1  ;;  %v1512_v53 = vpop.f32.mrf.mxu0  ;;  %3020 = vmatpush2.msra.mxu1 %v2132_v57  ;;  %3449 = vmatprep.subr.mxu0 %v8004_v58  ;;  %v8102_v8 = vmax.f32 %v8101_v7, 0.0 }
 0x26d   : > { %2852 = vmatprep.mubr.f32.mxu0 %v8098_v62  ;;  %2674 = vmatmul.mubr.f32.gmra.mxu1 %v8099_v2  ;;  %v1513_v19 = vadd.f32 %v1512_v53, %v5780_v39  ;;  %v6408_v45 = vadd.f32 %v1767_v22, %v1511_v51  ;;  %v2128_v2 = vld [vmem:[#allocation8 + $0x690] sm:$0xff]  ;;  %v8104_v57 = vmax.f32 %v6395_v61, 0.0  ;;  %v8105_v53 = vld [vmem:[#allocation63_spill] sm:$0xff] }
 0x26e   : > { %v1769_v62 = vpop.f32.mrf.mxu1  ;;  %v1516_v60 = vpop.f32.mrf.mxu0  ;;  %3021 = vmatprep.subr.mxu1 %v2129_v30  ;;  %v8106_v49 = vmax.f32 %v8105_v53, 0.0  ;;  %3450 = vmatpush1.msra.mxu0 %v3354_v54 }
 0x26f   : > { %8100 = vst [vmem:[#allocation36_spill] sm:$0xff] %v6408_v45  ;;  %2853 = vmatmul.mubr.f32.gmra.mxu0 %v8102_v8  ;;  %v6412_v46 = vadd.f32 %v1769_v62, %v1513_v19  ;;  %v1517_v0 = vadd.f32 %v1516_v60, %v5759_v25  ;;  %2679 = vmatprep.mubr.f32.mxu1 %v8104_v57  ;;  %v3353_v62 = vld [vmem:[#allocation10 + $0x8] sm:$0xff]  ;;  %v8108_v57 = vmax.f32 %v5684_v12, 0.0  ;;  %v2121_v60 = vld [vmem:[#allocation8 + $0x658] sm:$0xff]  ;;  %v8111_v14 = vmax.f32 %v6408_v45, 0.0 }
 0x270   : > { %2858 = vmatprep.mubr.f32.mxu0 %v8106_v49  ;;  %v1773_v51 = vpop.f32.mrf.mxu1  ;;  %v1518_v22 = vpop.f32.mrf.mxu0  ;;  %3022 = vmatpush2.msra.mxu1 %v2128_v2  ;;  %v8109_v2 = vld [vmem:[#allocation64_spill] sm:$0xff] }
 0x271   : > { %8103 = vst [vmem:[#allocation39_spill] sm:$0xff] %v6412_v46  ;;  %2680 = vmatmul.mubr.f32.gmra.mxu1 %v8107_v24  ;;  %v7688_v30 = vmax.f32 %v6412_v46, 0.0  ;;  %v1519_v19 = vadd.f32 %v1518_v22, %v5780_v39  ;;  %3451 = vmatprep.subr.mxu0 %v8004_v58  ;;  %v6425_v7 = vadd.f32 %v1773_v51, %v1517_v0  ;;  %v2124_v24 = vld [vmem:[#allocation8 + $0x670] sm:$0xff]  ;;  %v8110_v22 = vmax.f32 %v8109_v2, 0.0 }
 0x272   : > { %v1775_v49 = vpop.f32.mrf.mxu1  ;;  %v1522_v8 = vpop.f32.mrf.mxu0  ;;  %3023 = vmatprep.subr.mxu1 %v2125_v59  ;;  %3452 = vmatpush1.msra.mxu0 %v3353_v62 }
 0x273   : > { %2859 = vmatmul.mubr.f32.gmra.mxu0 %v8108_v57  ;;  %v6429_v54 = vadd.f32 %v1775_v49, %v1519_v19  ;;  %v1523_v53 = vadd.f32 %v1522_v8, %v5759_v25  ;;  %2685 = vmatprep.mubr.f32.mxu1 %v7688_v30  ;;  %v3352_v19 = vld [vmem:[#allocation10] sm:$0xff]  ;;  %v2117_v49 = vld [vmem:[#allocation8 + $0x638] sm:$0xff]  ;;  %v8117_v46 = vmax.f32 %v6425_v7, 0.0 }
 0x274   : > { %2864 = vmatprep.mubr.f32.mxu0 %v8110_v22  ;;  %v1779_v0 = vpop.f32.mrf.mxu1  ;;  %v1524_v51 = vpop.f32.mrf.mxu0  ;;  %3024 = vmatpush2.msra.mxu1 %v2124_v24  ;;  %v8112_v22 = vld [vmem:[#allocation66_spill] sm:$0xff] }
 0x275   : > { %2686 = vmatmul.mubr.f32.gmra.mxu1 %v8111_v14  ;;  %v1525_v59 = vadd.f32 %v1524_v51, %v5780_v39  ;;  %3453 = vmatprep.subr.mxu0 %v8004_v58  ;;  %v6442_v8 = vadd.f32 %v1779_v0, %v1523_v53  ;;  %v8113_v30 = vmax.f32 %v8112_v22, 0.0  ;;  %v2120_v14 = vld [vmem:[#allocation8 + $0x650] sm:$0xff]  ;;  %v8114_v24 = vmax.f32 %v6429_v54, 0.0  ;;  %v8115_v51 = vld [vmem:[#allocation69_spill] sm:$0xff] }
 0x276   : > { %v1781_v57 = vpop.f32.mrf.mxu1  ;;  %v1528_v2 = vpop.f32.mrf.mxu0  ;;  %3025 = vmatprep.subr.mxu1 %v2121_v60  ;;  %v8116_v45 = vmax.f32 %v8115_v51, 0.0  ;;  %3454 = vmatpush1.msra.mxu0 %v3352_v19  ;;  %v8118_v22 = vmax.f32 %v5733_v11, 0.0 }
 0x277   : > { %2865 = vmatmul.mubr.f32.gmra.mxu0 %v8113_v30  ;;  %v6446_v62 = vadd.f32 %v1781_v57, %v1525_v59  ;;  %v1529_v12 = vadd.f32 %v1528_v2, %v5759_v25  ;;  %2691 = vmatprep.mubr.f32.mxu1 %v8114_v24  ;;  %v3383_v25 = vld [vmem:[#allocation10 + $0xf8] sm:$0xff]  ;;  %v7693_v59 = vmax.f32 %v6442_v8, 0.0 }
 0x278   : > { %2870 = vmatprep.mubr.f32.mxu0 %v8116_v45  ;;  %v1785_v53 = vpop.f32.mrf.mxu1  ;;  %v1530_v0 = vpop.f32.mrf.mxu0  ;;  %3026 = vmatpush2.msra.mxu1 %v2120_v14  ;;  %v2113_v14 = vld [vmem:[#allocation8 + $0x618] sm:$0xff] }
 0x279   : > { %2692 = vmatmul.mubr.f32.gmra.mxu1 %v8117_v46  ;;  %v7694_v30 = vmax.f32 %v6446_v62, 0.0  ;;  %v1531_v60 = vadd.f32 %v1530_v0, %v5780_v39  ;;  %3455 = vmatprep.subr.mxu0 %v8004_v58  ;;  %v6459_v57 = vadd.f32 %v1785_v53, %v1529_v12  ;;  %v2116_v46 = vld [vmem:[#allocation8 + $0x630] sm:$0xff]  ;;  %v8119_v39 = vmax.f32 %v5743_v38, 0.0  ;;  %v8120_v53 = vld [vmem:[#allocation71_spill] sm:$0xff] }
 0x27a   : > { %v1787_v45 = vpop.f32.mrf.mxu1  ;;  %v6461_v2 = vpop.f32.mrf.mxu0  ;;  %3027 = vmatprep.subr.mxu1 %v2117_v49  ;;  %3456 = vmatpush2.msra.mxu0 %v3383_v25  ;;  %v3382_v12 = vld [vmem:[#allocation10 + $0xf0] sm:$0xff]  ;;  %v8121_v38 = vmax.f32 %v8120_v53, 0.0  ;;  %v8126_v53 = vld [vmem:[#allocation73_spill] sm:$0xff] }
 0x27b   : > { %2871 = vmatmul.mubr.f32.gmra.mxu0 %v8118_v22  ;;  %v6465_v19 = vadd.f32 %v1787_v45, %v1531_v60  ;;  %2697 = vmatprep.mubr.f32.mxu1 %v7694_v30  ;;  %v7691_v49 = vmax.f32 %v6459_v57, 0.0  ;;  %v2112_v0 = vld [vmem:[#allocation8 + $0x610] sm:$0xff]  ;;  %v8122_v60 = vmax.f32 %v5775_v63, 0.0  ;;  %v3381_v45 = vld [vmem:[#allocation10 + $0xe8] sm:$0xff]  ;;  %v8123_v22 = vmax.f32 %v5806_v37, 0.0  ;;  %v3380_v63 = vld [vmem:[#allocation10 + $0xe0] sm:$0xff] }
 0x27c   : > { %2876 = vmatprep.mubr.f32.mxu0 %v8119_v39  ;;  %v6471_v24 = vpop.f32.mrf.mxu0  ;;  %3028 = vmatpush2.msra.mxu1 %v2116_v46  ;;  %v8124_v39 = vld [vmem:[#allocation70_spill] sm:$0xff]  ;;  %v3379_v37 = vld [vmem:[#allocation10 + $0xd8] sm:$0xff] }
 0x27d   : > { %2698 = vmatmul.mubr.f32.gmra.mxu1 %v7693_v59  ;;  %v7692_v11 = vmax.f32 %v6465_v19, 0.0  ;;  %3457 = vmatprep.subr.mxu0 %v8004_v58 }
 0x27e   : > { %v6478_v51 = vpop.f32.mrf.mxu0  ;;  %3029 = vmatprep.subr.mxu1 %v2113_v14  ;;  %3458 = vmatpush2.msra.mxu0 %v3382_v12  ;;  %v8125_v14 = vmax.f32 %v8124_v39, 0.0  ;;  %v8128_v12 = vmax.f32 %v5802_v35, 0.0  ;;  %v8130_v39 = vmax.f32 %v5813_v44, 0.0 }
 0x27f   : > { %2877 = vmatmul.mubr.f32.gmra.mxu0 %v8121_v38  ;;  %2703 = vmatprep.mubr.f32.mxu1 %v7692_v11  ;;  %v8127_v38 = vmax.f32 %v8126_v53, 0.0  ;;  %v8132_v53 = vmax.f32 %v5826_v47, 0.0  ;;  %v3410_v11 = vld [vmem:[#allocation10 + $0x1d0] sm:$0xff] }
 0x280   : > { %2882 = vmatprep.mubr.f32.mxu0 %v8122_v60  ;;  %v6486_v25 = vpop.f32.mrf.mxu0  ;;  %3030 = vmatpush2.msra.mxu1 %v2112_v0  ;;  %v8129_v0 = vmax.f32 %v5832_v41, 0.0  ;;  %v3377_v41 = vld [vmem:[#allocation10 + $0xc8] sm:$0xff] }
 0x281   : > { %2704 = vmatmul.mubr.f32.gmra.mxu1 %v7691_v49  ;;  %3459 = vmatprep.subr.mxu0 %v8004_v58 }
 0x282   : > { %3031 = vmatprep.mubr.f32.mxu1 %v8123_v22  ;;  %v6492_v46 = vpop.f32.mrf.mxu0  ;;  %3460 = vmatpush2.msra.mxu0 %v3381_v45  ;;  %v3378_v45 = vld [vmem:[#allocation10 + $0xd0] sm:$0xff] }
 0x283   : > { %2883 = vmatmul.mubr.f32.gmra.mxu0 %v8125_v14  ;;  %3461 = vmatprep.subr.mxu0 %v8004_v58  ;;  %v8131_v14 = vmax.f32 %v5819_v56, 0.0  ;;  %v3376_v56 = vld [vmem:[#allocation10 + $0xc0] sm:$0xff] }
 0x284   : > { %2888 = vmatprep.mubr.f32.mxu0 %v8127_v38  ;;  %v6499_v60 = vpop.f32.mrf.mxu0  ;;  %3462 = vmatpush2.msra.mxu0 %v3380_v63  ;;  %v8133_v63 = vmax.f32 %v5861_v48, 0.0  ;;  %v8134_v38 = vmax.f32 %v5841_v33, 0.0  ;;  %v3375_v48 = vld [vmem:[#allocation10 + $0xb8] sm:$0xff] }
 0x285   : > { %3032 = vmatmul.mubr.f32.vlgmr.msra.gmra.mxu1 %v8128_v12  ;;  %3463 = vmatprep.subr.mxu0 %v8004_v58  ;;  %v8135_v12 = vmax.f32 %v5849_v1, 0.0  ;;  %v3374_v1 = vld [vmem:[#allocation10 + $0xb0] sm:$0xff] }
 0x286   : > { %3037 = vmatprep.mubr.f32.mxu1 %v8129_v0  ;;  %v6506_v22 = vpop.f32.mrf.mxu0  ;;  %3464 = vmatpush2.msra.mxu0 %v3379_v37  ;;  %v8136_v37 = vmax.f32 %v5854_v31, 0.0  ;;  %v8137_v0 = vmax.f32 %v5887_v6, 0.0  ;;  %v3373_v6 = vld [vmem:[#allocation10 + $0xa8] sm:$0xff] }
 0x287   : > { %2889 = vmatmul.mubr.f32.gmra.mxu0 %v8130_v39  ;;  %3465 = vmatprep.subr.mxu0 %v8004_v58  ;;  %v8138_v39 = vmax.f32 %v5859_v15, 0.0 }
 0x288   : > { %2894 = vmatprep.mubr.f32.mxu0 %v8131_v14  ;;  %v6513_v35 = vpop.f32.mrf.mxu0  ;;  %3466 = vmatpush2.msra.mxu0 %v3378_v45  ;;  %v8139_v45 = vmax.f32 %v5872_v34, 0.0  ;;  %v8140_v14 = vmax.f32 %v5882_v3, 0.0  ;;  %v3372_v34 = vld [vmem:[#allocation10 + $0xa0] sm:$0xff] }
 0x289   : > { %3038 = vmatmul.mubr.f32.gmra.mxu1 %v8132_v53  ;;  %3467 = vmatprep.subr.mxu0 %v8004_v58  ;;  %v8141_v53 = vmax.f32 %v5914_v5, 0.0  ;;  %v3371_v5 = vld [vmem:[#allocation10 + $0x98] sm:$0xff] }
 0x28a   : > { %3043 = vmatprep.mubr.f32.mxu1 %v8133_v63  ;;  %v6520_v44 = vpop.f32.mrf.mxu0  ;;  %3468 = vmatpush2.msra.mxu0 %v3377_v41  ;;  %v8142_v41 = vld [vmem:[#allocation72_spill] sm:$0xff] }
 0x28b   : > { %2895 = vmatmul.mubr.f32.gmra.mxu0 %v8134_v38  ;;  %3469 = vmatprep.subr.mxu0 %v8004_v58  ;;  %v8143_v63 = vmax.f32 %v8142_v41, 0.0  ;;  %v8144_v38 = vld [vmem:[#allocation75_spill] sm:$0xff] }
 0x28c   : > { %2900 = vmatprep.mubr.f32.mxu0 %v8135_v12  ;;  %v6527_v47 = vpop.f32.mrf.mxu0  ;;  %3470 = vmatpush2.msra.mxu0 %v3376_v56  ;;  %v8145_v56 = vmax.f32 %v8144_v38, 0.0  ;;  %v8146_v12 = vmax.f32 %v5910_v27, 0.0 }
 0x28d   : > { %3044 = vmatmul.mubr.f32.gmra.mxu1 %v8136_v37  ;;  %3471 = vmatprep.subr.mxu0 %v8004_v58  ;;  %v8147_v37 = vmax.f32 %v5943_v50, 0.0  ;;  %v3369_v50 = vld [vmem:[#allocation10 + $0x88] sm:$0xff] }
 0x28e   : > { %3049 = vmatprep.mubr.f32.mxu1 %v8137_v0  ;;  %v6534_v33 = vpop.f32.mrf.mxu0  ;;  %3472 = vmatpush2.msra.mxu0 %v3375_v48  ;;  %v8148_v0 = vmax.f32 %v5923_v9, 0.0 }
 0x28f   : > { %2901 = vmatmul.mubr.f32.gmra.mxu0 %v8138_v39  ;;  %3473 = vmatprep.subr.mxu0 %v8004_v58  ;;  %v3370_v39 = vld [vmem:[#allocation10 + $0x90] sm:$0xff] }
 0x290   : > { %2906 = vmatprep.mubr.f32.mxu0 %v8139_v45  ;;  %v6541_v31 = vpop.f32.mrf.mxu0  ;;  %3474 = vmatpush2.msra.mxu0 %v3374_v1  ;;  %v8149_v1 = vld [vmem:[#allocation74_spill] sm:$0xff] }
 0x291   : > { %3050 = vmatmul.mubr.f32.gmra.mxu1 %v8140_v14  ;;  %3475 = vmatprep.subr.mxu0 %v8004_v58  ;;  %v8150_v45 = vmax.f32 %v8149_v1, 0.0  ;;  %v8151_v14 = vmax.f32 %v5939_v32, 0.0  ;;  %v8161_v1 = vld [vmem:[#allocation78_spill] sm:$0xff] }
 0x292   : > { %3055 = vmatprep.mubr.f32.mxu1 %v8141_v53  ;;  %v6548_v15 = vpop.f32.mrf.mxu0  ;;  %3476 = vmatpush2.msra.mxu0 %v3373_v6  ;;  %v8152_v6 = vmax.f32 %v5971_v17, 0.0  ;;  %v8153_v53 = vld [vmem:[#allocation77_spill] sm:$0xff]  ;;  %v3399_v17 = vld [vmem:[#allocation10 + $0x178] sm:$0xff] }
 0x293   : > { %2907 = vmatmul.mubr.f32.gmra.mxu0 %v8143_v63  ;;  %3477 = vmatprep.subr.mxu0 %v8004_v58  ;;  %v8154_v41 = vmax.f32 %v8153_v53, 0.0  ;;  %v3368_v63 = vld [vmem:[#allocation10 + $0x80] sm:$0xff]  ;;  %v8165_v53 = vmax.f32 %v6008_v55, 0.0 }
 0x294   : > { %2912 = vmatprep.mubr.f32.mxu0 %v8145_v56  ;;  %v6555_v3 = vpop.f32.mrf.mxu0  ;;  %3478 = vmatpush2.msra.mxu0 %v3372_v34  ;;  %v8155_v34 = vld [vmem:[#allocation76_spill] sm:$0xff]  ;;  %v8157_v56 = vld [vmem:[#allocation79_spill] sm:$0xff] }
 0x295   : > { %3056 = vmatmul.mubr.f32.gmra.mxu1 %v8146_v12  ;;  %3479 = vmatprep.subr.mxu0 %v8004_v58  ;;  %v8156_v38 = vmax.f32 %v8155_v34, 0.0  ;;  %v8158_v12 = vmax.f32 %v8157_v56, 0.0  ;;  %v8169_v56 = vmax.f32 %v6055_v52, 0.0  ;;  %v3393_v52 = vld [vmem:[#allocation10 + $0x148] sm:$0xff] }
 0x296   : > { %3061 = vmatprep.mubr.f32.mxu1 %v8147_v37  ;;  %v6562_v48 = vpop.f32.mrf.mxu0  ;;  %3480 = vmatpush2.msra.mxu0 %v3371_v5  ;;  %v8159_v5 = vmax.f32 %v5999_v40, 0.0  ;;  %v3397_v40 = vld [vmem:[#allocation10 + $0x168] sm:$0xff] }
 0x297   : > { %2913 = vmatmul.mubr.f32.gmra.mxu0 %v8148_v0  ;;  %3481 = vmatprep.subr.mxu0 %v8004_v58  ;;  %v8160_v0 = vmax.f32 %v5980_v16, 0.0 }
 0x298   : > { %2918 = vmatprep.mubr.f32.mxu0 %v8150_v45  ;;  %v6569_v27 = vpop.f32.mrf.mxu0  ;;  %3482 = vmatpush2.msra.mxu0 %v3370_v39  ;;  %v3398_v39 = vld [vmem:[#allocation10 + $0x170] sm:$0xff]  ;;  %v8162_v45 = vmax.f32 %v8161_v1, 0.0 }
 0x299   : > { %3062 = vmatmul.mubr.f32.gmra.mxu1 %v8151_v14  ;;  %3483 = vmatprep.subr.mxu0 %v8004_v58 }
 0x29a   : > { %3067 = vmatprep.mubr.f32.mxu1 %v8152_v6  ;;  %v6576_v9 = vpop.f32.mrf.mxu0  ;;  %3484 = vmatpush2.msra.mxu0 %v3369_v50  ;;  %v8163_v50 = vmax.f32 %v5995_v4, 0.0  ;;  %v8164_v6 = vmax.f32 %v6027_v10, 0.0  ;;  %v3395_v10 = vld [vmem:[#allocation10 + $0x158] sm:$0xff] }
 0x29b   : > { %2919 = vmatmul.mubr.f32.gmra.mxu0 %v8154_v41  ;;  %3485 = vmatprep.subr.mxu0 %v8004_v58  ;;  %v3396_v41 = vld [vmem:[#allocation10 + $0x160] sm:$0xff] }
 0x29c   : > { %2924 = vmatprep.mubr.f32.mxu0 %v8156_v38  ;;  %v6583_v32 = vpop.f32.mrf.mxu0  ;;  %3486 = vmatpush2.msra.mxu0 %v3368_v63  ;;  %v8166_v63 = vld [vmem:[#allocation81_spill] sm:$0xff]  ;;  %v8168_v38 = vmax.f32 %v6023_v28, 0.0 }
 0x29d   : > { %3068 = vmatmul.mubr.f32.gmra.mxu1 %v8158_v12  ;;  %3648 = vmatprep.subr.mxu1 %v8004_v58  ;;  %v8167_v34 = vmax.f32 %v8166_v63, 0.0  ;;  %v8170_v12 = vmax.f32 %v6036_v23, 0.0  ;;  %v8179_v63 = vmax.f32 %v6111_v20, 0.0  ;;  %v3389_v20 = vld [vmem:[#allocation10 + $0x128] sm:$0xff] }
 0x29e   : > { %3073 = vmatprep.mubr.f32.mxu1 %v8159_v5  ;;  %v6590_v37 = vpop.f32.mrf.mxu0  ;;  %3649 = vmatpush1.msra.mxu1 %v3399_v17  ;;  %v3394_v17 = vld [vmem:[#allocation10 + $0x150] sm:$0xff]  ;;  %v8171_v5 = vld [vmem:[#allocation80_spill] sm:$0xff] }
 0x29f   : > { %2925 = vmatmul.mubr.f32.gmra.mxu0 %v8160_v0  ;;  %3650 = vmatprep.subr.mxu1 %v8004_v58  ;;  %v8172_v0 = vmax.f32 %v8171_v5, 0.0  ;;  %v8186_v5 = vld [vmem:[#allocation85_spill] sm:$0xff] }
 0x2a0   : > { %2930 = vmatprep.mubr.f32.mxu0 %v8162_v45  ;;  %v6597_v14 = vpop.f32.mrf.mxu0  ;;  %3651 = vmatpush1.msra.mxu1 %v3398_v39  ;;  %v8173_v39 = vld [vmem:[#allocation83_spill] sm:$0xff]  ;;  %v8175_v45 = vmax.f32 %v6083_v36, 0.0 }
 0x2a1   : > { %3074 = vmatmul.mubr.f32.gmra.mxu1 %v8163_v50  ;;  %3652 = vmatprep.subr.mxu1 %v8004_v58  ;;  %v8174_v1 = vmax.f32 %v8173_v39, 0.0  ;;  %v8176_v50 = vmax.f32 %v6064_v26, 0.0  ;;  %v3391_v36 = vld [vmem:[#allocation10 + $0x138] sm:$0xff]  ;;  %v8188_v39 = vld [vmem:[#allocation84_spill] sm:$0xff] }
 0x2a2   : > { %3079 = vmatprep.mubr.f32.mxu1 %v8164_v6  ;;  %v6604_v16 = vpop.f32.mrf.mxu0  ;;  %3653 = vmatpush1.msra.mxu1 %v3397_v40  ;;  %v3392_v40 = vld [vmem:[#allocation10 + $0x140] sm:$0xff]  ;;  %v8177_v6 = vmax.f32 %v6069_v43, 0.0  ;;  %v3390_v43 = vld [vmem:[#allocation10 + $0x130] sm:$0xff] }
 0x2a3   : > { %2931 = vmatmul.mubr.f32.gmra.mxu0 %v8165_v53  ;;  %3654 = vmatprep.subr.mxu1 %v8004_v58 }
 0x2a4   : > { %2936 = vmatprep.mubr.f32.mxu0 %v8167_v34  ;;  %v6611_v4 = vpop.f32.mrf.mxu0  ;;  %3655 = vmatpush1.msra.mxu1 %v3396_v41  ;;  %v8178_v41 = vmax.f32 %v6079_v42, 0.0  ;;  %v8180_v34 = vmax.f32 %v6092_v18, 0.0 }
 0x2a5   : > { %3080 = vmatmul.mubr.f32.gmra.mxu1 %v8168_v38  ;;  %3656 = vmatprep.subr.mxu1 %v8004_v58  ;;  %v8181_v38 = vmax.f32 %v6100_v29, 0.0  ;;  %v3388_v29 = vld [vmem:[#allocation10 + $0x120] sm:$0xff] }
 0x2a6   : > { %3085 = vmatprep.mubr.f32.mxu1 %v8169_v56  ;;  %v6618_v55 = vpop.f32.mrf.mxu0  ;;  %3657 = vmatpush1.msra.mxu1 %v3395_v10  ;;  %v8182_v10 = vmax.f32 %v6107_v13, 0.0  ;;  %v8183_v56 = vmax.f32 %v6137_v21, 0.0  ;;  %v3387_v21 = vld [vmem:[#allocation10 + $0x118] sm:$0xff] }
 0x2a7   : > { %2937 = vmatmul.mubr.f32.gmra.mxu0 %v8170_v12  ;;  %3658 = vmatprep.subr.mxu1 %v8004_v58  ;;  %v8184_v12 = vld [vmem:[#allocation82_spill] sm:$0xff] }
 0x2a8   : > { %2942 = vmatprep.mubr.f32.mxu0 %v8172_v0  ;;  %v6625_v28 = vpop.f32.mrf.mxu0  ;;  %3659 = vmatpush1.msra.mxu1 %v3394_v17  ;;  %v8185_v17 = vmax.f32 %v8184_v12, 0.0  ;;  %v8187_v0 = vmax.f32 %v8186_v5, 0.0  ;;  %v3415_v5 = vld [vmem:[#allocation10 + $0x1f8] sm:$0xff] }
 0x2a9   : > { %3086 = vmatmul.mubr.f32.gmra.mxu1 %v8174_v1  ;;  %3660 = vmatprep.subr.mxu1 %v8004_v58  ;;  %v8189_v1 = vmax.f32 %v8188_v39, 0.0  ;;  %v8201_v39 = vld [vmem:[#allocation22_spill] sm:$0xff] }
 0x2aa   : > { %3091 = vmatprep.mubr.f32.mxu1 %v8175_v45  ;;  %v6632_v23 = vpop.f32.mrf.mxu0  ;;  %3661 = vmatpush1.msra.mxu1 %v3393_v52  ;;  %v8190_v52 = vld [vmem:[#allocation20_spill] sm:$0xff] }
 0x2ab   : > { %2943 = vmatmul.mubr.f32.gmra.mxu0 %v8176_v50  ;;  %3662 = vmatprep.subr.mxu1 %v8004_v58  ;;  %v8191_v45 = vmax.f32 %v8190_v52, 0.0  ;;  %v3414_v52 = vld [vmem:[#allocation10 + $0x1f0] sm:$0xff] }
 0x2ac   : > { %2948 = vmatprep.mubr.f32.mxu0 %v8177_v6  ;;  %v6639_v53 = vpop.f32.mrf.mxu0  ;;  %3663 = vmatpush1.msra.mxu1 %v3392_v40  ;;  %v8192_v40 = vld [vmem:[#allocation19_spill] sm:$0xff] }
 0x2ad   : > { %3092 = vmatmul.mubr.f32.gmra.mxu1 %v8178_v41  ;;  %3664 = vmatprep.subr.mxu1 %v8004_v58  ;;  %v8193_v6 = vmax.f32 %v8192_v40, 0.0  ;;  %v3386_v41 = vld [vmem:[#allocation10 + $0x110] sm:$0xff] }
 0x2ae   : > { %3097 = vmatprep.mubr.f32.mxu1 %v8179_v63  ;;  %v6646_v26 = vpop.f32.mrf.mxu0  ;;  %3665 = vmatpush1.msra.mxu1 %v3391_v36  ;;  %v8194_v63 = vld [vmem:[#allocation18_spill] sm:$0xff] }
 0x2af   : > { %2949 = vmatmul.mubr.f32.gmra.mxu0 %v8180_v34  ;;  %3666 = vmatprep.subr.mxu1 %v8004_v58  ;;  %v8195_v34 = vmax.f32 %v8194_v63, 0.0  ;;  %v8205_v63 = vld [vmem:[#allocation24_spill] sm:$0xff] }
 0x2b0   : > { %2954 = vmatprep.mubr.f32.mxu0 %v8181_v38  ;;  %v6653_v42 = vpop.f32.mrf.mxu0  ;;  %3667 = vmatpush1.msra.mxu1 %v3390_v43  ;;  %v3385_v43 = vld [vmem:[#allocation10 + $0x108] sm:$0xff]  ;;  %v8196_v38 = vld [vmem:[#allocation23_spill] sm:$0xff] }
 0x2b1   : > { %3098 = vmatmul.mubr.f32.gmra.mxu1 %v8182_v10  ;;  %3668 = vmatprep.subr.mxu1 %v8004_v58  ;;  %v8197_v10 = vmax.f32 %v8196_v38, 0.0 }
 0x2b2   : > { %3103 = vmatprep.mubr.f32.mxu1 %v8183_v56  ;;  %v6660_v18 = vpop.f32.mrf.mxu0  ;;  %3669 = vmatpush1.msra.mxu1 %v3389_v20  ;;  %v3384_v56 = vld [vmem:[#allocation10 + $0x100] sm:$0xff] }
 0x2b3   : > { %2955 = vmatmul.mubr.f32.gmra.mxu0 %v8185_v17  ;;  %3670 = vmatprep.subr.mxu1 %v8004_v58  ;;  %v8198_v17 = vld [vmem:[#allocation21_spill] sm:$0xff] }
 0x2b4   : > { %2960 = vmatprep.mubr.f32.mxu0 %v8187_v0  ;;  %v6667_v13 = vpop.f32.mrf.mxu0  ;;  %3671 = vmatpush1.msra.mxu1 %v3388_v29  ;;  %v8199_v29 = vmax.f32 %v8198_v17, 0.0  ;;  %v6697_v0 = vld [vmem:[%s7469_s4] sm:$0xf] }
 0x2b5   : > { %3104 = vmatmul.mubr.f32.gmra.mxu1 %v8189_v1  ;;  %3672 = vmatprep.subr.mxu1 %v8004_v58  ;;  %8200 = vst [vmem:[#allocation38_spill] sm:$0xff] %v6697_v0  ;;  %v8202_v1 = vmax.f32 %v8201_v39, 0.0 }
 0x2b6   : > { %3109 = vmatprep.mubr.f32.mxu1 %v8191_v45  ;;  %v6674_v50 = vpop.f32.mrf.mxu0  ;;  %3673 = vmatpush1.msra.mxu1 %v3387_v21  ;;  %v8203_v45 = vld [vmem:[#allocation17_spill] sm:$0xff] }
 0x2b7   : > { %2961 = vmatmul.mubr.f32.gmra.mxu0 %v8193_v6  ;;  %3674 = vmatprep.subr.mxu1 %v8004_v58  ;;  %v8204_v40 = vsub.s32 0, %v8203_v45  ;;  %v8207_v38 = vsub.s32 1, %v8203_v45 }
 0x2b8   : > { %v6679_v36 = vpop.f32.mrf.mxu0  ;;  %3675 = vmatpush1.msra.mxu1 %v3386_v41 }
 0x2b9   : > { %3110 = vmatmul.mubr.f32.gmra.mxu1 %v8195_v34  ;;  %3676 = vmatprep.subr.mxu1 %v8004_v58  ;;  %v6707_v6 = vrot.slane %v6697_v0, %v8204_v40  ;;  %v8206_v34 = vmax.f32 %v8205_v63, 0.0  ;;  %v8210_v63 = vld [vmem:[#allocation26_spill] sm:$0xff] }
 0x2ba   : > { %3115 = vmatprep.mubr.f32.mxu1 %v8197_v10  ;;  %v6686_v20 = vpop.f32.mrf.mxu0  ;;  %3677 = vmatpush1.msra.mxu1 %v3385_v43  ;;  %v3413_v43 = vld [vmem:[#allocation10 + $0x1e8] sm:$0xff]  ;;  %v6717_v10 = vrot.slane %v6697_v0, %v8207_v38  ;;  %v3411_v38 = vld [vmem:[#allocation10 + $0x1d8] sm:$0xff] }
 0x2bb   : > { %3678 = vmatprep.subr.mxu1 %v8004_v58  ;;  %v2263_v39 = vadd.f32 %v6461_v2, %v6707_v6  ;;  %v2275_v45 = vadd.f32 %v6492_v46, %v6707_v6 }
 0x2bc   : > { %v6689_v12 = vpop.f32.mrf.mxu0  ;;  %3679 = vmatpush1.msra.mxu1 %v3384_v56  ;;  %v8208_v56 = vld [vmem:[#allocation31_spill] sm:$0xff] }
 0x2bd   : > { %3116 = vmatmul.mubr.f32.gmra.mxu1 %v8199_v29  ;;  %3680 = vmatprep.subr.mxu1 %v8004_v58  ;;  %v8209_v17 = vmax.f32 %v8208_v56, 0.0  ;;  %v8212_v56 = vld [vmem:[#allocation16_spill] sm:$0xff] }
 0x2be   : > { %3121 = vmatprep.mubr.f32.mxu1 %v8202_v1  ;;  %v6701_v21 = vpop.f32.mrf.mxu0  ;;  %3681 = vmatpush2.msra.mxu1 %v3415_v5  ;;  %v3412_v5 = vld [vmem:[#allocation10 + $0x1e0] sm:$0xff] }
 0x2bf   : > { %3682 = vmatprep.subr.mxu1 %v8004_v58 }
 0x2c0   : > { %v6709_v41 = vpop.f32.mrf.mxu0  ;;  %3683 = vmatpush2.msra.mxu1 %v3414_v52  ;;  %v2265_v52 = vadd.f32 %v6471_v24, %v6717_v10  ;;  %v8214_v24 = vld [vmem:[#allocation33_spill] sm:$0xff] }
 0x2c1   : > { %3122 = vmatmul.mubr.f32.gmra.mxu1 %v8206_v34  ;;  %3684 = vmatprep.subr.mxu1 %v8004_v58  ;;  %v8211_v34 = vmax.f32 %v8210_v63, 0.0  ;;  %v2269_v63 = vadd.f32 %v6478_v51, %v6707_v6  ;;  %v8215_v0 = vmax.f32 %v8214_v24, 0.0 }
 0x2c2   : > { %3127 = vmatprep.mubr.f32.mxu1 %v8209_v17  ;;  %v6721_v29 = vpop.f32.mrf.mxu0  ;;  %3685 = vmatpush2.msra.mxu1 %v3413_v43  ;;  %v8213_v17 = vmax.f32 %v8212_v56, 0.0  ;;  %v8216_v56 = vld [vmem:[#allocation54_spill] sm:$0xff] }
 0x2c3   : > { %3686 = vmatprep.subr.mxu1 %v8004_v58 }
 0x2c4   : > { %v6726_v1 = vpop.f32.mrf.mxu0  ;;  %3687 = vmatpush2.msra.mxu1 %v3412_v5  ;;  %v3409_v5 = vld [vmem:[#allocation10 + $0x1c8] sm:$0xff] }
 0x2c5   : > { %v2519_v40 = vpop.f32.mrf.mxu1  ;;  %3128 = vmatmul.mubr.f32.gmra.mxu1 %v8211_v34  ;;  %3688 = vmatprep.subr.mxu1 %v8004_v58 }
 0x2c6   : > { %3133 = vmatprep.mubr.f32.mxu1 %v8213_v17  ;;  %v2520_v43 = vadd.f32 %v2519_v40, %v2263_v39  ;;  %v6735_v49 = vpop.f32.mrf.mxu0  ;;  %3689 = vmatpush2.msra.mxu1 %v3411_v38  ;;  %v2271_v39 = vadd.f32 %v6486_v25, %v6717_v10  ;;  %v8217_v17 = vmax.f32 %v8216_v56, 0.0  ;;  %v8219_v56 = vld [vmem:[#allocation50_spill] sm:$0xff] }
 0x2c7   : > { %v2521_v2 = vpop.f32.mrf.mxu1  ;;  %3690 = vmatprep.subr.mxu1 %v8004_v58 }
 0x2c8   : > { %v2522_v59 = vadd.f32 %v2521_v2, %v2265_v52  ;;  %v6740_v34 = vpop.f32.mrf.mxu0  ;;  %3691 = vmatpush2.msra.mxu1 %v3410_v11  ;;  %v3224_v38 = vmax.f32 %v2520_v43, 0.0  ;;  %v8221_v43 = vld [vmem:[#allocation57_spill] sm:$0xff] }
 0x2c9   : > { %v2525_v30 = vpop.f32.mrf.mxu1  ;;  %3134 = vmatmul.mubr.f32.gmra.mxu1 %v8215_v0  ;;  %3692 = vmatprep.subr.mxu1 %v8004_v58  ;;  %v3408_v0 = vld [vmem:[#allocation10 + $0x1c0] sm:$0xff] }
 0x2ca   : > { %v3225_v40 = vmax.f32 %v2522_v59, 0.0  ;;  %3139 = vmatprep.mubr.f32.mxu1 %v8217_v17  ;;  %v2526_v52 = vadd.f32 %v2525_v30, %v2269_v63  ;;  %v6749_v51 = vpop.f32.mrf.mxu0  ;;  %3693 = vmatpush2.msra.mxu1 %v3409_v5  ;;  %v8220_v17 = vmax.f32 %v8219_v56, 0.0  ;;  %v2277_v30 = vadd.f32 %v6499_v60, %v6717_v10  ;;  %v8223_v56 = vld [vmem:[#allocation52_spill] sm:$0xff] }
 0x2cb   : > { %v2527_v2 = vpop.f32.mrf.mxu1  ;;  %v8222_v63 = vmax.f32 %v8221_v43, 0.0  ;;  %3694 = vmatprep.subr.mxu1 %v8004_v58  ;;  %v2281_v60 = vadd.f32 %v6506_v22, %v6707_v6 }
 0x2cc   : > { %v2528_v24 = vadd.f32 %v2527_v2, %v2271_v39  ;;  %3487 = vmatprep.mubr.f32.mxu0 %v3225_v40  ;;  %v6754_v25 = vpop.f32.mrf.mxu0  ;;  %v3228_v5 = vmax.f32 %v2526_v52, 0.0  ;;  %3695 = vmatpush2.msra.mxu1 %v3408_v0  ;;  %v3407_v2 = vld [vmem:[#allocation10 + $0x1b8] sm:$0xff]  ;;  %v2283_v52 = vadd.f32 %v6513_v35, %v6717_v10 }
 0x2cd   : > { %8218 = vst [vmem:[#allocation41_spill] sm:$0xff] %v6754_v25  ;;  %v2531_v59 = vpop.f32.mrf.mxu1  ;;  %3140 = vmatmul.mubr.f32.gmra.mxu1 %v8220_v17  ;;  %3488 = vmatmul.mubr.f32.vlgmr.msra.gmra.mxu0 %v3224_v38  ;;  %v8224_v17 = vmax.f32 %v8223_v56, 0.0  ;;  %v2287_v56 = vadd.f32 %v6520_v44, %v6707_v6 }
 0x2ce   : > { %v3229_v11 = vmax.f32 %v2528_v24, 0.0  ;;  %3145 = vmatprep.mubr.f32.mxu1 %v8222_v63  ;;  %v2532_v39 = vadd.f32 %v2531_v59, %v2275_v45  ;;  %v6763_v40 = vpop.f32.mrf.mxu0  ;;  %3696 = vmatprep.subr.mxu1 %v8004_v58  ;;  %v3406_v45 = vld [vmem:[#allocation10 + $0x1b0] sm:$0xff]  ;;  %v8225_v59 = vld [vmem:[#allocation61_spill] sm:$0xff] }
 0x2cf   : > { %v2533_v46 = vpop.f32.mrf.mxu1  ;;  %3697 = vmatpush2.msra.mxu1 %v3407_v2 }
 0x2d0   : > { %v2534_v25 = vadd.f32 %v2533_v46, %v2277_v30  ;;  %3492 = vmatprep.mubr.f32.mxu0 %v3229_v11  ;;  %v6768_v38 = vpop.f32.mrf.mxu0  ;;  %v8226_v30 = vmax.f32 %v8225_v59, 0.0  ;;  %v3232_v11 = vmax.f32 %v2532_v39, 0.0  ;;  %3698 = vmatprep.subr.mxu1 %v8004_v58  ;;  %v2289_v39 = vadd.f32 %v6527_v47, %v6717_v10 }
 0x2d1   : > { %v2537_v24 = vpop.f32.mrf.mxu1  ;;  %3146 = vmatmul.mubr.f32.gmra.mxu1 %v8224_v17  ;;  %3493 = vmatmul.mubr.f32.gmra.mxu0 %v3228_v5  ;;  %v3405_v5 = vld [vmem:[#allocation10 + $0x1a8] sm:$0xff]  ;;  %v8227_v17 = vld [vmem:[#allocation59_spill] sm:$0xff]  ;;  %v2293_v47 = vadd.f32 %v6534_v33, %v6707_v6 }
 0x2d2   : > { %v3233_v0 = vmax.f32 %v2534_v25, 0.0  ;;  %3151 = vmatprep.mubr.f32.mxu1 %v8226_v30  ;;  %v2538_v43 = vadd.f32 %v2537_v24, %v2281_v60  ;;  %v6776_v63 = vpop.f32.mrf.mxu0  ;;  %3699 = vmatpush2.msra.mxu1 %v3406_v45  ;;  %v8228_v59 = vmax.f32 %v8227_v17, 0.0  ;;  %v8229_v60 = vld [vmem:[#allocation65_spill] sm:$0xff]  ;;  %v3404_v30 = vld [vmem:[#allocation10 + $0x1a0] sm:$0xff]  ;;  %v8231_v17 = vld [vmem:[#allocation62_spill] sm:$0xff] }
 0x2d3   : > { %v2539_v22 = vpop.f32.mrf.mxu1  ;;  %v8230_v24 = vmax.f32 %v8229_v60, 0.0  ;;  %3700 = vmatprep.subr.mxu1 %v8004_v58 }
 0x2d4   : > { %v2540_v46 = vadd.f32 %v2539_v22, %v2283_v52  ;;  %3497 = vmatprep.mubr.f32.mxu0 %v3233_v0  ;;  %v6781_v35 = vpop.f32.mrf.mxu0  ;;  %v3236_v45 = vmax.f32 %v2538_v43, 0.0  ;;  %3701 = vmatpush2.msra.mxu1 %v3405_v5  ;;  %v3403_v43 = vld [vmem:[#allocation10 + $0x198] sm:$0xff] }
 0x2d5   : > { %v2543_v25 = vpop.f32.mrf.mxu1  ;;  %3152 = vmatmul.mubr.f32.gmra.mxu1 %v8228_v59  ;;  %3498 = vmatmul.mubr.f32.gmra.mxu0 %v3232_v11  ;;  %v8232_v59 = vmax.f32 %v8231_v17, 0.0  ;;  %v2299_v17 = vadd.f32 %v6548_v15, %v6707_v6 }
 0x2d6   : > { %v3237_v2 = vmax.f32 %v2540_v46, 0.0  ;;  %3157 = vmatprep.mubr.f32.mxu1 %v8230_v24  ;;  %v2544_v52 = vadd.f32 %v2543_v25, %v2287_v56  ;;  %v6790_v0 = vpop.f32.mrf.mxu0  ;;  %3702 = vmatprep.subr.mxu1 %v8004_v58  ;;  %v2295_v56 = vadd.f32 %v6541_v31, %v6717_v10  ;;  %v8233_v25 = vld [vmem:[#allocation68_spill] sm:$0xff] }
 0x2d7   : > { %v2545_v44 = vpop.f32.mrf.mxu1  ;;  %3703 = vmatpush2.msra.mxu1 %v3404_v30 }
 0x2d8   : > { %v2546_v22 = vadd.f32 %v2545_v44, %v2289_v39  ;;  %3502 = vmatprep.mubr.f32.mxu0 %v3237_v2  ;;  %v6795_v11 = vpop.f32.mrf.mxu0  ;;  %v8234_v39 = vmax.f32 %v8233_v25, 0.0  ;;  %v3240_v2 = vmax.f32 %v2544_v52, 0.0  ;;  %3704 = vmatprep.subr.mxu1 %v8004_v58  ;;  %v2301_v52 = vadd.f32 %v6555_v3, %v6717_v10 }
 0x2d9   : > { %v2549_v46 = vpop.f32.mrf.mxu1  ;;  %3158 = vmatmul.mubr.f32.gmra.mxu1 %v8232_v59  ;;  %3503 = vmatmul.mubr.f32.gmra.mxu0 %v3236_v45  ;;  %v3402_v45 = vld [vmem:[#allocation10 + $0x190] sm:$0xff]  ;;  %v8235_v59 = vld [vmem:[#allocation67_spill] sm:$0xff]  ;;  %v2305_v3 = vadd.f32 %v6562_v48, %v6707_v6 }
 0x2da   : > { %v3241_v5 = vmax.f32 %v2546_v22, 0.0  ;;  %3163 = vmatprep.mubr.f32.mxu1 %v8234_v39  ;;  %v2550_v60 = vadd.f32 %v2549_v46, %v2293_v47  ;;  %v6803_v24 = vpop.f32.mrf.mxu0  ;;  %3705 = vmatpush2.msra.mxu1 %v3403_v43  ;;  %v8236_v25 = vmax.f32 %v8235_v59, 0.0  ;;  %v8237_v47 = vld [vmem:[#allocation27_spill] sm:$0xff]  ;;  %v3401_v39 = vld [vmem:[#allocation10 + $0x188] sm:$0xff] }
 0x2db   : > { %v2551_v33 = vpop.f32.mrf.mxu1  ;;  %v8238_v46 = vmax.f32 %v8237_v47, 0.0  ;;  %3706 = vmatprep.subr.mxu1 %v8004_v58  ;;  %v8239_v59 = vld [vmem:[#allocation25_spill] sm:$0xff] }
 0x2dc   : > { %v2552_v44 = vadd.f32 %v2551_v33, %v2295_v56  ;;  %3507 = vmatprep.mubr.f32.mxu0 %v3241_v5  ;;  %v6808_v31 = vpop.f32.mrf.mxu0  ;;  %v3244_v43 = vmax.f32 %v2550_v60, 0.0  ;;  %3707 = vmatpush2.msra.mxu1 %v3402_v45  ;;  %v3400_v60 = vld [vmem:[#allocation10 + $0x180] sm:$0xff] }
 0x2dd   : > { %v2555_v22 = vpop.f32.mrf.mxu1  ;;  %3164 = vmatmul.mubr.f32.gmra.mxu1 %v8236_v25  ;;  %3508 = vmatmul.mubr.f32.gmra.mxu0 %v3240_v2  ;;  %v8240_v25 = vmax.f32 %v8239_v59, 0.0 }
 0x2de   : > { %v3245_v30 = vmax.f32 %v2552_v44, 0.0  ;;  %3169 = vmatprep.mubr.f32.mxu1 %v8238_v46  ;;  %v2556_v56 = vadd.f32 %v2555_v22, %v2299_v17  ;;  %3708 = vmatprep.subr.mxu1 %v8004_v58  ;;  %v2307_v17 = vadd.f32 %v6569_v27, %v6717_v10  ;;  %v8241_v22 = vld [vmem:[#allocation28_spill] sm:$0xff] }
 0x2df   : > { %v6817_v5 = vpop.f32.mrf.mxu0  ;;  %v2557_v15 = vpop.f32.mrf.mxu1  ;;  %3709 = vmatpush2.msra.mxu1 %v3401_v39 }
 0x2e0   : > { %v2558_v33 = vadd.f32 %v2557_v15, %v2301_v52  ;;  %3512 = vmatprep.mubr.f32.mxu0 %v3245_v30  ;;  %v8242_v52 = vmax.f32 %v8241_v22, 0.0  ;;  %v3248_v30 = vmax.f32 %v2556_v56, 0.0  ;;  %3710 = vmatprep.subr.mxu1 %v8004_v58  ;;  %v2313_v56 = vadd.f32 %v6583_v32, %v6717_v10 }
 0x2e1   : > { %v6822_v2 = vpop.f32.mrf.mxu0  ;;  %v2561_v44 = vpop.f32.mrf.mxu1  ;;  %3170 = vmatmul.mubr.f32.gmra.mxu1 %v8240_v25  ;;  %3513 = vmatmul.mubr.f32.gmra.mxu0 %v3244_v43  ;;  %v2311_v43 = vadd.f32 %v6576_v9, %v6707_v6  ;;  %v2317_v22 = vadd.f32 %v6590_v37, %v6707_v6  ;;  %v2319_v32 = vadd.f32 %v6597_v14, %v6717_v10 }
 0x2e2   : > { %v3249_v45 = vmax.f32 %v2558_v33, 0.0  ;;  %3175 = vmatprep.mubr.f32.mxu1 %v8242_v52  ;;  %v2562_v47 = vadd.f32 %v2561_v44, %v2305_v3  ;;  %3711 = vmatpush2.msra.mxu1 %v3400_v60  ;;  %v8243_v33 = vld [vmem:[#allocation29_spill] sm:$0xff]  ;;  %v8245_v3 = vld [vmem:[#allocation32_spill] sm:$0xff]  ;;  %v2325_v14 = vadd.f32 %v6611_v4, %v6717_v10 }
 0x2e3   : > { %v6830_v46 = vpop.f32.mrf.mxu0  ;;  %v2563_v48 = vpop.f32.mrf.mxu1  ;;  %v8244_v25 = vmax.f32 %v8243_v33, 0.0  ;;  %v8246_v44 = vmax.f32 %v8245_v3, 0.0  ;;  %v2323_v3 = vadd.f32 %v6604_v16, %v6707_v6 }
 0x2e4   : > { %v2564_v15 = vadd.f32 %v2563_v48, %v2307_v17  ;;  %3517 = vmatprep.mubr.f32.mxu0 %v3249_v45  ;;  %v3252_v58 = vmax.f32 %v2562_v47, 0.0  ;;  %v8247_v48 = vld [vmem:[#allocation30_spill] sm:$0xff] }
 0x2e5   : > { %v6835_v59 = vpop.f32.mrf.mxu0  ;;  %v2567_v27 = vpop.f32.mrf.mxu1  ;;  %3176 = vmatmul.mubr.f32.gmra.mxu1 %v8244_v25  ;;  %3518 = vmatmul.mubr.f32.gmra.mxu0 %v3248_v30  ;;  %v8248_v33 = vmax.f32 %v8247_v48, 0.0 }
 0x2e6   : > { %v3253_v39 = vmax.f32 %v2564_v15, 0.0  ;;  %3181 = vmatprep.mubr.f32.mxu1 %v8246_v44  ;;  %v2568_v17 = vadd.f32 %v2567_v27, %v2311_v43  ;;  %v8249_v15 = vld [vmem:[#allocation34_spill] sm:$0xff] }
 0x2e7   : > { %v6843_v60 = vpop.f32.mrf.mxu0  ;;  %v2569_v45 = vpop.f32.mrf.mxu1  ;;  %v8250_v43 = vmax.f32 %v8249_v15, 0.0 }
 0x2e8   : > { %v2570_v9 = vadd.f32 %v2569_v45, %v2313_v56  ;;  %3522 = vmatprep.mubr.f32.mxu0 %v3253_v39  ;;  %v3256_v27 = vmax.f32 %v2568_v17, 0.0  ;;  %v8251_v45 = vld [vmem:[#allocation35_spill] sm:$0xff] }
 0x2e9   : > { %v6847_v52 = vpop.f32.mrf.mxu0  ;;  %v2573_v30 = vpop.f32.mrf.mxu1  ;;  %3182 = vmatmul.mubr.f32.gmra.mxu1 %v8248_v33  ;;  %3523 = vmatmul.mubr.f32.gmra.mxu0 %v3252_v58  ;;  %v8252_v48 = vmax.f32 %v8251_v45, 0.0 }
 0x2ea   : > { %v3257_v47 = vmax.f32 %v2570_v9, 0.0  ;;  %3187 = vmatprep.mubr.f32.mxu1 %v8250_v43  ;;  %v2574_v25 = vadd.f32 %v2573_v30, %v2317_v22  ;;  %v8253_v9 = vmax.f32 %v6395_v61, 0.0  ;;  %v2331_v61 = vadd.f32 %v6625_v28, %v6717_v10 }
 0x2eb   : > { %v6855_v56 = vpop.f32.mrf.mxu0  ;;  %v2575_v39 = vpop.f32.mrf.mxu1  ;;  %v2337_v28 = vadd.f32 %v6639_v53, %v6717_v10 }
 0x2ec   : > { %v2576_v37 = vadd.f32 %v2575_v39, %v2319_v32  ;;  %3527 = vmatprep.mubr.f32.mxu0 %v3257_v47  ;;  %v3260_v22 = vmax.f32 %v2574_v25, 0.0  ;;  %v2329_v47 = vadd.f32 %v6618_v55, %v6707_v6  ;;  %v8256_v25 = vld [vmem:[#allocation39_spill] sm:$0xff] }
 0x2ed   : > { %v6859_v44 = vpop.f32.mrf.mxu0  ;;  %v2579_v58 = vpop.f32.mrf.mxu1  ;;  %3188 = vmatmul.mubr.f32.gmra.mxu1 %v8252_v48  ;;  %3528 = vmatmul.mubr.f32.gmra.mxu0 %v3256_v27  ;;  %v8254_v27 = vld [vmem:[#allocation37_spill] sm:$0xff] }
 0x2ee   : > { %v3261_v17 = vmax.f32 %v2576_v37, 0.0  ;;  %3193 = vmatprep.mubr.f32.mxu1 %v8253_v9  ;;  %v2580_v30 = vadd.f32 %v2579_v58, %v2323_v3  ;;  %v8255_v39 = vmax.f32 %v8254_v27, 0.0  ;;  %v8257_v37 = vmax.f32 %v8256_v25, 0.0 }
 0x2ef   : > { %v6867_v33 = vpop.f32.mrf.mxu0  ;;  %v2581_v32 = vpop.f32.mrf.mxu1 }
 0x2f0   : > { %v2582_v16 = vadd.f32 %v2581_v32, %v2325_v14  ;;  %3532 = vmatprep.mubr.f32.mxu0 %v3261_v17  ;;  %v3264_v3 = vmax.f32 %v2580_v30, 0.0  ;;  %v2335_v14 = vadd.f32 %v6632_v23, %v6707_v6 }
 0x2f1   : > { %v6871_v15 = vpop.f32.mrf.mxu0  ;;  %v2585_v43 = vpop.f32.mrf.mxu1  ;;  %3194 = vmatmul.mubr.f32.gmra.mxu1 %v8255_v39  ;;  %3533 = vmatmul.mubr.f32.gmra.mxu0 %v3260_v22  ;;  %v8258_v22 = vld [vmem:[#allocation36_spill] sm:$0xff] }
 0x2f2   : > { %v3265_v4 = vmax.f32 %v2582_v16, 0.0  ;;  %3199 = vmatprep.mubr.f32.mxu1 %v8257_v37  ;;  %v2586_v58 = vadd.f32 %v2585_v43, %v2329_v47  ;;  %v8259_v32 = vmax.f32 %v8258_v22, 0.0  ;;  %v8260_v16 = vmax.f32 %v6429_v54, 0.0 }
 0x2f3   : > { %v6879_v45 = vpop.f32.mrf.mxu0  ;;  %v2587_v48 = vpop.f32.mrf.mxu1  ;;  %v8261_v37 = vmax.f32 %v6425_v7, 0.0  ;;  %v2343_v54 = vadd.f32 %v6653_v42, %v6717_v10 }
 0x2f4   : > { %v2588_v55 = vadd.f32 %v2587_v48, %v2331_v61  ;;  %3537 = vmatprep.mubr.f32.mxu0 %v3265_v4  ;;  %v3268_v47 = vmax.f32 %v2586_v58, 0.0  ;;  %v2341_v61 = vadd.f32 %v6646_v26, %v6707_v6 }
 0x2f5   : > { %v6883_v17 = vpop.f32.mrf.mxu0  ;;  %v2591_v9 = vpop.f32.mrf.mxu1  ;;  %3200 = vmatmul.mubr.f32.gmra.mxu1 %v8259_v32  ;;  %3538 = vmatmul.mubr.f32.gmra.mxu0 %v3264_v3  ;;  %v8262_v3 = vmax.f32 %v6446_v62, 0.0  ;;  %v8263_v32 = vmax.f32 %v6442_v8, 0.0  ;;  %v2349_v62 = vadd.f32 %v6667_v13, %v6717_v10 }
 0x2f6   : > { %v3269_v30 = vmax.f32 %v2588_v55, 0.0  ;;  %3205 = vmatprep.mubr.f32.mxu1 %v8260_v16  ;;  %v2592_v43 = vadd.f32 %v2591_v9, %v2335_v14  ;;  %v2347_v9 = vadd.f32 %v6660_v18, %v6707_v6 }
 0x2f7   : > { %v6891_v27 = vpop.f32.mrf.mxu0  ;;  %v2593_v39 = vpop.f32.mrf.mxu1 }
 0x2f8   : > { %v2594_v23 = vadd.f32 %v2593_v39, %v2337_v28  ;;  %3542 = vmatprep.mubr.f32.mxu0 %v3269_v30  ;;  %v3272_v58 = vmax.f32 %v2592_v43, 0.0  ;;  %v8264_v28 = vmax.f32 %v6465_v19, 0.0  ;;  %v2353_v39 = vadd.f32 %v6674_v50, %v6707_v6 }
 0x2f9   : > { %v6895_v4 = vpop.f32.mrf.mxu0  ;;  %v2597_v25 = vpop.f32.mrf.mxu1  ;;  %3206 = vmatmul.mubr.f32.gmra.mxu1 %v8261_v37  ;;  %3543 = vmatmul.mubr.f32.gmra.mxu0 %v3268_v47  ;;  %v2355_v19 = vadd.f32 %v6679_v36, %v6717_v10  ;;  %v2359_v50 = vadd.f32 %v6686_v20, %v6707_v6 }
 0x2fa   : > { %v3273_v53 = vmax.f32 %v2594_v23, 0.0  ;;  %3211 = vmatprep.mubr.f32.mxu1 %v8262_v3  ;;  %v2598_v48 = vadd.f32 %v2597_v25, %v2341_v61  ;;  %v8265_v61 = vmax.f32 %v6459_v57, 0.0  ;;  %v2361_v57 = vadd.f32 %v6689_v12, %v6717_v10 }
 0x2fb   : > { %v2599_v55 = vpop.f32.mrf.mxu1  ;;  %v6903_v14 = vpop.f32.mrf.mxu0 }
 0x2fc   : > { %v2600_v26 = vadd.f32 %v2599_v55, %v2343_v54  ;;  %3547 = vmatprep.mubr.f32.mxu0 %v3273_v53  ;;  %v3276_v30 = vmax.f32 %v2598_v48, 0.0 }
 0x2fd   : > { %v2603_v7 = vpop.f32.mrf.mxu1  ;;  %v6907_v22 = vpop.f32.mrf.mxu0  ;;  %3212 = vmatmul.mubr.f32.gmra.mxu1 %v8263_v32  ;;  %3548 = vmatmul.mubr.f32.gmra.mxu0 %v3272_v58 }
 0x2fe   : > { %v3277_v42 = vmax.f32 %v2600_v26, 0.0  ;;  %3217 = vmatprep.mubr.f32.mxu1 %v8264_v28  ;;  %v2604_v16 = vadd.f32 %v2603_v7, %v2347_v9  ;;  %v2367_v28 = vadd.f32 %v6709_v41, %v6717_v10 }
 0x2ff   : > { %v2605_v47 = vpop.f32.mrf.mxu1  ;;  %v6915_v43 = vpop.f32.mrf.mxu0 }
 0x300   : > { %v2606_v18 = vadd.f32 %v2605_v47, %v2349_v62  ;;  %3552 = vmatprep.mubr.f32.mxu0 %v3277_v42  ;;  %v3280_v25 = vmax.f32 %v2604_v16, 0.0  ;;  %v2365_v62 = vadd.f32 %v6701_v21, %v6707_v6 }
 0x301   : > { %v2609_v8 = vpop.f32.mrf.mxu1  ;;  %v6919_v23 = vpop.f32.mrf.mxu0  ;;  %3218 = vmatmul.mubr.f32.gmra.mxu1 %v8265_v61  ;;  %3553 = vmatmul.mubr.f32.gmra.mxu0 %v3276_v30 }
 0x302   : > { %v3281_v13 = vmax.f32 %v2606_v18, 0.0  ;;  %v2610_v37 = vadd.f32 %v2609_v8, %v2353_v39  ;;  %v2371_v8 = vadd.f32 %v6721_v29, %v6707_v6 }
 0x303   : > { %v2611_v54 = vpop.f32.mrf.mxu1  ;;  %v6925_v53 = vpop.f32.mrf.mxu0 }
 0x304   : > { %v2612_v3 = vadd.f32 %v2611_v54, %v2355_v19  ;;  %3557 = vmatprep.mubr.f32.mxu0 %v3281_v13  ;;  %v3284_v36 = vmax.f32 %v2610_v37, 0.0  ;;  %v2373_v19 = vadd.f32 %v6726_v1, %v6717_v10 }
 0x305   : > { %v2615_v58 = vpop.f32.mrf.mxu1  ;;  %v6929_v48 = vpop.f32.mrf.mxu0  ;;  %3558 = vmatmul.mubr.f32.gmra.mxu0 %v3280_v25 }
 0x306   : > { %v3285_v55 = vmax.f32 %v2612_v3, 0.0  ;;  %v2616_v26 = vadd.f32 %v2615_v58, %v2359_v50  ;;  %v2377_v50 = vadd.f32 %v6735_v49, %v6707_v6 }
 0x307   : > { %v2617_v9 = vpop.f32.mrf.mxu1  ;;  %v6933_v7 = vpop.f32.mrf.mxu0 }
 0x308   : > { %v2618_v32 = vadd.f32 %v2617_v9, %v2361_v57  ;;  %3562 = vmatprep.mubr.f32.mxu0 %v3285_v55  ;;  %v3288_v12 = vmax.f32 %v2616_v26, 0.0  ;;  %v2379_v57 = vadd.f32 %v6740_v34, %v6717_v10 }
 0x309   : > { %v2621_v42 = vpop.f32.mrf.mxu1  ;;  %v6937_v20 = vpop.f32.mrf.mxu0  ;;  %3563 = vmatmul.mubr.f32.gmra.mxu0 %v3284_v36 }
 0x30a   : > { %v3289_v30 = vmax.f32 %v2618_v32, 0.0  ;;  %v2622_v16 = vadd.f32 %v2621_v42, %v2365_v62  ;;  %v2383_v62 = vadd.f32 %v6749_v51, %v6707_v6 }
 0x30b   : > { %v2623_v47 = vpop.f32.mrf.mxu1  ;;  %v6941_v18 = vpop.f32.mrf.mxu0 }
 0x30c   : > { %v2624_v39 = vadd.f32 %v2623_v47, %v2367_v28  ;;  %3567 = vmatprep.mubr.f32.mxu0 %v3289_v30  ;;  %v3292_v41 = vmax.f32 %v2622_v16, 0.0  ;;  %v8266_v28 = vld [vmem:[#allocation41_spill] sm:$0xff] }
 0x30d   : > { %v2627_v61 = vpop.f32.mrf.mxu1  ;;  %v6945_v21 = vpop.f32.mrf.mxu0  ;;  %3568 = vmatmul.mubr.f32.gmra.mxu0 %v3288_v12  ;;  %v2385_v30 = vadd.f32 %v8266_v28, %v6717_v10  ;;  %v2401_v28 = vadd.f32 %v6790_v0, %v6707_v6 }
 0x30e   : > { %v3293_v13 = vmax.f32 %v2624_v39, 0.0  ;;  %v2628_v25 = vadd.f32 %v2627_v61, %v2371_v8  ;;  %v2389_v61 = vadd.f32 %v6763_v40, %v6707_v6 }
 0x30f   : > { %v2629_v37 = vpop.f32.mrf.mxu1  ;;  %v6949_v54 = vpop.f32.mrf.mxu0 }
 0x310   : > { %v2630_v3 = vadd.f32 %v2629_v37, %v2373_v19  ;;  %3572 = vmatprep.mubr.f32.mxu0 %v3293_v13  ;;  %v3296_v1 = vmax.f32 %v2628_v25, 0.0  ;;  %v2391_v13 = vadd.f32 %v6768_v38, %v6717_v10 }
 0x311   : > { %v2633_v58 = vpop.f32.mrf.mxu1  ;;  %v6953_v29 = vpop.f32.mrf.mxu0  ;;  %3573 = vmatmul.mubr.f32.gmra.mxu0 %v3292_v41 }
 0x312   : > { %v3297_v55 = vmax.f32 %v2630_v3, 0.0  ;;  %v2634_v36 = vadd.f32 %v2633_v58, %v2377_v50 }
 0x313   : > { %v2635_v26 = vpop.f32.mrf.mxu1  ;;  %v6957_v9 = vpop.f32.mrf.mxu0 }
 0x314   : > { %v2636_v32 = vadd.f32 %v2635_v26, %v2379_v57  ;;  %3577 = vmatprep.mubr.f32.mxu0 %v3297_v55  ;;  %v3300_v34 = vmax.f32 %v2634_v36, 0.0  ;;  %v2395_v57 = vadd.f32 %v6776_v63, %v6707_v6 }
 0x315   : > { %v2639_v42 = vpop.f32.mrf.mxu1  ;;  %v6961_v49 = vpop.f32.mrf.mxu0  ;;  %3578 = vmatmul.mubr.f32.gmra.mxu0 %v3296_v1  ;;  %v2397_v1 = vadd.f32 %v6781_v35, %v6717_v10 }
 0x316   : > { %v3301_v12 = vmax.f32 %v2636_v32, 0.0  ;;  %v2640_v16 = vadd.f32 %v2639_v42, %v2383_v62 }
 0x317   : > { %v2641_v47 = vpop.f32.mrf.mxu1  ;;  %v6965_v39 = vpop.f32.mrf.mxu0 }
 0x318   : > { %v2642_v8 = vadd.f32 %v2641_v47, %v2385_v30  ;;  %3582 = vmatprep.mubr.f32.mxu0 %v3301_v12  ;;  %v3304_v25 = vmax.f32 %v2640_v16, 0.0  ;;  %v2403_v12 = vadd.f32 %v6795_v11, %v6717_v10 }
 0x319   : > { %v2645_v19 = vpop.f32.mrf.mxu1  ;;  %v6969_v51 = vpop.f32.mrf.mxu0  ;;  %3583 = vmatmul.mubr.f32.gmra.mxu0 %v3300_v34 }
 0x31a   : > { %v3305_v41 = vmax.f32 %v2642_v8, 0.0  ;;  %v2646_v37 = vadd.f32 %v2645_v19, %v2389_v61  ;;  %v2407_v19 = vadd.f32 %v6803_v24, %v6707_v6 }
 0x31b   : > { %v2647_v3 = vpop.f32.mrf.mxu1  ;;  %v6973_v50 = vpop.f32.mrf.mxu0 }
 0x31c   : > { %v2648_v58 = vadd.f32 %v2647_v3, %v2391_v13  ;;  %3587 = vmatprep.mubr.f32.mxu0 %v3305_v41  ;;  %v3308_v38 = vmax.f32 %v2646_v37, 0.0  ;;  %v2409_v41 = vadd.f32 %v6808_v31, %v6717_v10 }
 0x31d   : > { %v2651_v55 = vpop.f32.mrf.mxu1  ;;  %v6977_v40 = vpop.f32.mrf.mxu0  ;;  %3588 = vmatmul.mubr.f32.gmra.mxu0 %v3304_v25 }
 0x31e   : > { %v3309_v36 = vmax.f32 %v2648_v58, 0.0  ;;  %v2652_v26 = vadd.f32 %v2651_v55, %v2395_v57  ;;  %v2413_v55 = vadd.f32 %v6817_v5, %v6707_v6 }
 0x31f   : > { %v2653_v32 = vpop.f32.mrf.mxu1  ;;  %v6981_v62 = vpop.f32.mrf.mxu0 }
 0x320   : > { %v2654_v42 = vadd.f32 %v2653_v32, %v2397_v1  ;;  %3592 = vmatprep.mubr.f32.mxu0 %v3309_v36  ;;  %v3312_v35 = vmax.f32 %v2652_v26, 0.0  ;;  %v2415_v36 = vadd.f32 %v6822_v2, %v6717_v10 }
 0x321   : > { %v2657_v30 = vpop.f32.mrf.mxu1  ;;  %v6985_v63 = vpop.f32.mrf.mxu0  ;;  %3593 = vmatmul.mubr.f32.gmra.mxu0 %v3308_v38 }
 0x322   : > { %v3313_v34 = vmax.f32 %v2654_v42, 0.0  ;;  %v2658_v16 = vadd.f32 %v2657_v30, %v2401_v28  ;;  %v2419_v30 = vadd.f32 %v6830_v46, %v6707_v6 }
 0x323   : > { %v2659_v47 = vpop.f32.mrf.mxu1  ;;  %v6989_v8 = vpop.f32.mrf.mxu0 }
 0x324   : > { %v2660_v61 = vadd.f32 %v2659_v47, %v2403_v12  ;;  %3597 = vmatprep.mubr.f32.mxu0 %v3313_v34  ;;  %v3316_v11 = vmax.f32 %v2658_v16, 0.0  ;;  %v2421_v34 = vadd.f32 %v6835_v59, %v6717_v10 }
 0x325   : > { %v2663_v13 = vpop.f32.mrf.mxu1  ;;  %v6993_v0 = vpop.f32.mrf.mxu0  ;;  %3598 = vmatmul.mubr.f32.gmra.mxu0 %v3312_v35 }
 0x326   : > { %v3317_v25 = vmax.f32 %v2660_v61, 0.0  ;;  %v2664_v37 = vadd.f32 %v2663_v13, %v2407_v19  ;;  %v2425_v13 = vadd.f32 %v6843_v60, %v6707_v6 }
 0x327   : > { %v2665_v3 = vpop.f32.mrf.mxu1  ;;  %v6997_v58 = vpop.f32.mrf.mxu0 }
 0x328   : > { %v2666_v57 = vadd.f32 %v2665_v3, %v2409_v41  ;;  %3602 = vmatprep.mubr.f32.mxu0 %v3317_v25  ;;  %v3320_v31 = vmax.f32 %v2664_v37, 0.0  ;;  %v2427_v25 = vadd.f32 %v6847_v52, %v6717_v10 }
 0x329   : > { %v2669_v1 = vpop.f32.mrf.mxu1  ;;  %v7001_v24 = vpop.f32.mrf.mxu0  ;;  %3603 = vmatmul.mubr.f32.gmra.mxu0 %v3316_v11 }
 0x32a   : > { %v3321_v38 = vmax.f32 %v2666_v57, 0.0  ;;  %v2670_v26 = vadd.f32 %v2669_v1, %v2413_v55  ;;  %v2431_v1 = vadd.f32 %v6855_v56, %v6707_v6 }
 0x32b   : > { %v2671_v32 = vpop.f32.mrf.mxu1  ;;  %v7005_v42 = vpop.f32.mrf.mxu0 }
 0x32c   : > { %v2672_v28 = vadd.f32 %v2671_v32, %v2415_v36  ;;  %3607 = vmatprep.mubr.f32.mxu0 %v3321_v38  ;;  %v3324_v2 = vmax.f32 %v2670_v26, 0.0  ;;  %v2433_v38 = vadd.f32 %v6859_v44, %v6717_v10 }
 0x32d   : > { %v2675_v12 = vpop.f32.mrf.mxu1  ;;  %v7009_v5 = vpop.f32.mrf.mxu0  ;;  %3608 = vmatmul.mubr.f32.gmra.mxu0 %v3320_v31 }
 0x32e   : > { %v3325_v35 = vmax.f32 %v2672_v28, 0.0  ;;  %v2676_v16 = vadd.f32 %v2675_v12, %v2419_v30  ;;  %v2437_v12 = vadd.f32 %v6867_v33, %v6707_v6 }
 0x32f   : > { %v2677_v47 = vpop.f32.mrf.mxu1  ;;  %v7013_v61 = vpop.f32.mrf.mxu0 }
 0x330   : > { %v2678_v19 = vadd.f32 %v2677_v47, %v2421_v34  ;;  %3612 = vmatprep.mubr.f32.mxu0 %v3325_v35  ;;  %v3328_v59 = vmax.f32 %v2676_v16, 0.0  ;;  %v2439_v35 = vadd.f32 %v6871_v15, %v6717_v10 }
 0x331   : > { %v2681_v41 = vpop.f32.mrf.mxu1  ;;  %v7017_v46 = vpop.f32.mrf.mxu0  ;;  %3613 = vmatmul.mubr.f32.gmra.mxu0 %v3324_v2 }
 0x332   : > { %v3329_v11 = vmax.f32 %v2678_v19, 0.0  ;;  %v2682_v37 = vadd.f32 %v2681_v41, %v2425_v13  ;;  %v2443_v41 = vadd.f32 %v6879_v45, %v6707_v6 }
 0x333   : > { %v2683_v3 = vpop.f32.mrf.mxu1  ;;  %v7021_v57 = vpop.f32.mrf.mxu0 }
 0x334   : > { %v2684_v55 = vadd.f32 %v2683_v3, %v2427_v25  ;;  %3617 = vmatprep.mubr.f32.mxu0 %v3329_v11  ;;  %v3332_v52 = vmax.f32 %v2682_v37, 0.0  ;;  %v2445_v11 = vadd.f32 %v6883_v17, %v6717_v10  ;;  %v2451_v17 = vadd.f32 %v6895_v4, %v6717_v10 }
 0x335   : > { %v2687_v36 = vpop.f32.mrf.mxu1  ;;  %v7025_v60 = vpop.f32.mrf.mxu0  ;;  %3618 = vmatmul.mubr.f32.gmra.mxu0 %v3328_v59 }
 0x336   : > { %v3333_v31 = vmax.f32 %v2684_v55, 0.0  ;;  %v2688_v26 = vadd.f32 %v2687_v36, %v2431_v1  ;;  %v2449_v36 = vadd.f32 %v6891_v27, %v6707_v6 }
 0x337   : > { %v2689_v32 = vpop.f32.mrf.mxu1  ;;  %v7029_v28 = vpop.f32.mrf.mxu0 }
 0x338   : > { %v2690_v30 = vadd.f32 %v2689_v32, %v2433_v38  ;;  %3622 = vmatprep.mubr.f32.mxu0 %v3333_v31  ;;  %v3336_v44 = vmax.f32 %v2688_v26, 0.0  ;;  %v8267_v38 = vld [vmem:[#allocation17_spill] sm:$0xff]  ;;  %v8269_v31 = vld [vmem:[#allocation38_spill] sm:$0xff] }
 0x339   : > { %v2693_v34 = vpop.f32.mrf.mxu1  ;;  %v7033_v56 = vpop.f32.mrf.mxu0  ;;  %3623 = vmatmul.mubr.f32.gmra.mxu0 %v3332_v52  ;;  %v8268_v45 = vsub.s32 2, %v8267_v38 }
 0x33a   : > { %v3337_v2 = vmax.f32 %v2690_v30, 0.0  ;;  %v2694_v16 = vadd.f32 %v2693_v34, %v2437_v12  ;;  %v8270_v30 = vsub.s32 3, %v8267_v38 }
 0x33b   : > { %v2695_v47 = vpop.f32.mrf.mxu1  ;;  %v7037_v19 = vpop.f32.mrf.mxu0  ;;  %v7052_v52 = vrot.slane %v8269_v31, %v8268_v45 }
 0x33c   : > { %v2696_v13 = vadd.f32 %v2695_v47, %v2439_v35  ;;  %3627 = vmatprep.mubr.f32.mxu0 %v3337_v2  ;;  %v3340_v15 = vmax.f32 %v2694_v16, 0.0  ;;  %v7061_v12 = vrot.slane %v8269_v31, %v8270_v30 }
 0x33d   : > { %v2699_v25 = vpop.f32.mrf.mxu1  ;;  %v7041_v33 = vpop.f32.mrf.mxu0  ;;  %3628 = vmatmul.mubr.f32.gmra.mxu0 %v3336_v44  ;;  %v2777_v16 = vadd.f32 %v6903_v14, %v7052_v52 }
 0x33e   : > { %v3341_v59 = vmax.f32 %v2696_v13, 0.0  ;;  %v2700_v37 = vadd.f32 %v2699_v25, %v2443_v41  ;;  %v2779_v10 = vadd.f32 %v6907_v22, %v7061_v12 }
 0x33f   : > { %v2701_v3 = vpop.f32.mrf.mxu1  ;;  %v7045_v55 = vpop.f32.mrf.mxu0 }
 0x340   : > { %v2702_v1 = vadd.f32 %v2701_v3, %v2445_v11  ;;  %3632 = vmatprep.mubr.f32.mxu0 %v3341_v59  ;;  %v3344_v35 = vmax.f32 %v2700_v37, 0.0  ;;  %v2783_v37 = vadd.f32 %v6915_v43, %v7052_v52 }
 0x341   : > { %v2705_v26 = vpop.f32.mrf.mxu1  ;;  %v7054_v32 = vpop.f32.mrf.mxu0  ;;  %3633 = vmatmul.mubr.f32.gmra.mxu0 %v3340_v15 }
 0x342   : > { %v3345_v34 = vmax.f32 %v2702_v1, 0.0  ;;  %v2706_v6 = vadd.f32 %v2705_v26, %v2449_v36  ;;  %v2785_v1 = vadd.f32 %v6919_v23, %v7061_v12 }
 0x343   : > { %v2707_v27 = vpop.f32.mrf.mxu1  ;;  %v7063_v2 = vpop.f32.mrf.mxu0 }
 0x344   : > { %v2708_v44 = vadd.f32 %v2707_v27, %v2451_v17  ;;  %3637 = vmatprep.mubr.f32.mxu0 %v3345_v34  ;;  %v3348_v41 = vmax.f32 %v2706_v6, 0.0  ;;  %v2789_v17 = vadd.f32 %v6925_v53, %v7052_v52  ;;  %v2791_v34 = vadd.f32 %v6929_v48, %v7061_v12 }
 0x345   : > { %v7067_v47 = vpop.f32.mrf.mxu0  ;;  %v3033_v13 = vpop.f32.mrf.mxu1  ;;  %3638 = vmatmul.mubr.f32.gmra.mxu0 %v3344_v35 }
 0x346   : > { %v3349_v4 = vmax.f32 %v2708_v44, 0.0  ;;  %v3034_v25 = vadd.f32 %v3033_v13, %v2777_v16  ;;  %v2795_v13 = vadd.f32 %v6933_v7, %v7052_v52 }
 0x347   : > { %v7071_v11 = vpop.f32.mrf.mxu0  ;;  %v3035_v59 = vpop.f32.mrf.mxu1 }
 0x348   : > { %v3036_v15 = vadd.f32 %v3035_v59, %v2779_v10  ;;  %3642 = vmatprep.mubr.f32.mxu0 %v3349_v4  ;;  %v3226_v22 = vmax.f32 %v3034_v25, 0.0  ;;  %v2797_v4 = vadd.f32 %v6937_v20, %v7061_v12 }
 0x349   : > { %v7075_v3 = vpop.f32.mrf.mxu0  ;;  %v3039_v14 = vpop.f32.mrf.mxu1  ;;  %3643 = vmatmul.mubr.f32.gmra.mxu0 %v3348_v41 }
 0x34a   : > { %v3227_v36 = vmax.f32 %v3036_v15, 0.0  ;;  %v3040_v38 = vadd.f32 %v3039_v14, %v2783_v37  ;;  %v2801_v14 = vadd.f32 %v6941_v18, %v7052_v52 }
 0x34b   : > { %v7079_v45 = vpop.f32.mrf.mxu0  ;;  %v3041_v31 = vpop.f32.mrf.mxu1 }
 0x34c   : > { %v3042_v26 = vadd.f32 %v3041_v31, %v2785_v1  ;;  %3712 = vmatprep.mubr.f32.mxu1 %v3227_v36  ;;  %v3230_v23 = vmax.f32 %v3040_v38, 0.0  ;;  %v2803_v36 = vadd.f32 %v6945_v21, %v7061_v12 }
 0x34d   : > { %v7083_v30 = vpop.f32.mrf.mxu0  ;;  %v3045_v43 = vpop.f32.mrf.mxu1  ;;  %3713 = vmatmul.mubr.f32.vlgmr.msra.gmra.mxu1 %v3226_v22 }
 0x34e   : > { %v3231_v35 = vmax.f32 %v3042_v26, 0.0  ;;  %v3046_v6 = vadd.f32 %v3045_v43, %v2789_v17  ;;  %v2807_v43 = vadd.f32 %v6949_v54, %v7052_v52 }
 0x34f   : > { %v7087_v27 = vpop.f32.mrf.mxu0  ;;  %v3047_v44 = vpop.f32.mrf.mxu1 }
 0x350   : > { %v3048_v16 = vadd.f32 %v3047_v44, %v2791_v34  ;;  %3717 = vmatprep.mubr.f32.mxu1 %v3231_v35  ;;  %v3234_v48 = vmax.f32 %v3046_v6, 0.0  ;;  %v2809_v35 = vadd.f32 %v6953_v29, %v7061_v12 }
 0x351   : > { %v7091_v10 = vpop.f32.mrf.mxu0  ;;  %v3051_v53 = vpop.f32.mrf.mxu1  ;;  %3718 = vmatmul.mubr.f32.gmra.mxu1 %v3230_v23 }
 0x352   : > { %v3235_v41 = vmax.f32 %v3048_v16, 0.0  ;;  %v3052_v25 = vadd.f32 %v3051_v53, %v2795_v13  ;;  %v2813_v53 = vadd.f32 %v6957_v9, %v7052_v52 }
 0x353   : > { %v7095_v59 = vpop.f32.mrf.mxu0  ;;  %v3053_v15 = vpop.f32.mrf.mxu1 }
 0x354   : > { %v3054_v37 = vadd.f32 %v3053_v15, %v2797_v4  ;;  %3722 = vmatprep.mubr.f32.mxu1 %v3235_v41  ;;  %v3238_v20 = vmax.f32 %v3052_v25, 0.0  ;;  %v2815_v41 = vadd.f32 %v6961_v49, %v7061_v12 }
 0x355   : > { %v7099_v1 = vpop.f32.mrf.mxu0  ;;  %v3057_v7 = vpop.f32.mrf.mxu1  ;;  %3723 = vmatmul.mubr.f32.gmra.mxu1 %v3234_v48 }
 0x356   : > { %v3239_v22 = vmax.f32 %v3054_v37, 0.0  ;;  %v3058_v38 = vadd.f32 %v3057_v7, %v2801_v14  ;;  %v2819_v7 = vadd.f32 %v6965_v39, %v7052_v52 }
 0x357   : > { %v7103_v31 = vpop.f32.mrf.mxu0  ;;  %v3059_v26 = vpop.f32.mrf.mxu1 }
 0x358   : > { %v3060_v17 = vadd.f32 %v3059_v26, %v2803_v36  ;;  %3727 = vmatprep.mubr.f32.mxu1 %v3239_v22  ;;  %v3242_v21 = vmax.f32 %v3058_v38, 0.0  ;;  %v2821_v22 = vadd.f32 %v6969_v51, %v7061_v12 }
 0x359   : > { %v7107_v34 = vpop.f32.mrf.mxu0  ;;  %v3063_v18 = vpop.f32.mrf.mxu1  ;;  %3728 = vmatmul.mubr.f32.gmra.mxu1 %v3238_v20 }
 0x35a   : > { %v3243_v23 = vmax.f32 %v3060_v17, 0.0  ;;  %v3064_v6 = vadd.f32 %v3063_v18, %v2807_v43  ;;  %v2825_v18 = vadd.f32 %v6973_v50, %v7052_v52  ;;  %v2833_v50 = vadd.f32 %v6985_v63, %v7061_v12 }
 0x35b   : > { %v7111_v44 = vpop.f32.mrf.mxu0  ;;  %v3065_v16 = vpop.f32.mrf.mxu1 }
 0x35c   : > { %v3066_v13 = vadd.f32 %v3065_v16, %v2809_v35  ;;  %3732 = vmatprep.mubr.f32.mxu1 %v3243_v23  ;;  %v3246_v29 = vmax.f32 %v3064_v6, 0.0  ;;  %v2827_v23 = vadd.f32 %v6977_v40, %v7061_v12 }
 0x35d   : > { %v7115_v4 = vpop.f32.mrf.mxu0  ;;  %v3069_v54 = vpop.f32.mrf.mxu1  ;;  %3733 = vmatmul.mubr.f32.gmra.mxu1 %v3242_v21 }
 0x35e   : > { %v3247_v48 = vmax.f32 %v3066_v13, 0.0  ;;  %v3070_v25 = vadd.f32 %v3069_v54, %v2813_v53  ;;  %v2831_v54 = vadd.f32 %v6981_v62, %v7052_v52  ;;  %v2839_v62 = vadd.f32 %v6993_v0, %v7061_v12 }
 0x35f   : > { %v7119_v15 = vpop.f32.mrf.mxu0  ;;  %v3071_v37 = vpop.f32.mrf.mxu1 }
 0x360   : > { %v3072_v14 = vadd.f32 %v3071_v37, %v2815_v41  ;;  %3737 = vmatprep.mubr.f32.mxu1 %v3247_v48  ;;  %v3250_v49 = vmax.f32 %v3070_v25, 0.0 }
 0x361   : > { %v7123_v36 = vpop.f32.mrf.mxu0  ;;  %v3075_v9 = vpop.f32.mrf.mxu1  ;;  %3738 = vmatmul.mubr.f32.gmra.mxu1 %v3246_v29 }
 0x362   : > { %v3251_v20 = vmax.f32 %v3072_v14, 0.0  ;;  %v3076_v38 = vadd.f32 %v3075_v9, %v2819_v7  ;;  %v2837_v7 = vadd.f32 %v6989_v8, %v7052_v52  ;;  %v2845_v8 = vadd.f32 %v7001_v24, %v7061_v12 }
 0x363   : > { %v7127_v26 = vpop.f32.mrf.mxu0  ;;  %v3077_v17 = vpop.f32.mrf.mxu1 }
 0x364   : > { %v3078_v43 = vadd.f32 %v3077_v17, %v2821_v22  ;;  %3742 = vmatprep.mubr.f32.mxu1 %v3251_v20  ;;  %v3254_v51 = vmax.f32 %v3076_v38, 0.0 }
 0x365   : > { %v7131_v35 = vpop.f32.mrf.mxu0  ;;  %v3081_v39 = vpop.f32.mrf.mxu1  ;;  %3743 = vmatmul.mubr.f32.gmra.mxu1 %v3250_v49 }
 0x366   : > { %v3255_v21 = vmax.f32 %v3078_v43, 0.0  ;;  %v3082_v6 = vadd.f32 %v3081_v39, %v2825_v18  ;;  %v2843_v43 = vadd.f32 %v6997_v58, %v7052_v52  ;;  %v2851_v58 = vadd.f32 %v7009_v5, %v7061_v12 }
 0x367   : > { %v7135_v16 = vpop.f32.mrf.mxu0  ;;  %v3083_v13 = vpop.f32.mrf.mxu1 }
 0x368   : > { %v3084_v53 = vadd.f32 %v3083_v13, %v2827_v23  ;;  %3747 = vmatprep.mubr.f32.mxu1 %v3255_v21  ;;  %v3258_v29 = vmax.f32 %v3082_v6, 0.0  ;;  %v2849_v13 = vadd.f32 %v7005_v42, %v7052_v52  ;;  %v2857_v42 = vadd.f32 %v7017_v46, %v7061_v12 }
 0x369   : > { %v3087_v41 = vpop.f32.mrf.mxu1  ;;  %3748 = vmatmul.mubr.f32.gmra.mxu1 %v3254_v51  ;;  %v7141_v25 = vpop.f32.mrf.mxu0 }
 0x36a   : > { %v3259_v48 = vmax.f32 %v3084_v53, 0.0  ;;  %v3088_v40 = vadd.f32 %v3087_v41, %v2831_v54 }
 0x36b   : > { %v3089_v37 = vpop.f32.mrf.mxu1  ;;  %v7147_v49 = vpop.f32.mrf.mxu0 }
 0x36c   : > { %v3090_v14 = vadd.f32 %v3089_v37, %v2833_v50  ;;  %3752 = vmatprep.mubr.f32.mxu1 %v3259_v48  ;;  %v3262_v20 = vmax.f32 %v3088_v40, 0.0  ;;  %v2855_v40 = vadd.f32 %v7013_v61, %v7052_v52  ;;  %v2863_v61 = vadd.f32 %v7025_v60, %v7061_v12 }
 0x36d   : > { %v3093_v9 = vpop.f32.mrf.mxu1  ;;  %3753 = vmatmul.mubr.f32.gmra.mxu1 %v3258_v29  ;;  %v7153_v23 = vpop.f32.mrf.mxu0 }
 0x36e   : > { %v3263_v22 = vmax.f32 %v3090_v14, 0.0  ;;  %v3094_v63 = vadd.f32 %v3093_v9, %v2837_v7 }
 0x36f   : > { %v3095_v38 = vpop.f32.mrf.mxu1  ;;  %v7159_v41 = vpop.f32.mrf.mxu0 }
 0x370   : > { %v3096_v17 = vadd.f32 %v3095_v38, %v2839_v62  ;;  %3757 = vmatprep.mubr.f32.mxu1 %v3263_v22  ;;  %v3266_v0 = vmax.f32 %v3094_v63, 0.0 }
 0x371   : > { %v3099_v18 = vpop.f32.mrf.mxu1  ;;  %3758 = vmatmul.mubr.f32.gmra.mxu1 %v3262_v20  ;;  %v7165_v7 = vpop.f32.mrf.mxu0  ;;  %v2861_v20 = vadd.f32 %v7021_v57, %v7052_v52  ;;  %v2869_v57 = vadd.f32 %v7033_v56, %v7061_v12 }
 0x372   : > { %v3267_v39 = vmax.f32 %v3096_v17, 0.0  ;;  %v3100_v21 = vadd.f32 %v3099_v18, %v2843_v43 }
 0x373   : > { %v3101_v51 = vpop.f32.mrf.mxu1  ;;  %v7171_v17 = vpop.f32.mrf.mxu0 }
 0x374   : > { %v3102_v6 = vadd.f32 %v3101_v51, %v2845_v8  ;;  %3762 = vmatprep.mubr.f32.mxu1 %v3267_v39  ;;  %v3270_v24 = vmax.f32 %v3100_v21, 0.0  ;;  %v2867_v39 = vadd.f32 %v7029_v28, %v7052_v52  ;;  %v2875_v28 = vadd.f32 %v7041_v33, %v7061_v12 }
 0x375   : > { %v3105_v53 = vpop.f32.mrf.mxu1  ;;  %3763 = vmatmul.mubr.f32.gmra.mxu1 %v3266_v0  ;;  %v7177_v51 = vpop.f32.mrf.mxu0 }
 0x376   : > { %v3271_v54 = vmax.f32 %v3102_v6, 0.0  ;;  %v3106_v50 = vadd.f32 %v3105_v53, %v2849_v13 }
 0x377   : > { %v3107_v48 = vpop.f32.mrf.mxu1 }
 0x378   : > { %v3108_v29 = vadd.f32 %v3107_v48, %v2851_v58  ;;  %3767 = vmatprep.mubr.f32.mxu1 %v3271_v54  ;;  %v3274_v5 = vmax.f32 %v3106_v50, 0.0  ;;  %v2873_v58 = vadd.f32 %v7037_v19, %v7052_v52  ;;  %v7183_v50 = vpop.f32.mrf.mxu0  ;;  %v2881_v19 = vadd.f32 %v7054_v32, %v7061_v12 }
 0x379   : > { %v3111_v37 = vpop.f32.mrf.mxu1  ;;  %3768 = vmatmul.mubr.f32.gmra.mxu1 %v3270_v24 }
 0x37a   : > { %v3275_v14 = vmax.f32 %v3108_v29, 0.0  ;;  %v3112_v9 = vadd.f32 %v3111_v37, %v2855_v40  ;;  %v2879_v37 = vadd.f32 %v7045_v55, %v7052_v52  ;;  %v2887_v55 = vadd.f32 %v7067_v47, %v7061_v12 }
 0x37b   : > { %v3113_v62 = vpop.f32.mrf.mxu1 }
 0x37c   : > { %v3114_v22 = vadd.f32 %v3113_v62, %v2857_v42  ;;  %3772 = vmatprep.mubr.f32.mxu1 %v3275_v14  ;;  %v3278_v46 = vmax.f32 %v3112_v9, 0.0 }
 0x37d   : > { %v3117_v63 = vpop.f32.mrf.mxu1  ;;  %3773 = vmatmul.mubr.f32.gmra.mxu1 %v3274_v5  ;;  %v7189_v5 = vpop.f32.mrf.mxu0 }
 0x37e   : > { %v3279_v38 = vmax.f32 %v3114_v22, 0.0  ;;  %v3118_v43 = vadd.f32 %v3117_v63, %v2861_v20  ;;  %v2885_v20 = vadd.f32 %v7063_v2, %v7052_v52  ;;  %v2893_v2 = vadd.f32 %v7075_v3, %v7061_v12 }
 0x37f   : > { %v3119_v18 = vpop.f32.mrf.mxu1 }
 0x380   : > { %v3120_v8 = vadd.f32 %v3119_v18, %v2863_v61  ;;  %3777 = vmatprep.mubr.f32.mxu1 %v3279_v38  ;;  %v3282_v60 = vmax.f32 %v3118_v43, 0.0 }
 0x381   : > { %v3123_v0 = vpop.f32.mrf.mxu1  ;;  %3778 = vmatmul.mubr.f32.gmra.mxu1 %v3278_v46 }
 0x382   : > { %v3283_v21 = vmax.f32 %v3120_v8, 0.0  ;;  %v3124_v6 = vadd.f32 %v3123_v0, %v2867_v39  ;;  %v2891_v39 = vadd.f32 %v7071_v11, %v7052_v52  ;;  %v2899_v11 = vadd.f32 %v7083_v30, %v7061_v12 }
 0x383   : > { %v3125_v13 = vpop.f32.mrf.mxu1 }
 0x384   : > { %v3126_v53 = vadd.f32 %v3125_v13, %v2869_v57  ;;  %3782 = vmatprep.mubr.f32.mxu1 %v3283_v21  ;;  %v3286_v56 = vmax.f32 %v3124_v6, 0.0 }
 0x385   : > { %v3129_v54 = vpop.f32.mrf.mxu1  ;;  %3783 = vmatmul.mubr.f32.gmra.mxu1 %v3282_v60 }
 0x386   : > { %v3287_v24 = vmax.f32 %v3126_v53, 0.0  ;;  %v3130_v48 = vadd.f32 %v3129_v54, %v2873_v58  ;;  %v2897_v58 = vadd.f32 %v7079_v45, %v7052_v52  ;;  %v2905_v45 = vadd.f32 %v7091_v10, %v7061_v12 }
 0x387   : > { %v3131_v29 = vpop.f32.mrf.mxu1 }
 0x388   : > { %v3132_v40 = vadd.f32 %v3131_v29, %v2875_v28  ;;  %3787 = vmatprep.mubr.f32.mxu1 %v3287_v24  ;;  %v3290_v33 = vmax.f32 %v3130_v48, 0.0 }
 0x389   : > { %v3135_v42 = vpop.f32.mrf.mxu1  ;;  %3788 = vmatmul.mubr.f32.gmra.mxu1 %v3286_v56 }
 0x38a   : > { %v3291_v14 = vmax.f32 %v3132_v40, 0.0  ;;  %v3136_v9 = vadd.f32 %v3135_v42, %v2879_v37  ;;  %v2903_v37 = vadd.f32 %v7087_v27, %v7052_v52  ;;  %v2911_v27 = vadd.f32 %v7099_v1, %v7061_v12 }
 0x38b   : > { %v3137_v62 = vpop.f32.mrf.mxu1 }
 0x38c   : > { %v3138_v22 = vadd.f32 %v3137_v62, %v2881_v19  ;;  %3792 = vmatprep.mubr.f32.mxu1 %v3291_v14  ;;  %v3294_v32 = vmax.f32 %v3136_v9, 0.0 }
 0x38d   : > { %v3141_v63 = vpop.f32.mrf.mxu1  ;;  %v7193_v61 = vpop.f32.mrf.mxu0  ;;  %3793 = vmatmul.mubr.f32.gmra.mxu1 %v3290_v33 }
 0x38e   : > { %v3295_v38 = vmax.f32 %v3138_v22, 0.0  ;;  %v3142_v46 = vadd.f32 %v3141_v63, %v2885_v20  ;;  %v2909_v20 = vadd.f32 %v7095_v59, %v7052_v52  ;;  %v2917_v59 = vadd.f32 %v7107_v34, %v7061_v12 }
 0x38f   : > { %v3143_v43 = vpop.f32.mrf.mxu1  ;;  %v3491_v18 = vpop.f32.mrf.mxu0 }
 0x390   : > { %v3144_v8 = vadd.f32 %v3143_v43, %v2887_v55  ;;  %3797 = vmatprep.mubr.f32.mxu1 %v3295_v38  ;;  %v3298_v60 = vmax.f32 %v3142_v46, 0.0 }
 0x391   : > { %v3147_v0 = vpop.f32.mrf.mxu1  ;;  %v7199_v57 = vpop.f32.mrf.mxu0  ;;  %3798 = vmatmul.mubr.f32.gmra.mxu1 %v3294_v32 }
 0x392   : > { %v3299_v21 = vmax.f32 %v3144_v8, 0.0  ;;  %v3148_v47 = vadd.f32 %v3147_v0, %v2891_v39  ;;  %v2915_v8 = vadd.f32 %v7103_v31, %v7052_v52  ;;  %v2923_v31 = vadd.f32 %v7115_v4, %v7061_v12 }
 0x393   : > { %v3149_v6 = vpop.f32.mrf.mxu1  ;;  %v3496_v13 = vpop.f32.mrf.mxu0 }
 0x394   : > { %v3150_v53 = vadd.f32 %v3149_v6, %v2893_v2  ;;  %3802 = vmatprep.mubr.f32.mxu1 %v3299_v21  ;;  %v3302_v56 = vmax.f32 %v3148_v47, 0.0  ;;  %v2921_v13 = vadd.f32 %v7111_v44, %v7052_v52  ;;  %v2929_v44 = vadd.f32 %v7123_v36, %v7061_v12 }
 0x395   : > { %v3153_v54 = vpop.f32.mrf.mxu1  ;;  %v7205_v28 = vpop.f32.mrf.mxu0  ;;  %3803 = vmatmul.mubr.f32.gmra.mxu1 %v3298_v60 }
 0x396   : > { %v3303_v24 = vmax.f32 %v3150_v53, 0.0  ;;  %v3154_v3 = vadd.f32 %v3153_v54, %v2897_v58 }
 0x397   : > { %v3155_v48 = vpop.f32.mrf.mxu1  ;;  %v3501_v29 = vpop.f32.mrf.mxu0 }
 0x398   : > { %v3156_v40 = vadd.f32 %v3155_v48, %v2899_v11  ;;  %3807 = vmatprep.mubr.f32.mxu1 %v3303_v24  ;;  %v3306_v33 = vmax.f32 %v3154_v3, 0.0  ;;  %v2927_v48 = vadd.f32 %v7119_v15, %v7052_v52  ;;  %v2935_v15 = vadd.f32 %v7131_v35, %v7061_v12 }
 0x399   : > { %v3159_v42 = vpop.f32.mrf.mxu1  ;;  %v7211_v19 = vpop.f32.mrf.mxu0  ;;  %3808 = vmatmul.mubr.f32.gmra.mxu1 %v3302_v56 }
 0x39a   : > { %v3307_v14 = vmax.f32 %v3156_v40, 0.0  ;;  %v3160_v30 = vadd.f32 %v3159_v42, %v2903_v37 }
 0x39b   : > { %v3161_v9 = vpop.f32.mrf.mxu1  ;;  %v3506_v62 = vpop.f32.mrf.mxu0 }
 0x39c   : > { %v3162_v22 = vadd.f32 %v3161_v9, %v2905_v45  ;;  %3812 = vmatprep.mubr.f32.mxu1 %v3307_v14  ;;  %v3310_v32 = vmax.f32 %v3160_v30, 0.0  ;;  %v2933_v30 = vadd.f32 %v7127_v26, %v7052_v52  ;;  %v2941_v26 = vadd.f32 %v7141_v25, %v7061_v12 }
 0x39d   : > { %v3165_v63 = vpop.f32.mrf.mxu1  ;;  %v7217_v55 = vpop.f32.mrf.mxu0  ;;  %3813 = vmatmul.mubr.f32.gmra.mxu1 %v3306_v33 }
 0x39e   : > { %v3311_v38 = vmax.f32 %v3162_v22, 0.0  ;;  %v3166_v10 = vadd.f32 %v3165_v63, %v2909_v20 }
 0x39f   : > { %v3167_v46 = vpop.f32.mrf.mxu1  ;;  %v3511_v43 = vpop.f32.mrf.mxu0 }
 0x3a0   : > { %v3168_v18 = vadd.f32 %v3167_v46, %v2911_v27  ;;  %3817 = vmatprep.mubr.f32.mxu1 %v3311_v38  ;;  %v3314_v21 = vmax.f32 %v3166_v10, 0.0 }
 0x3a1   : > { %v3171_v39 = vpop.f32.mrf.mxu1  ;;  %v7223_v0 = vpop.f32.mrf.mxu0  ;;  %3818 = vmatmul.mubr.f32.gmra.mxu1 %v3310_v32  ;;  %v2939_v32 = vadd.f32 %v7135_v16, %v7052_v52  ;;  %v2947_v16 = vadd.f32 %v7153_v23, %v7061_v12 }
 0x3a2   : > { %v3315_v2 = vmax.f32 %v3168_v18, 0.0  ;;  %v3172_v1 = vadd.f32 %v3171_v39, %v2915_v8 }
 0x3a3   : > { %v3173_v60 = vpop.f32.mrf.mxu1  ;;  %v3516_v47 = vpop.f32.mrf.mxu0 }
 0x3a4   : > { %v3174_v6 = vadd.f32 %v3173_v60, %v2917_v59  ;;  %3822 = vmatprep.mubr.f32.mxu1 %v3315_v2  ;;  %v3318_v11 = vmax.f32 %v3172_v1, 0.0  ;;  %v2945_v2 = vadd.f32 %v7147_v49, %v7052_v52  ;;  %v2953_v49 = vadd.f32 %v7165_v7, %v7061_v12 }
 0x3a5   : > { %v3177_v53 = vpop.f32.mrf.mxu1  ;;  %v7229_v58 = vpop.f32.mrf.mxu0  ;;  %3823 = vmatmul.mubr.f32.gmra.mxu1 %v3314_v21 }
 0x3a6   : > { %v3319_v54 = vmax.f32 %v3174_v6, 0.0  ;;  %v3178_v34 = vadd.f32 %v3177_v53, %v2921_v13 }
 0x3a7   : > { %v3179_v24 = vpop.f32.mrf.mxu1  ;;  %v3521_v56 = vpop.f32.mrf.mxu0 }
 0x3a8   : > { %v3180_v3 = vadd.f32 %v3179_v24, %v2923_v31  ;;  %3827 = vmatprep.mubr.f32.mxu1 %v3319_v54  ;;  %v3322_v42 = vmax.f32 %v3178_v34, 0.0  ;;  %v2951_v31 = vadd.f32 %v7159_v41, %v7052_v52  ;;  %v2959_v41 = vadd.f32 %v7177_v51, %v7061_v12 }
 0x3a9   : > { %v3183_v29 = vpop.f32.mrf.mxu1  ;;  %v7235_v40 = vpop.f32.mrf.mxu0  ;;  %3828 = vmatmul.mubr.f32.gmra.mxu1 %v3318_v11 }
 0x3aa   : > { %v3323_v37 = vmax.f32 %v3180_v3, 0.0  ;;  %v3184_v4 = vadd.f32 %v3183_v29, %v2927_v48  ;;  %v2957_v29 = vadd.f32 %v7171_v17, %v7052_v52  ;;  %v2965_v17 = vadd.f32 %v7189_v5, %v7061_v12 }
 0x3ab   : > { %v3185_v45 = vpop.f32.mrf.mxu1  ;;  %v3526_v14 = vpop.f32.mrf.mxu0 }
 0x3ac   : > { %v3186_v33 = vadd.f32 %v3185_v45, %v2929_v44  ;;  %3832 = vmatprep.mubr.f32.mxu1 %v3323_v37  ;;  %v3326_v20 = vmax.f32 %v3184_v4, 0.0 }
 0x3ad   : > { %v3189_v9 = vpop.f32.mrf.mxu1  ;;  %v7241_v62 = vpop.f32.mrf.mxu0  ;;  %3833 = vmatmul.mubr.f32.gmra.mxu1 %v3322_v42 }
 0x3ae   : > { %v3327_v22 = vmax.f32 %v3186_v33, 0.0  ;;  %v3190_v36 = vadd.f32 %v3189_v9, %v2933_v30  ;;  %v2963_v30 = vadd.f32 %v7183_v50, %v7052_v52 }
 0x3af   : > { %v3191_v63 = vpop.f32.mrf.mxu1  ;;  %v3531_v27 = vpop.f32.mrf.mxu0 }
 0x3b0   : > { %v3192_v38 = vadd.f32 %v3191_v63, %v2935_v15  ;;  %3837 = vmatprep.mubr.f32.mxu1 %v3327_v22  ;;  %v3330_v18 = vmax.f32 %v3190_v36, 0.0 }
 0x3b1   : > { %v3195_v10 = vpop.f32.mrf.mxu1  ;;  %v7247_v46 = vpop.f32.mrf.mxu0  ;;  %3838 = vmatmul.mubr.f32.gmra.mxu1 %v3326_v20 }
 0x3b2   : > { %v3331_v43 = vmax.f32 %v3192_v38, 0.0  ;;  %v3196_v35 = vadd.f32 %v3195_v10, %v2939_v32 }
 0x3b3   : > { %v3197_v8 = vpop.f32.mrf.mxu1  ;;  %v3536_v39 = vpop.f32.mrf.mxu0 }
 0x3b4   : > { %v3198_v59 = vadd.f32 %v3197_v8, %v2941_v26  ;;  %3842 = vmatprep.mubr.f32.mxu1 %v3331_v43  ;;  %v3334_v47 = vmax.f32 %v3196_v35, 0.0 }
 0x3b5   : > { %v3201_v21 = vpop.f32.mrf.mxu1  ;;  %v7253_v1 = vpop.f32.mrf.mxu0  ;;  %3843 = vmatmul.mubr.f32.gmra.mxu1 %v3330_v18 }
 0x3b6   : > { %v3335_v60 = vmax.f32 %v3198_v59, 0.0  ;;  %v3202_v25 = vadd.f32 %v3201_v21, %v2945_v2 }
 0x3b7   : > { %v3203_v6 = vpop.f32.mrf.mxu1  ;;  %v3541_v13 = vpop.f32.mrf.mxu0 }
 0x3b8   : > { %v3204_v53 = vadd.f32 %v3203_v6, %v2947_v16  ;;  %3847 = vmatprep.mubr.f32.mxu1 %v3335_v60  ;;  %v3338_v24 = vmax.f32 %v3202_v25, 0.0 }
 0x3b9   : > { %v3207_v54 = vpop.f32.mrf.mxu1  ;;  %v7259_v11 = vpop.f32.mrf.mxu0  ;;  %3848 = vmatmul.mubr.f32.gmra.mxu1 %v3334_v47 }
 0x3ba   : > { %v3339_v34 = vmax.f32 %v3204_v53, 0.0  ;;  %v3208_v23 = vadd.f32 %v3207_v54, %v2951_v31 }
 0x3bb   : > { %v3209_v56 = vpop.f32.mrf.mxu1  ;;  %v3546_v3 = vpop.f32.mrf.mxu0 }
 0x3bc   : > { %v3210_v48 = vadd.f32 %v3209_v56, %v2953_v49  ;;  %3852 = vmatprep.mubr.f32.mxu1 %v3339_v34  ;;  %v3342_v4 = vmax.f32 %v3208_v23, 0.0 }
 0x3bd   : > { %v3213_v44 = vpop.f32.mrf.mxu1  ;;  %v7265_v37 = vpop.f32.mrf.mxu0  ;;  %3853 = vmatmul.mubr.f32.gmra.mxu1 %v3338_v24 }
 0x3be   : > { %v3343_v42 = vmax.f32 %v3210_v48, 0.0  ;;  %v3214_v7 = vadd.f32 %v3213_v44, %v2957_v29 }
 0x3bf   : > { %v3215_v45 = vpop.f32.mrf.mxu1  ;;  %v3551_v14 = vpop.f32.mrf.mxu0 }
 0x3c0   : > { %v3216_v33 = vadd.f32 %v3215_v45, %v2959_v41  ;;  %3857 = vmatprep.mubr.f32.mxu1 %v3343_v42  ;;  %v3346_v20 = vmax.f32 %v3214_v7, 0.0 }
 0x3c1   : > { %v3219_v9 = vpop.f32.mrf.mxu1  ;;  %v7271_v15 = vpop.f32.mrf.mxu0  ;;  %3858 = vmatmul.mubr.f32.gmra.mxu1 %v3342_v4  ;;  %v7312_v4 = vld [vmem:[%s7471_s6] ss:$0 sm:$0xff] }
 0x3c2   : > { %v3347_v22 = vmax.f32 %v3216_v33, 0.0  ;;  %v3220_v51 = vadd.f32 %v3219_v9, %v2963_v30  ;;  %v3490_v14 = vadd.f32 %v7312_v4, %v7193_v61 }
 0x3c3   : > { %v3221_v36 = vpop.f32.mrf.mxu1  ;;  %v3556_v63 = vpop.f32.mrf.mxu0 }
 0x3c4   : > { %v3222_v27 = vadd.f32 %v3221_v36, %v2965_v17  ;;  %3862 = vmatprep.mubr.f32.mxu1 %v3347_v22  ;;  %v3350_v10 = vmax.f32 %v3220_v51, 0.0  ;;  %v3495_v17 = vadd.f32 %v7312_v4, %v7199_v57  ;;  %v3500_v36 = vadd.f32 %v7312_v4, %v7205_v28 }
 0x3c5   : > { %v7275_v38 = vpop.f32.mrf.mxu0  ;;  %3863 = vmatmul.mubr.f32.gmra.mxu1 %v3346_v20  ;;  %v3505_v57 = vadd.f32 %v7312_v4, %v7211_v19 }
 0x3c6   : > { %v3351_v32 = vmax.f32 %v3222_v27, 0.0 }
 0x3c7   : > { %v3561_v52 = vpop.f32.mrf.mxu0 }
 0x3c8   : > { %3867 = vmatprep.mubr.f32.mxu1 %v3351_v32 }
 0x3c9   : > { %v7277_v50 = vpop.f32.mrf.mxu0  ;;  %3868 = vmatmul.mubr.f32.gmra.mxu1 %v3350_v10 }
 0x3cb   : > { %v3566_v26 = vpop.f32.mrf.mxu0 }
 0x3cc   : > { %v3510_v26 = vadd.f32 %v7312_v4, %v7217_v55 }
 0x3cd   : > { %v7279_v43 = vpop.f32.mrf.mxu0 }
 0x3cf   : > { %v3571_v12 = vpop.f32.mrf.mxu0 }
 0x3d1   : > { %v7281_v5 = vpop.f32.mrf.mxu0 }
 0x3d3   : > { %v3576_v18 = vpop.f32.mrf.mxu0 }
 0x3d5   : > { %v7283_v35 = vpop.f32.mrf.mxu0 }
 0x3d7   : > { %v3581_v8 = vpop.f32.mrf.mxu0 }
 0x3d8   : > { %v3515_v8 = vadd.f32 %v7312_v4, %v7223_v0 }
 0x3d9   : > { %v7285_v39 = vpop.f32.mrf.mxu0 }
 0x3db   : > { %v3586_v59 = vpop.f32.mrf.mxu0 }
 0x3dd   : > { %v7287_v2 = vpop.f32.mrf.mxu0 }
 0x3df   : > { %v3591_v21 = vpop.f32.mrf.mxu0 }
 0x3e1   : > { %v7289_v16 = vpop.f32.mrf.mxu0 }
 0x3e3   : > { %v3596_v60 = vpop.f32.mrf.mxu0 }
 0x3e4   : > { %v3520_v60 = vadd.f32 %v7312_v4, %v7229_v58 }
 0x3e5   : > { %v7291_v47 = vpop.f32.mrf.mxu0 }
 0x3e7   : > { %v3601_v25 = vpop.f32.mrf.mxu0 }
 0x3e9   : > { %v7293_v6 = vpop.f32.mrf.mxu0 }
 0x3eb   : > { %v3606_v13 = vpop.f32.mrf.mxu0 }
 0x3ed   : > { %v7295_v53 = vpop.f32.mrf.mxu0 }
 0x3ef   : > { %v3611_v31 = vpop.f32.mrf.mxu0 }
 0x3f0   : > { %v3525_v31 = vadd.f32 %v7312_v4, %v7235_v40 }
 0x3f1   : > { %v7297_v54 = vpop.f32.mrf.mxu0 }
 0x3f3   : > { %v3616_v49 = vpop.f32.mrf.mxu0 }
 0x3f5   : > { %v7299_v34 = vpop.f32.mrf.mxu0 }
 0x3f7   : > { %v3621_v24 = vpop.f32.mrf.mxu0 }
 0x3f9   : > { %v7301_v23 = vpop.f32.mrf.mxu0 }
 0x3fb   : > { %v3626_v56 = vpop.f32.mrf.mxu0 }
 0x3fc   : > { %v3530_v56 = vadd.f32 %v7312_v4, %v7241_v62 }
 0x3fd   : > { %v7303_v3 = vpop.f32.mrf.mxu0 }
 0x3ff   : > { %v3631_v48 = vpop.f32.mrf.mxu0 }
 0x401   : > { %v7305_v29 = vpop.f32.mrf.mxu0 }
 0x403   : > { %v3636_v44 = vpop.f32.mrf.mxu0 }
 0x405   : > { %v7307_v41 = vpop.f32.mrf.mxu0 }
 0x407   : > { %v3641_v42 = vpop.f32.mrf.mxu0 }
 0x408   : > { %v3535_v42 = vadd.f32 %v7312_v4, %v7247_v46 }
 0x409   : > { %v7314_v7 = vpop.f32.mrf.mxu0 }
 0x40b   : > { %v3646_v45 = vpop.f32.mrf.mxu0 }
 0x40d   : > { %v3714_v33 = vpop.f32.mrf.mxu1 }
 0x40e   : > { %v3715_v30 = vadd.f32 %v3714_v33, %v3490_v14  ;;  %v3540_v33 = vadd.f32 %v7312_v4, %v7253_v1 }
 0x40f   : > { %v3716_v9 = vpop.f32.mrf.mxu1 }
 0x410   : > { %3873 = vst [vmem:[%s7321_s10] sm:$0xff] %v3715_v30 }
 0x411   : > { %v3719_v22 = vpop.f32.mrf.mxu1 }
 0x412   : > { %v3720_v20 = vadd.f32 %v3719_v22, %v3495_v17  ;;  %v3545_v17 = vadd.f32 %v7312_v4, %v7259_v11 }
 0x413   : > { %v3721_v51 = vpop.f32.mrf.mxu1 }
 0x414   : > { %3874 = vst [vmem:[%s7321_s10 + $0x8] sm:$0xff] %v3720_v20  ;;  %v3550_v51 = vadd.f32 %v7312_v4, %v7265_v37 }
 0x415   : > { %v3724_v61 = vpop.f32.mrf.mxu1 }
 0x416   : > { %v3725_v63 = vadd.f32 %v3724_v61, %v3500_v36 }
 0x417   : > { %v3726_v27 = vpop.f32.mrf.mxu1 }
 0x418   : > { %3875 = vst [vmem:[%s7321_s10 + $0x10] sm:$0xff] %v3725_v63  ;;  %v3555_v63 = vadd.f32 %v7312_v4, %v7271_v15 }
 0x419   : > { %v3729_v32 = vpop.f32.mrf.mxu1 }
 0x41a   : > { %v3730_v10 = vadd.f32 %v3729_v32, %v3505_v57  ;;  %v3560_v32 = vadd.f32 %v7312_v4, %v7275_v38 }
 0x41b   : > { %v3731_v52 = vpop.f32.mrf.mxu1 }
 0x41c   : > { %3876 = vst [vmem:[%s7321_s10 + $0x18] sm:$0xff] %v3730_v10 }
 0x41d   : > { %v3734_v12 = vpop.f32.mrf.mxu1 }
 0x41e   : > { %v3735_v28 = vadd.f32 %v3734_v12, %v3510_v26  ;;  %v3565_v26 = vadd.f32 %v7312_v4, %v7277_v50 }
 0x41f   : > { %v3736_v18 = vpop.f32.mrf.mxu1 }
 0x420   : > { %3877 = vst [vmem:[%s7321_s10 + $0x20] sm:$0xff] %v3735_v28  ;;  %v3570_v18 = vadd.f32 %v7312_v4, %v7279_v43 }
 0x421   : > { %v3739_v59 = vpop.f32.mrf.mxu1 }
 0x422   : > { %v3740_v19 = vadd.f32 %v3739_v59, %v3515_v8 }
 0x423   : > { %v3741_v21 = vpop.f32.mrf.mxu1 }
 0x424   : > { %3878 = vst [vmem:[%s7321_s10 + $0x28] sm:$0xff] %v3740_v19  ;;  %v3575_v19 = vadd.f32 %v7312_v4, %v7281_v5 }
 0x425   : > { %v3744_v25 = vpop.f32.mrf.mxu1 }
 0x426   : > { %v3745_v55 = vadd.f32 %v3744_v25, %v3520_v60  ;;  %v3580_v25 = vadd.f32 %v7312_v4, %v7283_v35 }
 0x427   : > { %v3746_v13 = vpop.f32.mrf.mxu1 }
 0x428   : > { %3879 = vst [vmem:[%s7321_s10 + $0x30] sm:$0xff] %v3745_v55 }
 0x429   : > { %v3749_v49 = vpop.f32.mrf.mxu1 }
 0x42a   : > { %v3750_v0 = vadd.f32 %v3749_v49, %v3525_v31  ;;  %v3585_v31 = vadd.f32 %v7312_v4, %v7285_v39 }
 0x42b   : > { %v3751_v24 = vpop.f32.mrf.mxu1 }
 0x42c   : > { %3880 = vst [vmem:[%s7321_s10 + $0x38] sm:$0xff] %v3750_v0  ;;  %v3590_v24 = vadd.f32 %v7312_v4, %v7287_v2 }
 0x42d   : > { %v3754_v48 = vpop.f32.mrf.mxu1 }
 0x42e   : > { %v3755_v58 = vadd.f32 %v3754_v48, %v3530_v56 }
 0x42f   : > { %v3756_v44 = vpop.f32.mrf.mxu1 }
 0x430   : > { %3881 = vst [vmem:[%s7321_s10 + $0x40] sm:$0xff] %v3755_v58  ;;  %v3595_v58 = vadd.f32 %v7312_v4, %v7289_v16 }
 0x431   : > { %v3759_v45 = vpop.f32.mrf.mxu1 }
 0x432   : > { %v3760_v40 = vadd.f32 %v3759_v45, %v3535_v42  ;;  %v3600_v45 = vadd.f32 %v7312_v4, %v7291_v47 }
 0x433   : > { %v3761_v14 = vpop.f32.mrf.mxu1 }
 0x434   : > { %3882 = vst [vmem:[%s7321_s10 + $0x48] sm:$0xff] %v3760_v40 }
 0x435   : > { %v3764_v30 = vpop.f32.mrf.mxu1 }
 0x436   : > { %v3765_v62 = vadd.f32 %v3764_v30, %v3540_v33  ;;  %v3605_v33 = vadd.f32 %v7312_v4, %v7293_v6 }
 0x437   : > { %v3766_v9 = vpop.f32.mrf.mxu1 }
 0x438   : > { %3883 = vst [vmem:[%s7321_s10 + $0x50] sm:$0xff] %v3765_v62  ;;  %v3610_v9 = vadd.f32 %v7312_v4, %v7295_v53 }
 0x439   : > { %v3769_v22 = vpop.f32.mrf.mxu1 }
 0x43a   : > { %v3770_v46 = vadd.f32 %v3769_v22, %v3545_v17 }
 0x43b   : > { %v3771_v20 = vpop.f32.mrf.mxu1 }
 0x43c   : > { %3884 = vst [vmem:[%s7321_s10 + $0x58] sm:$0xff] %v3770_v46  ;;  %v3615_v46 = vadd.f32 %v7312_v4, %v7297_v54 }
 0x43d   : > { %v3774_v36 = vpop.f32.mrf.mxu1 }
 0x43e   : > { %v3775_v1 = vadd.f32 %v3774_v36, %v3550_v51  ;;  %v3620_v36 = vadd.f32 %v7312_v4, %v7299_v34 }
 0x43f   : > { %v3776_v61 = vpop.f32.mrf.mxu1 }
 0x440   : > { %3885 = vst [vmem:[%s7321_s10 + $0x60] sm:$0xff] %v3775_v1 }
 0x441   : > { %v3779_v27 = vpop.f32.mrf.mxu1 }
 0x442   : > { %v3780_v11 = vadd.f32 %v3779_v27, %v3555_v63  ;;  %v3625_v63 = vadd.f32 %v7312_v4, %v7301_v23 }
 0x443   : > { %v3781_v57 = vpop.f32.mrf.mxu1 }
 0x444   : > { %3886 = vst [vmem:[%s7321_s10 + $0x68] sm:$0xff] %v3780_v11  ;;  %v3630_v57 = vadd.f32 %v7312_v4, %v7303_v3 }
 0x445   : > { %v3784_v10 = vpop.f32.mrf.mxu1 }
 0x446   : > { %v3785_v37 = vadd.f32 %v3784_v10, %v3560_v32 }
 0x447   : > { %v3786_v52 = vpop.f32.mrf.mxu1 }
 0x448   : > { %3887 = vst [vmem:[%s7321_s10 + $0x70] sm:$0xff] %v3785_v37  ;;  %v3635_v37 = vadd.f32 %v7312_v4, %v7305_v29 }
 0x449   : > { %v3789_v12 = vpop.f32.mrf.mxu1 }
 0x44a   : > { %v3790_v15 = vadd.f32 %v3789_v12, %v3565_v26  ;;  %v3640_v12 = vadd.f32 %v7312_v4, %v7307_v41 }
 0x44b   : > { %v3791_v28 = vpop.f32.mrf.mxu1 }
 0x44c   : > { %3888 = vst [vmem:[%s7321_s10 + $0x78] sm:$0xff] %v3790_v15 }
 0x44d   : > { %v3794_v8 = vpop.f32.mrf.mxu1 }
 0x44e   : > { %v3795_v38 = vadd.f32 %v3794_v8, %v3570_v18  ;;  %v3645_v18 = vadd.f32 %v7312_v4, %v7314_v7 }
 0x44f   : > { %v3796_v59 = vpop.f32.mrf.mxu1 }
 0x450   : > { %3889 = vst [vmem:[%s7321_s10 + $0x80] sm:$0xff] %v3795_v38 }
 0x451   : > { %v3799_v21 = vpop.f32.mrf.mxu1 }
 0x452   : > { %v3800_v50 = vadd.f32 %v3799_v21, %v3575_v19 }
 0x453   : > { %v3801_v60 = vpop.f32.mrf.mxu1 }
 0x454   : > { %3890 = vst [vmem:[%s7321_s10 + $0x88] sm:$0xff] %v3800_v50 }
 0x455   : > { %v3804_v55 = vpop.f32.mrf.mxu1 }
 0x456   : > { %v3805_v43 = vadd.f32 %v3804_v55, %v3580_v25 }
 0x457   : > { %v3806_v13 = vpop.f32.mrf.mxu1 }
 0x458   : > { %3891 = vst [vmem:[%s7321_s10 + $0x90] sm:$0xff] %v3805_v43 }
 0x459   : > { %v3809_v49 = vpop.f32.mrf.mxu1 }
 0x45a   : > { %v3810_v5 = vadd.f32 %v3809_v49, %v3585_v31 }
 0x45b   : > { %v3811_v0 = vpop.f32.mrf.mxu1 }
 0x45c   : > { %3892 = vst [vmem:[%s7321_s10 + $0x98] sm:$0xff] %v3810_v5 }
 0x45d   : > { %v3814_v56 = vpop.f32.mrf.mxu1 }
 0x45e   : > { %v3815_v35 = vadd.f32 %v3814_v56, %v3590_v24 }
 0x45f   : > { %v3816_v48 = vpop.f32.mrf.mxu1 }
 0x460   : > { %3893 = vst [vmem:[%s7321_s10 + $0xa0] sm:$0xff] %v3815_v35 }
 0x461   : > { %v3819_v44 = vpop.f32.mrf.mxu1 }
 0x462   : > { %v3820_v39 = vadd.f32 %v3819_v44, %v3595_v58 }
 0x463   : > { %v3821_v42 = vpop.f32.mrf.mxu1 }
 0x464   : > { %3894 = vst [vmem:[%s7321_s10 + $0xa8] sm:$0xff] %v3820_v39 }
 0x465   : > { %v3824_v40 = vpop.f32.mrf.mxu1 }
 0x466   : > { %v3825_v2 = vadd.f32 %v3824_v40, %v3600_v45 }
 0x467   : > { %v3826_v14 = vpop.f32.mrf.mxu1 }
 0x468   : > { %3895 = vst [vmem:[%s7321_s10 + $0xb0] sm:$0xff] %v3825_v2 }
 0x469   : > { %v3829_v30 = vpop.f32.mrf.mxu1 }
 0x46a   : > { %v3830_v16 = vadd.f32 %v3829_v30, %v3605_v33 }
 0x46b   : > { %v3831_v62 = vpop.f32.mrf.mxu1 }
 0x46c   : > { %3896 = vst [vmem:[%s7321_s10 + $0xb8] sm:$0xff] %v3830_v16 }
 0x46d   : > { %v3834_v17 = vpop.f32.mrf.mxu1 }
 0x46e   : > { %v3835_v47 = vadd.f32 %v3834_v17, %v3610_v9 }
 0x46f   : > { %v3836_v22 = vpop.f32.mrf.mxu1 }
 0x470   : > { %3897 = vst [vmem:[%s7321_s10 + $0xc0] sm:$0xff] %v3835_v47 }
 0x471   : > { %v3839_v20 = vpop.f32.mrf.mxu1 }
 0x472   : > { %v3840_v6 = vadd.f32 %v3839_v20, %v3615_v46 }
 0x473   : > { %v3841_v51 = vpop.f32.mrf.mxu1 }
 0x474   : > { %3898 = vst [vmem:[%s7321_s10 + $0xc8] sm:$0xff] %v3840_v6 }
 0x475   : > { %v3844_v1 = vpop.f32.mrf.mxu1 }
 0x476   : > { %v3845_v53 = vadd.f32 %v3844_v1, %v3620_v36 }
 0x477   : > { %v3846_v61 = vpop.f32.mrf.mxu1 }
 0x478   : > { %3899 = vst [vmem:[%s7321_s10 + $0xd0] sm:$0xff] %v3845_v53 }
 0x479   : > { %v3849_v27 = vpop.f32.mrf.mxu1 }
 0x47a   : > { %v3850_v54 = vadd.f32 %v3849_v27, %v3625_v63 }
 0x47b   : > { %v3851_v11 = vpop.f32.mrf.mxu1 }
 0x47c   : > { %3900 = vst [vmem:[%s7321_s10 + $0xd8] sm:$0xff] %v3850_v54 }
 0x47d   : > { %v3854_v34 = vpop.f32.mrf.mxu1 }
 0x47e   : > { %v3855_v32 = vadd.f32 %v3854_v34, %v3630_v57 }
 0x47f   : > { %v3856_v10 = vpop.f32.mrf.mxu1 }
 0x480   : > { %3901 = vst [vmem:[%s7321_s10 + $0xe0] sm:$0xff] %v3855_v32 }
 0x481   : > { %v3859_v23 = vpop.f32.mrf.mxu1 }
 0x482   : > { %v3860_v52 = vadd.f32 %v3859_v23, %v3635_v37 }
 0x483   : > { %v3861_v26 = vpop.f32.mrf.mxu1 }
 0x484   : > { %3902 = vst [vmem:[%s7321_s10 + $0xe8] sm:$0xff] %v3860_v52 }
 0x485   : > { %v3864_v15 = vpop.f32.mrf.mxu1 }
 0x486   : > { %v3865_v3 = vadd.f32 %v3864_v15, %v3640_v12 }
 0x487   : > { %v3866_v28 = vpop.f32.mrf.mxu1 }
 0x488   : > { %3903 = vst [vmem:[%s7321_s10 + $0xf0] sm:$0xff] %v3865_v3 }
 0x489   : > { %v3869_v29 = vpop.f32.mrf.mxu1 }
 0x48a   : > { %v3870_v41 = vadd.f32 %v3869_v29, %v3645_v18 }
 0x48b   : > { %v3871_v8 = vpop.f32.mrf.mxu1 }
 0x48c   : > { %3904 = vst [vmem:[%s7321_s10 + $0xf8] sm:$0xff] %v3870_v41 }
 0x48d   : > { %4301 = shalt.err (!%p4298_p5)
}
 0x48e   : > { %s4302_s9 = scalar_lea.hbm %s7419_s17, 4096  ;;  %s4306_s29 = scalar_lea.hbm %s7472_s7, 8192 }
 0x48f   : > { %p4303_p6 = scmp.ne.s32.totalorder %s7419_s17, %s4302_s9  ;;  %p4307_p1 = scmp.lt.s32.totalorder %s7419_s17, %s7472_s7 }
 0x490   : > { %p4308_p11 = scmp.lt.s32.totalorder %s4306_s29, %s4302_s9 }
 0x491   : > { %p4304_p4 = pnand %p4303_p6, %p8271_p12 }
 0x492   : > { %p4309_p0 = por %p4308_p11, %p4307_p1 }
 0x493   : > { %p4305_p8 = pneg %p4304_p4 }
 0x495   : > { %p4310_p2 = pnand %p4309_p0, %p4305_p8 }
 0x497   : > { %4313 = shalt.err (!%p4310_p2)
}
 0x498   : > { %s4373_s15 = smov 128   ;;  %s4374_s18 = smov 8  }
 0x499   : > { %4075 = dma.vmem_to_hbm [thread:$0]  (%p8271_p12), %s7421_s12, 4096, %s7419_s17, %s3906_s28, %s4373_s15, %s4373_s15, %s4374_s18  }
 0x49a PF: > { %s3934_s1 = sand.u32 1, %s4348_s24   ;;  %p8272_p10 = scmp.ne.s32.totalorder %s7700_s8, 0 }
 0x49b   : > { %p8273_p7 = scmp.ge.s32.totalorder %s4360_s27, 2  ;;  %s3935_s14 = scalar_lea.sflag [#allocation4], %s3934_s1 }
 0x49d   : > { %p4095_p9 = pnand %p8273_p7, %p8272_p10 }
 0x49f   : > { %p4096_p13 = pneg %p4095_p9 }
 0x4a1   : > { %4343 = dma.done.wait (%p4096_p13), %s3935_s14, 4096  }
 0x4a2   : > { %4345 = vsyncadd (%p4096_p13), %s3935_s14, 4294963200  ;;  %p22_p3 = scmp.ge.s32.totalorder %s4509_s23, 4   ;;  %s8274_s24 = smov %s4352_s25 }
 0x4a3   : > { %s8275_s25 = smov %s4356_s26  ;;  %s8276_s26 = smov %s4518_s11 }
 0x4a4   : > { %s8277_s27 = smov %s4509_s23  ;;  %24 = sbr.rel (!%p22_p3) target bundleno = 9 (0x9), region = 109 }
 0x4a9   :  { %3940 = vsyncpa [#allocation3], 1 }
 0x4aa   :  { %3942 = vsyncpa [#allocation3 + $0x1], 1 }
 0x4ab   :  { %3943 = vsyncpa [#allocation6], 1 }
 0x4ac   :  { %3944 = vsyncpa [#allocation9], 1 }
 0x4ad   :  { %3945 = vsyncpa [#allocation4], 1 }
 0x4ae   :  { %3947 = vsyncpa [#allocation4 + $0x1], 1 }

</bundles_post_ra>
